<compile_context>
chip_gen: v5e
topology: v5e:2x2
jax: 0.10.0
libtpu: 0.0.40
codegen_flags: <defaults>
</compile_context>

<pallas_src>
import functools

import jax
import jax.numpy as jnp
from jax.experimental import pallas as pl
from jax.experimental.pallas import tpu as pltpu

LANES = 128                                # lane-padded width for every layer
_CONV_ARCH = ((8, 4), (4, 2), (3, 1))      # (kernel, stride) for conv1..conv3
_VMEM_LIMIT = 32 * 1024 * 1024             # safe on v5e/v6e/v7x


def _cdiv(a, b):
    return -(-a // b)


def _round_up(x, m):
    return ((x + m - 1) // m) * m


def _pick_row_tiling(rows, cap, mult=16):
    """Return (row_tile, padded_rows).

    Tiles are multiples of `mult` (bf16 sublane packing), divide padded_rows
    exactly, respect `cap`, and give >=2 blocks whenever possible so v7x can
    shard the 'parallel' row axis across both TensorCores."""
    r = _round_up(rows, mult)
    if r < 2 * mult:
        return rows, rows                  # too small to split: one full block
    n_blk = max(2, _cdiv(r, cap))
    tile = _round_up(_cdiv(r, n_blk), mult)
    padded = tile * _cdiv(r, tile)
    return tile, padded


# ---------------------------------------------------------------------------
# Conv kernel: one im2col matmul per row tile (no reduction axis)
# ---------------------------------------------------------------------------
def _conv_kernel(tap_ref, w_ref, b_ref, o_ref):
    # (tile_m, K) x (K, 128) bf16 operands, f32 accumulate; bias+ReLU in f32.
    acc = jnp.dot(tap_ref[...], w_ref[...], preferred_element_type=jnp.float32)
    o_ref[...] = jnp.maximum(acc + b_ref[...], 0.0).astype(o_ref.dtype)


def _im2col(x, kh, kw, stride):
    """x: (N, H, W, C) NHWC -> (N*OH*OW, kh*kw*C) taps (strided slices+concat,
    no transposes; tap K ordering matches the (kh, kw, Cin) weight reshape)."""
    n, h, w, c = x.shape
    oh = (h - kh) // stride + 1
    ow = (w - kw) // stride + 1
    cols = []
    for i in range(kh):
        for j in range(kw):
            cols.append(
                x[:, i:i + stride * oh:stride, j:j + stride * ow:stride, :]
                .reshape(n * oh * ow, c))
    return jnp.concatenate(cols, axis=-1), oh, ow


def conv2d_relu(x, w, b, kh, kw, stride):
    """x: (N, H, W, Cin) bf16 (real channels only).  w: (kh*kw*Cin, 128) bf16.
    b: (1, 128) f32.  Returns (N, OH, OW, 128) bf16 (out-channels lane-padded)."""
    n = x.shape[0]
    taps, oh, ow = _im2col(x, kh, kw, stride)
    m_rows = n * oh * ow
    tile_m, m_pad = _pick_row_tiling(m_rows, cap=1024)
    if m_pad != m_rows:
        taps = jnp.pad(taps, ((0, m_pad - m_rows), (0, 0)))
    k = taps.shape[-1]
    oc = w.shape[-1]

    y = pl.pallas_call(
        _conv_kernel,
        out_shape=jax.ShapeDtypeStruct((m_pad, oc), jnp.bfloat16),
        grid=(m_pad // tile_m,),
        in_specs=[
            pl.BlockSpec((tile_m, k), lambda mi: (mi, 0)),
            pl.BlockSpec((k, oc), lambda mi: (0, 0)),
            pl.BlockSpec((1, oc), lambda mi: (0, 0)),
        ],
        out_specs=pl.BlockSpec((tile_m, oc), lambda mi: (mi, 0)),
        compiler_params=pltpu.CompilerParams(
            dimension_semantics=("parallel",),
            vmem_limit_bytes=_VMEM_LIMIT),
    )(taps, w, b)

    return y[:m_rows].reshape(n, oh, ow, oc)


# ---------------------------------------------------------------------------
# Fused tail kernel: fc + MLP (ReLU hiddens, linear head) + Categorical
# ---------------------------------------------------------------------------
def _mlp_cat_kernel(x_ref, wfc_ref, bfc_ref, wh_ref, bh_ref, logp_ref, p_ref,
                    *, n_layers):
    # fc (no ReLU, matches CNNFeatureExtractor)
    h = jnp.dot(x_ref[...], wfc_ref[...],
                preferred_element_type=jnp.float32) + bfc_ref[...]
    # hidden layers with ReLU, final linear without
    for i in range(n_layers):
        z = jnp.dot(h.astype(jnp.bfloat16), wh_ref[i],
                    preferred_element_type=jnp.float32) + bh_ref[i]
        h = jnp.maximum(z, 0.0) if i < n_layers - 1 else z
    # Padded logit lanes are already at -1e30 (baked into the head bias).
    logits = h
    m = jnp.max(logits, axis=-1, keepdims=True)
    e = jnp.exp(logits - m)
    s = jnp.sum(e, axis=-1, keepdims=True)
    logp_ref[...] = (logits - m) - jnp.log(s)
    p_ref[...] = e / s            # reuse e, s; exact division (1e-5 prob check)


def mlp_categorical(feat, wfc, bfc, wh, bh, output_dim):
    n, k = feat.shape
    d = wfc.shape[1]
    n_layers = wh.shape[0]
    tile_n, n_pad = _pick_row_tiling(n, cap=256)
    if n_pad != n:
        feat = jnp.pad(feat, ((0, n_pad - n), (0, 0)))
    kernel = functools.partial(_mlp_cat_kernel, n_layers=n_layers)
    logp, p = pl.pallas_call(
        kernel,
        out_shape=(jax.ShapeDtypeStruct((n_pad, d), jnp.float32),
                   jax.ShapeDtypeStruct((n_pad, d), jnp.float32)),
        grid=(n_pad // tile_n,),
        in_specs=[
            pl.BlockSpec((tile_n, k), lambda i: (i, 0)),
            pl.BlockSpec((k, d), lambda i: (0, 0)),           # VMEM-resident
            pl.BlockSpec((1, d), lambda i: (0, 0)),
            pl.BlockSpec((n_layers, d, d), lambda i: (0, 0, 0)),
            pl.BlockSpec((n_layers, 1, d), lambda i: (0, 0, 0)),
        ],
        out_specs=(pl.BlockSpec((tile_n, d), lambda i: (i, 0)),
                   pl.BlockSpec((tile_n, d), lambda i: (i, 0))),
        compiler_params=pltpu.CompilerParams(
            dimension_semantics=("parallel",),
            vmem_limit_bytes=_VMEM_LIMIT),
    )(feat, wfc, bfc, wh, bh)
    return logp[:n, :output_dim], p[:n, :output_dim]


# ---------------------------------------------------------------------------
# Parameters: PyTorch-layout init + one-time conversion to kernel layout
# ---------------------------------------------------------------------------
def init_params(key, input_channels, cnn_output_dim, output_dim, hidden_dims):
    """PyTorch-layout parameters with nn.Linear/nn.Conv2d default init."""
    def lin(k, fan_in, fan_out):
        kw_, kb = jax.random.split(k)
        bound = 1.0 / jnp.sqrt(fan_in)
        w = jax.random.uniform(kw_, (fan_out, fan_in), jnp.float32, -bound, bound)
        b = jax.random.uniform(kb, (fan_out,), jnp.float32, -bound, bound)
        return w, b

    def conv(k, out_c, in_c, kh, kw_):
        kk, kb = jax.random.split(k)
        fan_in = in_c * kh * kw_
        bound = 1.0 / jnp.sqrt(fan_in)
        w = jax.random.uniform(kk, (out_c, in_c, kh, kw_), jnp.float32, -bound, bound)
        b = jax.random.uniform(kb, (out_c,), jnp.float32, -bound, bound)
        return w, b

    keys = jax.random.split(key, 4 + len(hidden_dims) + 1)
    params = {}
    params["conv1"] = conv(keys[0], 32, input_channels, 8, 8)
    params["conv2"] = conv(keys[1], 64, 32, 4, 4)
    params["conv3"] = conv(keys[2], 64, 64, 3, 3)
    params["fc"] = lin(keys[3], 64 * 7 * 7, cnn_output_dim)
    mlp_params = []
    in_dim = cnn_output_dim
    for i, hdim in enumerate(hidden_dims):
        mlp_params.append(lin(keys[4 + i], in_dim, hdim))
        in_dim = hdim
    mlp_params.append(lin(keys[4 + len(hidden_dims)], in_dim, output_dim))
    params["mlp"] = mlp_params
    return params


def prepare_params(params, cnn_output_dim, output_dim):
    """One-time conversion: NHWC-ordered im2col weights, REAL (unpadded) K,
    lane-padded (128) outputs, bf16 MXU operands.  Biases stay f32."""
    d = LANES
    assert cnn_output_dim <= d and output_dim <= d
    prep = {}

    # Conv weights: (out,in,kh,kw) -> (kh*kw*in, 128), out padded to 128 lanes.
    convs = []
    for name in ("conv1", "conv2", "conv3"):
        w, b = params[name]
        out_c, in_c, kh, kw = w.shape
        wt = jnp.transpose(w, (2, 3, 1, 0))                    # (kh, kw, in, out)
        wt = jnp.pad(wt, ((0, 0), (0, 0), (0, 0), (0, d - out_c)))
        wt = wt.reshape(kh * kw * in_c, d).astype(jnp.bfloat16)
        bp = jnp.pad(b, (0, d - out_c)).reshape(1, d).astype(jnp.float32)
        convs.append((wt, bp))
    prep["convs"] = convs

    # fc: torch columns are NCHW-flattened (c,h,w); feat is (h,w,c)-flattened
    # with the REAL 64 channels only (no K padding).
    w_fc, b_fc = params["fc"]
    wfc = w_fc.reshape(cnn_output_dim, 64, 7, 7).transpose(2, 3, 1, 0)  # (h,w,c,o)
    wfc = jnp.pad(wfc, ((0, 0), (0, 0), (0, 0), (0, d - cnn_output_dim)))
    prep["wfc"] = wfc.reshape(7 * 7 * 64, d).astype(jnp.bfloat16)
    prep["bfc"] = jnp.pad(b_fc, (0, d - cnn_output_dim)).reshape(1, d).astype(jnp.float32)

    # MLP (hidden layers + final head), padded to (128, 128) and stacked.  The
    # padded lanes of the FINAL bias carry the -1e30 softmax mask (padded
    # weight columns are zero, so those logits equal the bias exactly).
    wh, bh = [], []
    n_mlp = len(params["mlp"])
    for li, (w, b) in enumerate(params["mlp"]):
        o, i = w.shape
        assert o <= d and i <= d
        wh.append(jnp.pad(w.T, ((0, d - i), (0, d - o))).astype(jnp.bfloat16))
        bp = jnp.pad(b, (0, d - o))
        if li == n_mlp - 1 and o < d:
            bp = bp.at[o:].set(-1e30)
        bh.append(bp.reshape(1, d).astype(jnp.float32))
    prep["wh"] = jnp.stack(wh, axis=0)          # (L+1, 128, 128)
    prep["bh"] = jnp.stack(bh, axis=0)          # (L+1, 1, 128)
    return prep


# ---------------------------------------------------------------------------
# Forward
# ---------------------------------------------------------------------------
@functools.partial(jax.jit, static_argnums=(2,))
def forward(prep, x_nchw, output_dim):
    """x: (N, C, 84, 84) NCHW f32 -> (log_probs, probs) of the Categorical."""
    x = jnp.transpose(x_nchw, (0, 2, 3, 1)).astype(jnp.bfloat16)   # NHWC+bf16, once
    for (w, b), (k, s) in zip(prep["convs"], _CONV_ARCH):
        in_c = w.shape[0] // (k * k)            # REAL input channels (no K pad)
        x = conv2d_relu(x[..., :in_c], w, b, k, k, s)
    n, oh, ow, _ = x.shape
    feat_c = prep["wfc"].shape[0] // (oh * ow)  # real conv3 channels (64)
    feat = x[..., :feat_c].reshape(n, -1)       # (N, 7*7*64) bf16, no K padding
    return mlp_categorical(feat, prep["wfc"], prep["bfc"],
                           prep["wh"], prep["bh"], output_dim)


if __name__ == "__main__":
    # fc expects 64*7*7 features, which pins the input spatial size to 84x84.
    batch = 2
    input_channels = 4
    cnn_output_dim = 32
    output_dim = 6
    hidden_dims = [32, 32]      # spectral_norms=[False, False], dropout=0.0

    key = jax.random.PRNGKey(0)
    k_params, k_x = jax.random.split(key)
    params = init_params(k_params, input_channels, cnn_output_dim, output_dim,
                         hidden_dims)
    prep = prepare_params(params, cnn_output_dim, output_dim)
    x = jax.random.normal(k_x, (batch, input_channels, 84, 84), jnp.float32)

    log_probs, probs = forward(prep, x, output_dim)
    jax.block_until_ready((log_probs, probs))

    assert log_probs.shape == (batch, output_dim)
    assert probs.shape == (batch, output_dim)
    # probs of a Categorical must sum to 1
    assert bool(jnp.all(jnp.abs(jnp.sum(probs, axis=-1) - 1.0) < 1e-5))
    print("KERNEL_OK")
</pallas_src>

<mosaic_0001>
module attributes {stable_mosaic.version = 11 : i64} {
  func.func @_conv_kernel(%arg0: i32, %arg1: memref<400x256xbf16, #tpu.memory_space<vmem>>, %arg2: memref<256x128xbf16, #tpu.memory_space<vmem>>, %arg3: memref<1x128xf32, #tpu.memory_space<vmem>>, %arg4: memref<400x128xbf16, #tpu.memory_space<vmem>>) attributes {dimension_semantics = [#tpu.dimension_semantics<parallel>], iteration_bounds = array<i64: 2>, scalar_prefetch = 0 : i64, scratch_operands = 0 : i64, tpu.core_type = #tpu.core_type<tc>, window_params = [{transform_indices = @transform_0, window_bounds = array<i64: 400, 256>}, {pipeline_mode = #tpu.pipeline_mode<synchronous>, transform_indices = @transform_1, window_bounds = array<i64: 256, 128>}, {pipeline_mode = #tpu.pipeline_mode<synchronous>, transform_indices = @transform_2, window_bounds = array<i64: 1, 128>}, {transform_indices = @transform_3, window_bounds = array<i64: 400, 128>}]} {
    %c0 = arith.constant 0 : index
    %c0_0 = arith.constant 0 : index
    %0 = vector.load %arg1[%c0, %c0_0] : memref<400x256xbf16, #tpu.memory_space<vmem>>, vector<400x256xbf16>
    %c0_1 = arith.constant 0 : index
    %c0_2 = arith.constant 0 : index
    %1 = vector.load %arg2[%c0_1, %c0_2] : memref<256x128xbf16, #tpu.memory_space<vmem>>, vector<256x128xbf16>
    %cst = arith.constant dense<0.000000e+00> : vector<400x128xf32>
    %2 = tpu.matmul %0, %1, %cst {dimension_numbers = #tpu.dot_dimension_numbers<[1], [0], [0], [1], [0, 0, 1, 1], [], []>} : vector<400x256xbf16>, vector<256x128xbf16>, vector<400x128xf32> -> vector<400x128xf32>
    %c0_3 = arith.constant 0 : index
    %c0_4 = arith.constant 0 : index
    %3 = vector.load %arg3[%c0_3, %c0_4] : memref<1x128xf32, #tpu.memory_space<vmem>>, vector<1x128xf32>
    %4 = vector.broadcast %3 : vector<1x128xf32> to vector<400x128xf32>
    %5 = arith.addf %2, %4 : vector<400x128xf32>
    %cst_5 = arith.constant 0.000000e+00 : f32
    %6 = vector.broadcast %cst_5 : f32 to vector<400x128xf32>
    %7 = arith.maximumf %5, %6 : vector<400x128xf32>
    %8 = arith.truncf %7 : vector<400x128xf32> to vector<400x128xbf16>
    %c0_6 = arith.constant 0 : index
    %c0_7 = arith.constant 0 : index
    %9 = vector.load %arg4[%c0_6, %c0_7] : memref<400x128xbf16, #tpu.memory_space<vmem>>, vector<400x128xbf16>
    tpu.vector_store %arg4[%c0_6, %c0_7], %8 {strides = array<i32>} : memref<400x128xbf16, #tpu.memory_space<vmem>>, vector<400x128xbf16>,
    return
  }
  func.func @transform_0(%arg0: i32) -> (i32, i32) {
    %c0_i32 = arith.constant 0 : i32
    %c0_i32_0 = arith.constant 0 : i32
    return %arg0, %c0_i32 : i32, i32
  }
  func.func @transform_1(%arg0: i32) -> (i32, i32) {
    %c0_i32 = arith.constant 0 : i32
    %c0_i32_0 = arith.constant 0 : i32
    %c0_i32_1 = arith.constant 0 : i32
    return %c0_i32, %c0_i32_0 : i32, i32
  }
  func.func @transform_2(%arg0: i32) -> (i32, i32) {
    %c0_i32 = arith.constant 0 : i32
    %c0_i32_0 = arith.constant 0 : i32
    %c0_i32_1 = arith.constant 0 : i32
    return %c0_i32, %c0_i32_0 : i32, i32
  }
  func.func @transform_3(%arg0: i32) -> (i32, i32) {
    %c0_i32 = arith.constant 0 : i32
    %c0_i32_0 = arith.constant 0 : i32
    return %arg0, %c0_i32 : i32, i32
  }
}

module attributes {stable_mosaic.version = 11 : i64} {
  func.func @_conv_kernel(%arg0: i32, %arg1: memref<96x512xbf16, #tpu.memory_space<vmem>>, %arg2: memref<512x128xbf16, #tpu.memory_space<vmem>>, %arg3: memref<1x128xf32, #tpu.memory_space<vmem>>, %arg4: memref<96x128xbf16, #tpu.memory_space<vmem>>) attributes {dimension_semantics = [#tpu.dimension_semantics<parallel>], iteration_bounds = array<i64: 2>, scalar_prefetch = 0 : i64, scratch_operands = 0 : i64, tpu.core_type = #tpu.core_type<tc>, window_params = [{transform_indices = @transform_0, window_bounds = array<i64: 96, 512>}, {pipeline_mode = #tpu.pipeline_mode<synchronous>, transform_indices = @transform_1, window_bounds = array<i64: 512, 128>}, {pipeline_mode = #tpu.pipeline_mode<synchronous>, transform_indices = @transform_2, window_bounds = array<i64: 1, 128>}, {transform_indices = @transform_3, window_bounds = array<i64: 96, 128>}]} {
    %c0 = arith.constant 0 : index
    %c0_0 = arith.constant 0 : index
    %0 = vector.load %arg1[%c0, %c0_0] : memref<96x512xbf16, #tpu.memory_space<vmem>>, vector<96x512xbf16>
    %c0_1 = arith.constant 0 : index
    %c0_2 = arith.constant 0 : index
    %1 = vector.load %arg2[%c0_1, %c0_2] : memref<512x128xbf16, #tpu.memory_space<vmem>>, vector<512x128xbf16>
    %cst = arith.constant dense<0.000000e+00> : vector<96x128xf32>
    %2 = tpu.matmul %0, %1, %cst {dimension_numbers = #tpu.dot_dimension_numbers<[1], [0], [0], [1], [0, 0, 1, 1], [], []>} : vector<96x512xbf16>, vector<512x128xbf16>, vector<96x128xf32> -> vector<96x128xf32>
    %c0_3 = arith.constant 0 : index
    %c0_4 = arith.constant 0 : index
    %3 = vector.load %arg3[%c0_3, %c0_4] : memref<1x128xf32, #tpu.memory_space<vmem>>, vector<1x128xf32>
    %4 = vector.broadcast %3 : vector<1x128xf32> to vector<96x128xf32>
    %5 = arith.addf %2, %4 : vector<96x128xf32>
    %cst_5 = arith.constant 0.000000e+00 : f32
    %6 = vector.broadcast %cst_5 : f32 to vector<96x128xf32>
    %7 = arith.maximumf %5, %6 : vector<96x128xf32>
    %8 = arith.truncf %7 : vector<96x128xf32> to vector<96x128xbf16>
    %c0_6 = arith.constant 0 : index
    %c0_7 = arith.constant 0 : index
    %9 = vector.load %arg4[%c0_6, %c0_7] : memref<96x128xbf16, #tpu.memory_space<vmem>>, vector<96x128xbf16>
    tpu.vector_store %arg4[%c0_6, %c0_7], %8 {strides = array<i32>} : memref<96x128xbf16, #tpu.memory_space<vmem>>, vector<96x128xbf16>,
    return
  }
  func.func @transform_0(%arg0: i32) -> (i32, i32) {
    %c0_i32 = arith.constant 0 : i32
    %c0_i32_0 = arith.constant 0 : i32
    return %arg0, %c0_i32 : i32, i32
  }
  func.func @transform_1(%arg0: i32) -> (i32, i32) {
    %c0_i32 = arith.constant 0 : i32
    %c0_i32_0 = arith.constant 0 : i32
    %c0_i32_1 = arith.constant 0 : i32
    return %c0_i32, %c0_i32_0 : i32, i32
  }
  func.func @transform_2(%arg0: i32) -> (i32, i32) {
    %c0_i32 = arith.constant 0 : i32
    %c0_i32_0 = arith.constant 0 : i32
    %c0_i32_1 = arith.constant 0 : i32
    return %c0_i32, %c0_i32_0 : i32, i32
  }
  func.func @transform_3(%arg0: i32) -> (i32, i32) {
    %c0_i32 = arith.constant 0 : i32
    %c0_i32_0 = arith.constant 0 : i32
    return %arg0, %c0_i32 : i32, i32
  }
}

module attributes {stable_mosaic.version = 11 : i64} {
  func.func @_conv_kernel(%arg0: i32, %arg1: memref<64x576xbf16, #tpu.memory_space<vmem>>, %arg2: memref<576x128xbf16, #tpu.memory_space<vmem>>, %arg3: memref<1x128xf32, #tpu.memory_space<vmem>>, %arg4: memref<64x128xbf16, #tpu.memory_space<vmem>>) attributes {dimension_semantics = [#tpu.dimension_semantics<parallel>], iteration_bounds = array<i64: 2>, scalar_prefetch = 0 : i64, scratch_operands = 0 : i64, tpu.core_type = #tpu.core_type<tc>, window_params = [{transform_indices = @transform_0, window_bounds = array<i64: 64, 576>}, {pipeline_mode = #tpu.pipeline_mode<synchronous>, transform_indices = @transform_1, window_bounds = array<i64: 576, 128>}, {pipeline_mode = #tpu.pipeline_mode<synchronous>, transform_indices = @transform_2, window_bounds = array<i64: 1, 128>}, {transform_indices = @transform_3, window_bounds = array<i64: 64, 128>}]} {
    %c0 = arith.constant 0 : index
    %c0_0 = arith.constant 0 : index
    %0 = vector.load %arg1[%c0, %c0_0] : memref<64x576xbf16, #tpu.memory_space<vmem>>, vector<64x576xbf16>
    %c0_1 = arith.constant 0 : index
    %c0_2 = arith.constant 0 : index
    %1 = vector.load %arg2[%c0_1, %c0_2] : memref<576x128xbf16, #tpu.memory_space<vmem>>, vector<576x128xbf16>
    %cst = arith.constant dense<0.000000e+00> : vector<64x128xf32>
    %2 = tpu.matmul %0, %1, %cst {dimension_numbers = #tpu.dot_dimension_numbers<[1], [0], [0], [1], [0, 0, 1, 1], [], []>} : vector<64x576xbf16>, vector<576x128xbf16>, vector<64x128xf32> -> vector<64x128xf32>
    %c0_3 = arith.constant 0 : index
    %c0_4 = arith.constant 0 : index
    %3 = vector.load %arg3[%c0_3, %c0_4] : memref<1x128xf32, #tpu.memory_space<vmem>>, vector<1x128xf32>
    %4 = vector.broadcast %3 : vector<1x128xf32> to vector<64x128xf32>
    %5 = arith.addf %2, %4 : vector<64x128xf32>
    %cst_5 = arith.constant 0.000000e+00 : f32
    %6 = vector.broadcast %cst_5 : f32 to vector<64x128xf32>
    %7 = arith.maximumf %5, %6 : vector<64x128xf32>
    %8 = arith.truncf %7 : vector<64x128xf32> to vector<64x128xbf16>
    %c0_6 = arith.constant 0 : index
    %c0_7 = arith.constant 0 : index
    %9 = vector.load %arg4[%c0_6, %c0_7] : memref<64x128xbf16, #tpu.memory_space<vmem>>, vector<64x128xbf16>
    tpu.vector_store %arg4[%c0_6, %c0_7], %8 {strides = array<i32>} : memref<64x128xbf16, #tpu.memory_space<vmem>>, vector<64x128xbf16>,
    return
  }
  func.func @transform_0(%arg0: i32) -> (i32, i32) {
    %c0_i32 = arith.constant 0 : i32
    %c0_i32_0 = arith.constant 0 : i32
    return %arg0, %c0_i32 : i32, i32
  }
  func.func @transform_1(%arg0: i32) -> (i32, i32) {
    %c0_i32 = arith.constant 0 : i32
    %c0_i32_0 = arith.constant 0 : i32
    %c0_i32_1 = arith.constant 0 : i32
    return %c0_i32, %c0_i32_0 : i32, i32
  }
  func.func @transform_2(%arg0: i32) -> (i32, i32) {
    %c0_i32 = arith.constant 0 : i32
    %c0_i32_0 = arith.constant 0 : i32
    %c0_i32_1 = arith.constant 0 : i32
    return %c0_i32, %c0_i32_0 : i32, i32
  }
  func.func @transform_3(%arg0: i32) -> (i32, i32) {
    %c0_i32 = arith.constant 0 : i32
    %c0_i32_0 = arith.constant 0 : i32
    return %arg0, %c0_i32 : i32, i32
  }
}

module attributes {stable_mosaic.version = 11 : i64} {
  func.func @_mlp_cat_kernel(%arg0: i32, %arg1: memref<2x3136xbf16, #tpu.memory_space<vmem>>, %arg2: memref<3136x128xbf16, #tpu.memory_space<vmem>>, %arg3: memref<1x128xf32, #tpu.memory_space<vmem>>, %arg4: memref<3x128x128xbf16, #tpu.memory_space<vmem>>, %arg5: memref<3x1x128xf32, #tpu.memory_space<vmem>>, %arg6: memref<2x128xf32, #tpu.memory_space<vmem>>, %arg7: memref<2x128xf32, #tpu.memory_space<vmem>>) attributes {dimension_semantics = [#tpu.dimension_semantics<parallel>], iteration_bounds = array<i64: 1>, scalar_prefetch = 0 : i64, scratch_operands = 0 : i64, tpu.core_type = #tpu.core_type<tc>, window_params = [{transform_indices = @transform_0, window_bounds = array<i64: 2, 3136>}, {pipeline_mode = #tpu.pipeline_mode<synchronous>, transform_indices = @transform_1, window_bounds = array<i64: 3136, 128>}, {pipeline_mode = #tpu.pipeline_mode<synchronous>, transform_indices = @transform_2, window_bounds = array<i64: 1, 128>}, {pipeline_mode = #tpu.pipeline_mode<synchronous>, transform_indices = @transform_3, window_bounds = array<i64: 3, 128, 128>}, {pipeline_mode = #tpu.pipeline_mode<synchronous>, transform_indices = @transform_4, window_bounds = array<i64: 3, 1, 128>}, {transform_indices = @transform_5, window_bounds = array<i64: 2, 128>}, {transform_indices = @transform_6, window_bounds = array<i64: 2, 128>}]} {
    %c0 = arith.constant 0 : index
    %c0_0 = arith.constant 0 : index
    %0 = vector.load %arg1[%c0, %c0_0] : memref<2x3136xbf16, #tpu.memory_space<vmem>>, vector<2x3136xbf16>
    %c0_1 = arith.constant 0 : index
    %c0_2 = arith.constant 0 : index
    %1 = vector.load %arg2[%c0_1, %c0_2] : memref<3136x128xbf16, #tpu.memory_space<vmem>>, vector<3136x128xbf16>
    %cst = arith.constant dense<0.000000e+00> : vector<2x128xf32>
    %2 = tpu.matmul %0, %1, %cst {dimension_numbers = #tpu.dot_dimension_numbers<[1], [0], [0], [1], [0, 0, 1, 1], [], []>} : vector<2x3136xbf16>, vector<3136x128xbf16>, vector<2x128xf32> -> vector<2x128xf32>
    %c0_3 = arith.constant 0 : index
    %c0_4 = arith.constant 0 : index
    %3 = vector.load %arg3[%c0_3, %c0_4] : memref<1x128xf32, #tpu.memory_space<vmem>>, vector<1x128xf32>
    %4 = vector.broadcast %3 : vector<1x128xf32> to vector<2x128xf32>
    %5 = arith.addf %2, %4 : vector<2x128xf32>
    %6 = arith.truncf %5 : vector<2x128xf32> to vector<2x128xbf16>
    %c0_5 = arith.constant 0 : index
    %c0_6 = arith.constant 0 : index
    %c0_7 = arith.constant 0 : index
    %7 = vector.load %arg4[%c0_5, %c0_6, %c0_7] : memref<3x128x128xbf16, #tpu.memory_space<vmem>>, vector<1x128x128xbf16>
    %8 = vector.shape_cast %7 : vector<1x128x128xbf16> to vector<128x128xbf16>
    %cst_8 = arith.constant dense<0.000000e+00> : vector<2x128xf32>
    %9 = tpu.matmul %6, %8, %cst_8 {dimension_numbers = #tpu.dot_dimension_numbers<[1], [0], [0], [1], [0, 0, 1, 1], [], []>} : vector<2x128xbf16>, vector<128x128xbf16>, vector<2x128xf32> -> vector<2x128xf32>
    %c0_9 = arith.constant 0 : index
    %c0_10 = arith.constant 0 : index
    %c0_11 = arith.constant 0 : index
    %10 = vector.load %arg5[%c0_9, %c0_10, %c0_11] : memref<3x1x128xf32, #tpu.memory_space<vmem>>, vector<1x1x128xf32>
    %11 = vector.shape_cast %10 : vector<1x1x128xf32> to vector<1x128xf32>
    %12 = vector.broadcast %11 : vector<1x128xf32> to vector<2x128xf32>
    %13 = arith.addf %9, %12 : vector<2x128xf32>
    %cst_12 = arith.constant 0.000000e+00 : f32
    %14 = vector.broadcast %cst_12 : f32 to vector<2x128xf32>
    %15 = arith.maximumf %13, %14 : vector<2x128xf32>
    %16 = arith.truncf %15 : vector<2x128xf32> to vector<2x128xbf16>
    %c1 = arith.constant 1 : index
    %c0_13 = arith.constant 0 : index
    %c0_14 = arith.constant 0 : index
    %17 = vector.load %arg4[%c1, %c0_13, %c0_14] : memref<3x128x128xbf16, #tpu.memory_space<vmem>>, vector<1x128x128xbf16>
    %18 = vector.shape_cast %17 : vector<1x128x128xbf16> to vector<128x128xbf16>
    %cst_15 = arith.constant dense<0.000000e+00> : vector<2x128xf32>
    %19 = tpu.matmul %16, %18, %cst_15 {dimension_numbers = #tpu.dot_dimension_numbers<[1], [0], [0], [1], [0, 0, 1, 1], [], []>} : vector<2x128xbf16>, vector<128x128xbf16>, vector<2x128xf32> -> vector<2x128xf32>
    %c1_16 = arith.constant 1 : index
    %c0_17 = arith.constant 0 : index
    %c0_18 = arith.constant 0 : index
    %20 = vector.load %arg5[%c1_16, %c0_17, %c0_18] : memref<3x1x128xf32, #tpu.memory_space<vmem>>, vector<1x1x128xf32>
    %21 = vector.shape_cast %20 : vector<1x1x128xf32> to vector<1x128xf32>
    %22 = vector.broadcast %21 : vector<1x128xf32> to vector<2x128xf32>
    %23 = arith.addf %19, %22 : vector<2x128xf32>
    %cst_19 = arith.constant 0.000000e+00 : f32
    %24 = vector.broadcast %cst_19 : f32 to vector<2x128xf32>
    %25 = arith.maximumf %23, %24 : vector<2x128xf32>
    %26 = arith.truncf %25 : vector<2x128xf32> to vector<2x128xbf16>
    %c2 = arith.constant 2 : index
    %c0_20 = arith.constant 0 : index
    %c0_21 = arith.constant 0 : index
    %27 = vector.load %arg4[%c2, %c0_20, %c0_21] : memref<3x128x128xbf16, #tpu.memory_space<vmem>>, vector<1x128x128xbf16>
    %28 = vector.shape_cast %27 : vector<1x128x128xbf16> to vector<128x128xbf16>
    %cst_22 = arith.constant dense<0.000000e+00> : vector<2x128xf32>
    %29 = tpu.matmul %26, %28, %cst_22 {dimension_numbers = #tpu.dot_dimension_numbers<[1], [0], [0], [1], [0, 0, 1, 1], [], []>} : vector<2x128xbf16>, vector<128x128xbf16>, vector<2x128xf32> -> vector<2x128xf32>
    %c2_23 = arith.constant 2 : index
    %c0_24 = arith.constant 0 : index
    %c0_25 = arith.constant 0 : index
    %30 = vector.load %arg5[%c2_23, %c0_24, %c0_25] : memref<3x1x128xf32, #tpu.memory_space<vmem>>, vector<1x1x128xf32>
    %31 = vector.shape_cast %30 : vector<1x1x128xf32> to vector<1x128xf32>
    %32 = vector.broadcast %31 : vector<1x128xf32> to vector<2x128xf32>
    %33 = arith.addf %29, %32 : vector<2x128xf32>
    %cst_26 = arith.constant dense<0xFF800000> : vector<2xf32>
    %34 = vector.multi_reduction <maximumf>, %33, %cst_26 [1] : vector<2x128xf32> to vector<2xf32>
    %35 = vector.shape_cast %34 : vector<2xf32> to vector<2x1xf32>
    %36 = vector.broadcast %35 : vector<2x1xf32> to vector<2x128xf32>
    %37 = arith.subf %33, %36 : vector<2x128xf32>
    %38 = math.exp %37 : vector<2x128xf32>
    %cst_27 = arith.constant dense<0.000000e+00> : vector<2xf32>
    %39 = vector.multi_reduction <add>, %38, %cst_27 [1] : vector<2x128xf32> to vector<2xf32>
    %40 = vector.shape_cast %39 : vector<2xf32> to vector<2x1xf32>
    %41 = vector.broadcast %35 : vector<2x1xf32> to vector<2x128xf32>
    %42 = arith.subf %33, %41 : vector<2x128xf32>
    %43 = math.log %40 : vector<2x1xf32>
    %44 = vector.broadcast %43 : vector<2x1xf32> to vector<2x128xf32>
    %45 = arith.subf %42, %44 : vector<2x128xf32>
    %c0_28 = arith.constant 0 : index
    %c0_29 = arith.constant 0 : index
    %46 = vector.load %arg6[%c0_28, %c0_29] : memref<2x128xf32, #tpu.memory_space<vmem>>, vector<2x128xf32>
    tpu.vector_store %arg6[%c0_28, %c0_29], %45 {strides = array<i32>} : memref<2x128xf32, #tpu.memory_space<vmem>>, vector<2x128xf32>,
    %47 = vector.broadcast %40 : vector<2x1xf32> to vector<2x128xf32>
    %48 = arith.divf %38, %47 : vector<2x128xf32>
    %c0_30 = arith.constant 0 : index
    %c0_31 = arith.constant 0 : index
    %49 = vector.load %arg7[%c0_30, %c0_31] : memref<2x128xf32, #tpu.memory_space<vmem>>, vector<2x128xf32>
    tpu.vector_store %arg7[%c0_30, %c0_31], %48 {strides = array<i32>} : memref<2x128xf32, #tpu.memory_space<vmem>>, vector<2x128xf32>,
    return
  }
  func.func @transform_0(%arg0: i32) -> (i32, i32) {
    %c0_i32 = arith.constant 0 : i32
    %c0_i32_0 = arith.constant 0 : i32
    return %arg0, %c0_i32 : i32, i32
  }
  func.func @transform_1(%arg0: i32) -> (i32, i32) {
    %c0_i32 = arith.constant 0 : i32
    %c0_i32_0 = arith.constant 0 : i32
    %c0_i32_1 = arith.constant 0 : i32
    return %c0_i32, %c0_i32_0 : i32, i32
  }
  func.func @transform_2(%arg0: i32) -> (i32, i32) {
    %c0_i32 = arith.constant 0 : i32
    %c0_i32_0 = arith.constant 0 : i32
    %c0_i32_1 = arith.constant 0 : i32
    return %c0_i32, %c0_i32_0 : i32, i32
  }
  func.func @transform_3(%arg0: i32) -> (i32, i32, i32) {
    %c0_i32 = arith.constant 0 : i32
    %c0_i32_0 = arith.constant 0 : i32
    %c0_i32_1 = arith.constant 0 : i32
    %c0_i32_2 = arith.constant 0 : i32
    return %c0_i32, %c0_i32_0, %c0_i32_1 : i32, i32, i32
  }
  func.func @transform_4(%arg0: i32) -> (i32, i32, i32) {
    %c0_i32 = arith.constant 0 : i32
    %c0_i32_0 = arith.constant 0 : i32
    %c0_i32_1 = arith.constant 0 : i32
    %c0_i32_2 = arith.constant 0 : i32
    return %c0_i32, %c0_i32_0, %c0_i32_1 : i32, i32, i32
  }
  func.func @transform_5(%arg0: i32) -> (i32, i32) {
    %c0_i32 = arith.constant 0 : i32
    %c0_i32_0 = arith.constant 0 : i32
    return %arg0, %c0_i32 : i32, i32
  }
  func.func @transform_6(%arg0: i32) -> (i32, i32) {
    %c0_i32 = arith.constant 0 : i32
    %c0_i32_0 = arith.constant 0 : i32
    return %arg0, %c0_i32 : i32, i32
  }
}

</mosaic_0001>

<bundles_post_ra>
// kernel: forward.4
= control target key start
LH: loop header
LB: loop body
LE: loop exit
PB: predicated region body
PF: predicated region fallthrough
CT: control target
= control target key end

     0   :  { %s1626_s12 = smov 0   ;;  %s1885_s0 = inlined_call_operand.vmem [shape: bf16[800,256], index: 0, kind: input, shape index: {}]   ;;  %s1886_s1 = inlined_call_operand.vmem [shape: bf16[256,128], index: 1, kind: input, shape index: {}]   ;;  %s1887_s2 = inlined_call_operand.vmem [shape: f32[1,128], index: 2, kind: input, shape index: {}]   ;;  %s1888_s3 = inlined_call_operand.vmem [shape: bf16[800,128], index: 3, kind: output, shape index: {}]  }
   0x1 LB: > { %s1083_s13 = sadd.s32 4294967295, %s1604_s12   ;;  %p1087_p0 = scmp.ge.s32.totalorder %s1604_s12, 1  ;;  %s1604_s12 = sphi %s1626_s12, %s13_s12  }
   0x2   : > { %p139_p1 = scmp.lt.s32.totalorder %s1604_s12, 3 }
   0x4   : > { %p140_p2 = pnand %p1087_p0, %p139_p1 }
   0x5   : > { %s164_s26 = smul.u32 (!%p140_p2), 50, %s1083_s13 }
   0x6   : > { %143 = sbr.rel (%p140_p2) target bundleno = 384 (0x180), region = 32 }
   0x7   : > { %p165_p3 = scmp.lt.s32.totalorder (!%p140_p2), %s164_s26, 99 }
   0xb   : > { %v1415_v0 = vld [vmem:[%s1886_s1 + $0x38] sm:$0xff]  ;;  %v1414_v2 = vld [vmem:[%s1886_s1 + $0x30] sm:$0xff]  ;;  %v1413_v4 = vld [vmem:[%s1886_s1 + $0x28] sm:$0xff]  ;;  %s1890_s26 = smov (!%p165_p3, %s164_s26), 99 }
   0xc   : > { %v1423_v1 = vld [vmem:[%s1886_s1 + $0x78] sm:$0xff]  ;;  %609 = vmatpush.bf16.msra.mxu0 %v1415_v0  ;;  %1573 = vmatpush.bf16.msra.mxu2 %v1415_v0  ;;  %v1422_v3 = vld [vmem:[%s1886_s1 + $0x70] sm:$0xff]  ;;  %v1421_v5 = vld [vmem:[%s1886_s1 + $0x68] sm:$0xff]  ;;  %s1357_s13 = sshll.u32 %s1890_s26, 3  ;;  %s1090_s28 = sshll.u32 %s1890_s26, 2 }
   0xd   : > { %743 = vmatpush.bf16.msra.mxu1 %v1423_v1  ;;  %1581 = vmatpush.bf16.msra.mxu3 %v1423_v1  ;;  %v1412_v6 = vld [vmem:[%s1886_s1 + $0x20] sm:$0xff]  ;;  %v1411_v8 = vld [vmem:[%s1886_s1 + $0x18] sm:$0xff]  ;;  %v1410_v10 = vld [vmem:[%s1886_s1 + $0x10] sm:$0xff]  ;;  %s1679_s18 = scalar_lea.vmem %s1885_s0, %s1357_s13  ;;  %s1783_s4 = scalar_lea.vmem %s1888_s3, %s1090_s28 }
   0xe   : > { %v1420_v7 = vld [vmem:[%s1886_s1 + $0x60] sm:$0xff]  ;;  %v1419_v9 = vld [vmem:[%s1886_s1 + $0x58] sm:$0xff]  ;;  %v1418_v11 = vld [vmem:[%s1886_s1 + $0x50] sm:$0xff] }
   0xf   : > { %v1409_v12 = vld [vmem:[%s1886_s1 + $0x8] sm:$0xff]  ;;  %v1408_v14 = vld [vmem:[%s1886_s1] sm:$0xff]  ;;  %v1384_v22 = vld [vmem:[%s1679_s18 + $0xd4] sm:$0xf] }
  0x10   : > { %610 = vmatpush.bf16.msra.mxu0 %v1414_v2  ;;  %1574 = vmatpush.bf16.msra.mxu2 %v1414_v2  ;;  %v1417_v13 = vld [vmem:[%s1886_s1 + $0x48] sm:$0xff]  ;;  %v1416_v15 = vld [vmem:[%s1886_s1 + $0x40] sm:$0xff]  ;;  %v1199_v23 = vld [vmem:[%s1679_s18 + $0xd8] sm:$0xf0] }
  0x11   : > { %744 = vmatpush.bf16.msra.mxu1 %v1422_v3  ;;  %1582 = vmatpush.bf16.msra.mxu3 %v1422_v3  ;;  %v1093_v16 = vld [vmem:[%s1679_s18] sm:$0xf]  ;;  %v1359_v17 = vld [vmem:[%s1679_s18 + $0x4] sm:$0xf0]  ;;  %v1358_v20 = vld [vmem:[%s1679_s18 + $0x4] sm:$0xf]  ;;  %v1202_v27 = vor.u32 %v1384_v22, %v1199_v23 }
  0x12   : > { %v1189_v18 = vld [vmem:[%s1679_s18 + $0xc0] sm:$0xf]  ;;  %v1383_v19 = vld [vmem:[%s1679_s18 + $0xc4] sm:$0xf0]  ;;  %v1095_v21 = vld [vmem:[%s1679_s18 + $0x8] sm:$0xf0]  ;;  %v1094_v24 = vor.u32 %v1359_v17, %v1093_v16 }
  0x13   : > { %v1190_v25 = vor.u32 %v1383_v19, %v1189_v18  ;;  %v1098_v26 = vor.u32 %v1358_v20, %v1095_v21  ;;  %v1101_v28 = vld [vmem:[%s1679_s18 + $0x10] sm:$0xf]  ;;  %v1361_v29 = vld [vmem:[%s1679_s18 + $0x14] sm:$0xf0]  ;;  %v1360_v32 = vld [vmem:[%s1679_s18 + $0x14] sm:$0xf] }
  0x14   : > { %611 = vmatpush.bf16.msra.mxu0 %v1413_v4  ;;  %1575 = vmatpush.bf16.msra.mxu2 %v1413_v4  ;;  %v1197_v30 = vld [vmem:[%s1679_s18 + $0xd0] sm:$0xf]  ;;  %v1385_v31 = vld [vmem:[%s1679_s18 + $0xd4] sm:$0xf0]  ;;  %v1103_v33 = vld [vmem:[%s1679_s18 + $0x18] sm:$0xf0]  ;;  %v1102_v36 = vor.u32 %v1361_v29, %v1101_v28 }
  0x15   : > { %745 = vmatpush.bf16.msra.mxu1 %v1421_v5  ;;  %1583 = vmatpush.bf16.msra.mxu3 %v1421_v5  ;;  %v1386_v34 = vld [vmem:[%s1679_s18 + $0xe4] sm:$0xf]  ;;  %v1207_v35 = vld [vmem:[%s1679_s18 + $0xe8] sm:$0xf0]  ;;  %v1198_v37 = vor.u32 %v1385_v31, %v1197_v30  ;;  %v1106_v38 = vor.u32 %v1360_v32, %v1103_v33  ;;  %v1109_v40 = vld [vmem:[%s1679_s18 + $0x20] sm:$0xf] }
  0x16   : > { %v1210_v39 = vor.u32 %v1386_v34, %v1207_v35  ;;  %v1363_v41 = vld [vmem:[%s1679_s18 + $0x24] sm:$0xf0]  ;;  %v1205_v42 = vld [vmem:[%s1679_s18 + $0xe0] sm:$0xf]  ;;  %v1362_v44 = vld [vmem:[%s1679_s18 + $0x24] sm:$0xf] }
  0x17   : > { %v1387_v43 = vld [vmem:[%s1679_s18 + $0xe4] sm:$0xf0]  ;;  %v1111_v45 = vld [vmem:[%s1679_s18 + $0x28] sm:$0xf0]  ;;  %v1388_v46 = vld [vmem:[%s1679_s18 + $0xf4] sm:$0xf]  ;;  %v1110_v48 = vor.u32 %v1363_v41, %v1109_v40 }
  0x18   : > { %612 = vmatpush.bf16.msra.mxu0 %v1412_v6  ;;  %1576 = vmatpush.bf16.msra.mxu2 %v1412_v6  ;;  %v1215_v47 = vld [vmem:[%s1679_s18 + $0xf8] sm:$0xf0]  ;;  %v1206_v49 = vor.u32 %v1387_v43, %v1205_v42  ;;  %v1114_v50 = vor.u32 %v1362_v44, %v1111_v45  ;;  %v1117_v52 = vld [vmem:[%s1679_s18 + $0x30] sm:$0xf]  ;;  %v1365_v53 = vld [vmem:[%s1679_s18 + $0x34] sm:$0xf0] }
  0x19   : > { %746 = vmatpush.bf16.msra.mxu1 %v1420_v7  ;;  %1584 = vmatpush.bf16.msra.mxu3 %v1420_v7  ;;  %v1218_v51 = vor.u32 %v1388_v46, %v1215_v47  ;;  %v1213_v54 = vld [vmem:[%s1679_s18 + $0xf0] sm:$0xf]  ;;  %v1389_v55 = vld [vmem:[%s1679_s18 + $0xf4] sm:$0xf0]  ;;  %v1364_v56 = vld [vmem:[%s1679_s18 + $0x34] sm:$0xf]  ;;  %v1118_v60 = vor.u32 %v1365_v53, %v1117_v52 }
  0x1a   : > { %v1119_v57 = vld [vmem:[%s1679_s18 + $0x38] sm:$0xf0]  ;;  %v1390_v58 = vld [vmem:[%s1679_s18 + $0x104] sm:$0xf]  ;;  %v1223_v59 = vld [vmem:[%s1679_s18 + $0x108] sm:$0xf0]  ;;  %v1214_v61 = vor.u32 %v1389_v55, %v1213_v54 }
  0x1b   : > { %v1122_v62 = vor.u32 %v1364_v56, %v1119_v57  ;;  %v1226_v63 = vor.u32 %v1390_v58, %v1223_v59  ;;  %v1125_v0 = vld [vmem:[%s1679_s18 + $0x40] sm:$0xf]  ;;  %v1367_v1 = vld [vmem:[%s1679_s18 + $0x44] sm:$0xf0]  ;;  %v1366_v4 = vld [vmem:[%s1679_s18 + $0x44] sm:$0xf] }
  0x1c   : > { %613 = vmatpush.bf16.msra.mxu0 %v1411_v8  ;;  %1577 = vmatpush.bf16.msra.mxu2 %v1411_v8  ;;  %v1221_v2 = vld [vmem:[%s1679_s18 + $0x100] sm:$0xf]  ;;  %v1391_v3 = vld [vmem:[%s1679_s18 + $0x104] sm:$0xf0]  ;;  %v1127_v5 = vld [vmem:[%s1679_s18 + $0x48] sm:$0xf0]  ;;  %v1126_v8 = vor.u32 %v1367_v1, %v1125_v0 }
  0x1d   : > { %747 = vmatpush.bf16.msra.mxu1 %v1419_v9  ;;  %1585 = vmatpush.bf16.msra.mxu3 %v1419_v9  ;;  %v1392_v6 = vld [vmem:[%s1679_s18 + $0x114] sm:$0xf]  ;;  %v1231_v7 = vld [vmem:[%s1679_s18 + $0x118] sm:$0xf0]  ;;  %v1222_v9 = vor.u32 %v1391_v3, %v1221_v2  ;;  %v1394_v18 = vld [vmem:[%s1679_s18 + $0x124] sm:$0xf] }
  0x1e   : > { %v1368_v16 = vld [vmem:[%s1679_s18 + $0x54] sm:$0xf]  ;;  %v1135_v17 = vld [vmem:[%s1679_s18 + $0x58] sm:$0xf0]  ;;  %v1239_v19 = vld [vmem:[%s1679_s18 + $0x128] sm:$0xf0] }
  0x1f   : > { %v1138_v22 = vor.u32 %v1368_v16, %v1135_v17  ;;  %v1242_v23 = vor.u32 %v1394_v18, %v1239_v19  ;;  %v1370_v28 = vld [vmem:[%s1679_s18 + $0x64] sm:$0xf]  ;;  %v1143_v29 = vld [vmem:[%s1679_s18 + $0x68] sm:$0xf0]  ;;  %v1396_v30 = vld [vmem:[%s1679_s18 + $0x134] sm:$0xf] }
  0x20   : > { %614 = vmatpush.bf16.msra.mxu0 %v1410_v10  ;;  %1578 = vmatpush.bf16.msra.mxu2 %v1410_v10  ;;  %v1130_v10 = vor.u32 %v1366_v4, %v1127_v5  ;;  %v1247_v31 = vld [vmem:[%s1679_s18 + $0x138] sm:$0xf0]  ;;  %v1146_v34 = vor.u32 %v1370_v28, %v1143_v29  ;;  %v1372_v40 = vld [vmem:[%s1679_s18 + $0x74] sm:$0xf]  ;;  %v1398_v42 = vld [vmem:[%s1679_s18 + $0x144] sm:$0xf] }
  0x21   : > { %748 = vmatpush.bf16.msra.mxu1 %v1418_v11  ;;  %1586 = vmatpush.bf16.msra.mxu3 %v1418_v11  ;;  %v1234_v11 = vor.u32 %v1392_v6, %v1231_v7  ;;  %v1250_v35 = vor.u32 %v1396_v30, %v1247_v31  ;;  %v1151_v41 = vld [vmem:[%s1679_s18 + $0x78] sm:$0xf0]  ;;  %v1255_v43 = vld [vmem:[%s1679_s18 + $0x148] sm:$0xf0]  ;;  %v1374_v52 = vld [vmem:[%s1679_s18 + $0x84] sm:$0xf] }
  0x22   : > { %v1154_v46 = vor.u32 %v1372_v40, %v1151_v41  ;;  %v1258_v47 = vor.u32 %v1398_v42, %v1255_v43  ;;  %v1159_v53 = vld [vmem:[%s1679_s18 + $0x88] sm:$0xf0]  ;;  %v1400_v54 = vld [vmem:[%s1679_s18 + $0x154] sm:$0xf]  ;;  %v1263_v55 = vld [vmem:[%s1679_s18 + $0x158] sm:$0xf0] }
  0x23   : > { %v1162_v59 = vor.u32 %v1374_v52, %v1159_v53  ;;  %v1165_v7 = vld [vmem:[%s1679_s18 + $0x90] sm:$0xf]  ;;  %v1271_v16 = vld [vmem:[%s1679_s18 + $0x168] sm:$0xf0]  ;;  %v1404_v43 = vld [vmem:[%s1679_s18 + $0x174] sm:$0xf] }
  0x24   : > { %615 = vmatpush.bf16.msra.mxu0 %v1409_v12  ;;  %1579 = vmatpush.bf16.msra.mxu2 %v1409_v12  ;;  %v1133_v12 = vld [vmem:[%s1679_s18 + $0x50] sm:$0xf]  ;;  %v1175_v40 = vld [vmem:[%s1679_s18 + $0xa8] sm:$0xf0] }
  0x25   : > { %749 = vmatpush.bf16.msra.mxu1 %v1417_v13  ;;  %1587 = vmatpush.bf16.msra.mxu3 %v1417_v13  ;;  %v1369_v13 = vld [vmem:[%s1679_s18 + $0x54] sm:$0xf0] }
  0x26   : > { %v1134_v20 = vor.u32 %v1369_v13, %v1133_v12  ;;  %v1167_v12 = vld [vmem:[%s1679_s18 + $0x98] sm:$0xf0] }
  0x28   : > { %616 = vmatpush.bf16.msra.mxu0 %v1408_v14  ;;  %1580 = vmatpush.bf16.msra.mxu2 %v1408_v14  ;;  %v1229_v14 = vld [vmem:[%s1679_s18 + $0x110] sm:$0xf] }
  0x29   : > { %750 = vmatpush.bf16.msra.mxu1 %v1416_v15  ;;  %1588 = vmatpush.bf16.msra.mxu3 %v1416_v15  ;;  %v1393_v15 = vld [vmem:[%s1679_s18 + $0x114] sm:$0xf0] }
  0x2a   : > { %v1230_v21 = vor.u32 %v1393_v15, %v1229_v14  ;;  %v1402_v15 = vld [vmem:[%s1679_s18 + $0x164] sm:$0xf] }
  0x2b   : > { %617 = vmatmul.bf16.vlgmr.msra.gmra.mxu0 %v1094_v24  ;;  %677 = vmatmul.bf16.vlgmr.msra.gmra.mxu2 %v1190_v25  ;;  %v1141_v24 = vld [vmem:[%s1679_s18 + $0x60] sm:$0xf]  ;;  %v1371_v25 = vld [vmem:[%s1679_s18 + $0x64] sm:$0xf0] }
  0x2c   : > { %751 = vmatmul.bf16.vlgmr.msra.gmra.mxu1 %v1098_v26  ;;  %816 = vmatmul.bf16.vlgmr.msra.gmra.mxu3 %v1202_v27  ;;  %v1237_v26 = vld [vmem:[%s1679_s18 + $0x120] sm:$0xf]  ;;  %v1395_v27 = vld [vmem:[%s1679_s18 + $0x124] sm:$0xf0]  ;;  %v1142_v32 = vor.u32 %v1371_v25, %v1141_v24  ;;  %v1274_v24 = vor.u32 %v1402_v15, %v1271_v16  ;;  %v1406_v15 = vld [vmem:[%s1679_s18 + $0x184] sm:$0xf] }
  0x2d   : > { %v1238_v33 = vor.u32 %v1395_v27, %v1237_v26  ;;  %v1287_v16 = vld [vmem:[%s1679_s18 + $0x188] sm:$0xf0] }
  0x3b   : > { %622 = vmatmul.bf16.gmra.mxu0 %v1102_v36  ;;  %682 = vmatmul.bf16.gmra.mxu2 %v1198_v37  ;;  %v1149_v36 = vld [vmem:[%s1679_s18 + $0x70] sm:$0xf]  ;;  %v1373_v37 = vld [vmem:[%s1679_s18 + $0x74] sm:$0xf0] }
  0x3c   : > { %756 = vmatmul.bf16.gmra.mxu1 %v1106_v38  ;;  %821 = vmatmul.bf16.gmra.mxu3 %v1210_v39  ;;  %v1245_v38 = vld [vmem:[%s1679_s18 + $0x130] sm:$0xf]  ;;  %v1397_v39 = vld [vmem:[%s1679_s18 + $0x134] sm:$0xf0]  ;;  %v1150_v44 = vor.u32 %v1373_v37, %v1149_v36  ;;  %v1379_v36 = vld [vmem:[%s1679_s18 + $0xa4] sm:$0xf0] }
  0x3d   : > { %v1246_v45 = vor.u32 %v1397_v39, %v1245_v38  ;;  %v1269_v37 = vld [vmem:[%s1679_s18 + $0x160] sm:$0xf]  ;;  %v1403_v38 = vld [vmem:[%s1679_s18 + $0x164] sm:$0xf0]  ;;  %v1378_v39 = vld [vmem:[%s1679_s18 + $0xa4] sm:$0xf] }
  0x3e   : > { %v1178_v53 = vor.u32 %v1378_v39, %v1175_v40 }
  0x4b   : > { %627 = vmatmul.bf16.gmra.mxu0 %v1110_v48  ;;  %687 = vmatmul.bf16.gmra.mxu2 %v1206_v49  ;;  %v1157_v48 = vld [vmem:[%s1679_s18 + $0x80] sm:$0xf]  ;;  %v1375_v49 = vld [vmem:[%s1679_s18 + $0x84] sm:$0xf0] }
  0x4c   : > { %761 = vmatmul.bf16.gmra.mxu1 %v1114_v50  ;;  %826 = vmatmul.bf16.gmra.mxu3 %v1218_v51  ;;  %v1253_v50 = vld [vmem:[%s1679_s18 + $0x140] sm:$0xf]  ;;  %v1399_v51 = vld [vmem:[%s1679_s18 + $0x144] sm:$0xf0]  ;;  %v1158_v56 = vor.u32 %v1375_v49, %v1157_v48 }
  0x4d   : > { %v1254_v57 = vor.u32 %v1399_v51, %v1253_v50  ;;  %v1270_v50 = vor.u32 %v1403_v38, %v1269_v37 }
  0x5b   : > { %632 = vmatmul.bf16.gmra.mxu0 %v1118_v60  ;;  %692 = vmatmul.bf16.gmra.mxu2 %v1214_v61  ;;  %v1266_v60 = vor.u32 %v1400_v54, %v1263_v55  ;;  %v1765_v61 = vld [vmem:[%s1887_s2] ss:$0 sm:$0xff] }
  0x5c   : > { %766 = vmatmul.bf16.gmra.mxu1 %v1122_v62  ;;  %831 = vmatmul.bf16.gmra.mxu3 %v1226_v63 }
  0x6b   : > { %637 = vmatmul.bf16.gmra.mxu0 %v1126_v8  ;;  %697 = vmatmul.bf16.gmra.mxu2 %v1222_v9  ;;  %v1377_v8 = vld [vmem:[%s1679_s18 + $0x94] sm:$0xf0]  ;;  %v1261_v9 = vld [vmem:[%s1679_s18 + $0x150] sm:$0xf] }
  0x6c   : > { %771 = vmatmul.bf16.gmra.mxu1 %v1130_v10  ;;  %836 = vmatmul.bf16.gmra.mxu3 %v1234_v11  ;;  %v1401_v10 = vld [vmem:[%s1679_s18 + $0x154] sm:$0xf0]  ;;  %v1376_v11 = vld [vmem:[%s1679_s18 + $0x94] sm:$0xf]  ;;  %v1166_v19 = vor.u32 %v1377_v8, %v1165_v7  ;;  %v1181_v7 = vld [vmem:[%s1679_s18 + $0xb0] sm:$0xf] }
  0x6d   : > { %v1381_v8 = vld [vmem:[%s1679_s18 + $0xb4] sm:$0xf0] }
  0x7b   : > { %642 = vmatmul.bf16.gmra.mxu0 %v1134_v20  ;;  %702 = vmatmul.bf16.gmra.mxu2 %v1230_v21  ;;  %v1262_v20 = vor.u32 %v1401_v10, %v1261_v9  ;;  %v1277_v9 = vld [vmem:[%s1679_s18 + $0x170] sm:$0xf]  ;;  %v1405_v10 = vld [vmem:[%s1679_s18 + $0x174] sm:$0xf0] }
  0x7c   : > { %776 = vmatmul.bf16.gmra.mxu1 %v1138_v22  ;;  %841 = vmatmul.bf16.gmra.mxu3 %v1242_v23  ;;  %v1170_v23 = vor.u32 %v1376_v11, %v1167_v12  ;;  %v1380_v11 = vld [vmem:[%s1679_s18 + $0xb4] sm:$0xf]  ;;  %v1183_v12 = vld [vmem:[%s1679_s18 + $0xb8] sm:$0xf0] }
  0x8b   : > { %647 = vmatmul.bf16.gmra.mxu0 %v1142_v32  ;;  %707 = vmatmul.bf16.gmra.mxu2 %v1238_v33 }
  0x8c   : > { %781 = vmatmul.bf16.gmra.mxu1 %v1146_v34  ;;  %846 = vmatmul.bf16.gmra.mxu3 %v1250_v35  ;;  %v1173_v35 = vld [vmem:[%s1679_s18 + $0xa0] sm:$0xf] }
  0x9b   : > { %652 = vmatmul.bf16.gmra.mxu0 %v1150_v44  ;;  %712 = vmatmul.bf16.gmra.mxu2 %v1246_v45  ;;  %v1279_v44 = vld [vmem:[%s1679_s18 + $0x178] sm:$0xf0] }
  0x9c   : > { %786 = vmatmul.bf16.gmra.mxu1 %v1154_v46  ;;  %851 = vmatmul.bf16.gmra.mxu3 %v1258_v47  ;;  %v1174_v46 = vor.u32 %v1379_v36, %v1173_v35  ;;  %v1282_v54 = vor.u32 %v1404_v43, %v1279_v44  ;;  %v1407_v43 = vld [vmem:[%s1679_s18 + $0x184] sm:$0xf0] }
  0xa8   : > { %v618_v58 = vpop.f32.mrf.mxu0 }
  0xa9   : > { %v752_v62 = vpop.f32.mrf.mxu1  ;;  %v619_v63 = vadd.f32 %v1765_v61, %v618_v58 }
  0xab   : > { %657 = vmatmul.bf16.gmra.mxu0 %v1158_v56  ;;  %717 = vmatmul.bf16.gmra.mxu2 %v1254_v57  ;;  %v753_v3 = vadd.f32 %v752_v62, %v619_v63 }
  0xac   : > { %791 = vmatmul.bf16.gmra.mxu1 %v1162_v59  ;;  %856 = vmatmul.bf16.gmra.mxu3 %v1266_v60 }
  0xad   : > { %v877_v13 = vmax.f32 %v753_v3, 0.0 }
  0xae   : > { %v1768_v0 = vpop.f32.mrf.mxu2 }
  0xaf   : > { %v817_v1 = vpop.f32.mrf.mxu3 }
  0xb0   : > { %v620_v2 = vpop.f32.mrf.mxu0 }
  0xb1   : > { %v621_v4 = vadd.f32 %v1765_v61, %v620_v2  ;;  %v754_v5 = vpop.f32.mrf.mxu1 }
  0xb3   : > { %v755_v6 = vadd.f32 %v754_v5, %v621_v4 }
  0xb5   : > { %v878_v14 = vmax.f32 %v755_v6, 0.0 }
  0xb6   : > { %v1785_v17 = vpop.f32.mrf.mxu2 }
  0xb7   : > { %v1427_v18 = vpack.c.bf16 %v878_v14, %v877_v13  ;;  %v819_v21 = vpop.f32.mrf.mxu3 }
  0xb8   : > { %v623_v22 = vpop.f32.mrf.mxu0 }
  0xb9   : > { %1428 = vst [vmem:[%s1783_s4] sm:$0xff] %v1427_v18   ;;  %v757_v25 = vpop.f32.mrf.mxu1  ;;  %v624_v26 = vadd.f32 %v1765_v61, %v623_v22 }
  0xbb   : > { %662 = vmatmul.bf16.gmra.mxu0 %v1166_v19  ;;  %722 = vmatmul.bf16.gmra.mxu2 %v1262_v20  ;;  %v758_v30 = vadd.f32 %v757_v25, %v624_v26  ;;  %v1182_v19 = vor.u32 %v1381_v8, %v1181_v7  ;;  %v1186_v26 = vor.u32 %v1380_v11, %v1183_v12 }
  0xbc   : > { %796 = vmatmul.bf16.gmra.mxu1 %v1170_v23  ;;  %861 = vmatmul.bf16.gmra.mxu3 %v1274_v24  ;;  %v1278_v23 = vor.u32 %v1405_v10, %v1277_v9 }
  0xbd   : > { %v879_v41 = vmax.f32 %v758_v30, 0.0 }
  0xbe   : > { %v683_v27 = vpop.f32.mrf.mxu2 }
  0xbf   : > { %v822_v28 = vpop.f32.mrf.mxu3  ;;  %v684_v33 = vadd.f32 %v1765_v61, %v683_v27  ;;  %v1290_v27 = vor.u32 %v1406_v15, %v1287_v16 }
  0xc0   : > { %v625_v29 = vpop.f32.mrf.mxu0 }
  0xc1   : > { %v626_v31 = vadd.f32 %v1765_v61, %v625_v29  ;;  %v759_v32 = vpop.f32.mrf.mxu1  ;;  %v818_v47 = vadd.f32 %v817_v1, %v684_v33 }
  0xc3   : > { %v760_v34 = vadd.f32 %v759_v32, %v626_v31  ;;  %v903_v57 = vmax.f32 %v818_v47, 0.0  ;;  %v1191_v47 = vld [vmem:[%s1679_s18 + $0xc8] sm:$0xf0] }
  0xc5   : > { %v880_v42 = vmax.f32 %v760_v34, 0.0 }
  0xc6   : > { %v685_v45 = vpop.f32.mrf.mxu2 }
  0xc7   : > { %v1432_v48 = vpack.c.bf16 %v880_v42, %v879_v41  ;;  %v686_v49 = vadd.f32 %v1765_v61, %v685_v45  ;;  %v824_v51 = vpop.f32.mrf.mxu3  ;;  %v1285_v42 = vld [vmem:[%s1679_s18 + $0x180] sm:$0xf] }
  0xc8   : > { %v628_v52 = vpop.f32.mrf.mxu0 }
  0xc9   : > { %1549 = vst [vmem:[%s1783_s4 + $0x8] sm:$0xff] %v1432_v48   ;;  %v820_v55 = vadd.f32 %v819_v21, %v686_v49  ;;  %v762_v56 = vpop.f32.mrf.mxu1  ;;  %v629_v60 = vadd.f32 %v1765_v61, %v628_v52  ;;  %v1286_v52 = vor.u32 %v1407_v43, %v1285_v42 }
  0xcb   : > { %v904_v58 = vmax.f32 %v820_v55, 0.0  ;;  %667 = vmatmul.bf16.gmra.mxu0 %v1174_v46  ;;  %727 = vmatmul.bf16.gmra.mxu2 %v1270_v50  ;;  %v763_v2 = vadd.f32 %v762_v56, %v629_v60  ;;  %v1382_v46 = vld [vmem:[%s1679_s18 + $0xc4] sm:$0xf] }
  0xcc   : > { %801 = vmatmul.bf16.gmra.mxu1 %v1178_v53  ;;  %866 = vmatmul.bf16.gmra.mxu3 %v1282_v54  ;;  %v1194_v55 = vor.u32 %v1382_v46, %v1191_v47 }
  0xcd   : > { %v1492_v59 = vpack.c.bf16 %v904_v58, %v903_v57  ;;  %v881_v13 = vmax.f32 %v763_v2, 0.0 }
  0xce   : > { %v688_v62 = vpop.f32.mrf.mxu2 }
  0xcf   : > { %1561 = vst [vmem:[%s1783_s4 + $0x68] sm:$0xff] %v1492_v59   ;;  %v827_v63 = vpop.f32.mrf.mxu3  ;;  %v689_v5 = vadd.f32 %v1765_v61, %v688_v62 }
  0xd0   : > { %v630_v1 = vpop.f32.mrf.mxu0 }
  0xd1   : > { %v631_v3 = vadd.f32 %v1765_v61, %v630_v1  ;;  %v764_v4 = vpop.f32.mrf.mxu1  ;;  %v823_v20 = vadd.f32 %v822_v28, %v689_v5 }
  0xd3   : > { %v765_v6 = vadd.f32 %v764_v4, %v631_v3  ;;  %v905_v31 = vmax.f32 %v823_v20, 0.0 }
  0xd5   : > { %v882_v14 = vmax.f32 %v765_v6, 0.0 }
  0xd6   : > { %v690_v18 = vpop.f32.mrf.mxu2 }
  0xd7   : > { %v1437_v21 = vpack.c.bf16 %v882_v14, %v881_v13  ;;  %v691_v22 = vadd.f32 %v1765_v61, %v690_v18  ;;  %v829_v24 = vpop.f32.mrf.mxu3 }
  0xd8   : > { %v633_v25 = vpop.f32.mrf.mxu0 }
  0xd9   : > { %1550 = vst [vmem:[%s1783_s4 + $0x10] sm:$0xff] %v1437_v21   ;;  %v825_v29 = vadd.f32 %v824_v51, %v691_v22  ;;  %v767_v30 = vpop.f32.mrf.mxu1  ;;  %v634_v33 = vadd.f32 %v1765_v61, %v633_v25 }
  0xdb   : > { %v906_v32 = vmax.f32 %v825_v29, 0.0  ;;  %672 = vmatmul.bf16.gmra.mxu0 %v1182_v19  ;;  %732 = vmatmul.bf16.gmra.mxu2 %v1278_v23  ;;  %v768_v37 = vadd.f32 %v767_v30, %v634_v33 }
  0xdc   : > { %806 = vmatmul.bf16.gmra.mxu1 %v1186_v26  ;;  %871 = vmatmul.bf16.gmra.mxu3 %v1290_v27 }
  0xdd   : > { %v1497_v28 = vpack.c.bf16 %v906_v32, %v905_v31  ;;  %v883_v44 = vmax.f32 %v768_v37, 0.0 }
  0xde   : > { %v693_v34 = vpop.f32.mrf.mxu2 }
  0xdf   : > { %1562 = vst [vmem:[%s1783_s4 + $0x70] sm:$0xff] %v1497_v28   ;;  %v832_v35 = vpop.f32.mrf.mxu3  ;;  %v694_v40 = vadd.f32 %v1765_v61, %v693_v34 }
  0xe0   : > { %v635_v36 = vpop.f32.mrf.mxu0 }
  0xe1   : > { %v636_v38 = vadd.f32 %v1765_v61, %v635_v36  ;;  %v769_v39 = vpop.f32.mrf.mxu1  ;;  %v828_v49 = vadd.f32 %v827_v63, %v694_v40 }
  0xe3   : > { %v770_v41 = vadd.f32 %v769_v39, %v636_v38  ;;  %v907_v58 = vmax.f32 %v828_v49, 0.0 }
  0xe5   : > { %v884_v45 = vmax.f32 %v770_v41, 0.0 }
  0xe6   : > { %v695_v48 = vpop.f32.mrf.mxu2 }
  0xe7   : > { %v1442_v50 = vpack.c.bf16 %v884_v45, %v883_v44  ;;  %v696_v51 = vadd.f32 %v1765_v61, %v695_v48  ;;  %v834_v53 = vpop.f32.mrf.mxu3 }
  0xe8   : > { %v638_v54 = vpop.f32.mrf.mxu0 }
  0xe9   : > { %1551 = vst [vmem:[%s1783_s4 + $0x18] sm:$0xff] %v1442_v50   ;;  %v830_v56 = vadd.f32 %v829_v24, %v696_v51  ;;  %v772_v57 = vpop.f32.mrf.mxu1  ;;  %v639_v62 = vadd.f32 %v1765_v61, %v638_v54 }
  0xeb   : > { %v908_v59 = vmax.f32 %v830_v56, 0.0  ;;  %737 = vmatmul.bf16.gmra.mxu2 %v1286_v52  ;;  %v773_v3 = vadd.f32 %v772_v57, %v639_v62 }
  0xec   : > { %811 = vmatmul.bf16.gmra.mxu1 %v1194_v55 }
  0xed   : > { %v1502_v60 = vpack.c.bf16 %v908_v59, %v907_v58  ;;  %v885_v8 = vmax.f32 %v773_v3, 0.0 }
  0xee   : > { %v698_v1 = vpop.f32.mrf.mxu2 }
  0xef   : > { %1563 = vst [vmem:[%s1783_s4 + $0x78] sm:$0xff] %v1502_v60   ;;  %v837_v63 = vpop.f32.mrf.mxu3  ;;  %v699_v6 = vadd.f32 %v1765_v61, %v698_v1 }
  0xf0   : > { %v640_v2 = vpop.f32.mrf.mxu0 }
  0xf1   : > { %v641_v4 = vadd.f32 %v1765_v61, %v640_v2  ;;  %v774_v5 = vpop.f32.mrf.mxu1  ;;  %v833_v11 = vadd.f32 %v832_v35, %v699_v6 }
  0xf3   : > { %v775_v7 = vadd.f32 %v774_v5, %v641_v4  ;;  %v909_v19 = vmax.f32 %v833_v11, 0.0 }
  0xf5   : > { %v886_v9 = vmax.f32 %v775_v7, 0.0 }
  0xf6   : > { %v700_v10 = vpop.f32.mrf.mxu2 }
  0xf7   : > { %v1447_v12 = vpack.c.bf16 %v886_v9, %v885_v8  ;;  %v701_v13 = vadd.f32 %v1765_v61, %v700_v10  ;;  %v839_v14 = vpop.f32.mrf.mxu3 }
  0xf8   : > { %v643_v15 = vpop.f32.mrf.mxu0 }
  0xf9   : > { %1552 = vst [vmem:[%s1783_s4 + $0x20] sm:$0xff] %v1447_v12   ;;  %v835_v16 = vadd.f32 %v834_v53, %v701_v13  ;;  %v777_v18 = vpop.f32.mrf.mxu1  ;;  %v644_v22 = vadd.f32 %v1765_v61, %v643_v15 }
  0xfb   : > { %v910_v20 = vmax.f32 %v835_v16, 0.0  ;;  %v778_v26 = vadd.f32 %v777_v18, %v644_v22 }
  0xfd   : > { %v1507_v21 = vpack.c.bf16 %v910_v20, %v909_v19  ;;  %v887_v32 = vmax.f32 %v778_v26, 0.0 }
  0xfe   : > { %v703_v23 = vpop.f32.mrf.mxu2 }
  0xff   : > { %1564 = vst [vmem:[%s1783_s4 + $0x80] sm:$0xff] %v1507_v21   ;;  %v842_v24 = vpop.f32.mrf.mxu3  ;;  %v704_v30 = vadd.f32 %v1765_v61, %v703_v23 }
 0x100   : > { %v645_v25 = vpop.f32.mrf.mxu0 }
 0x101   : > { %v646_v27 = vadd.f32 %v1765_v61, %v645_v25  ;;  %v779_v29 = vpop.f32.mrf.mxu1  ;;  %v838_v34 = vadd.f32 %v837_v63, %v704_v30 }
 0x103   : > { %v780_v31 = vadd.f32 %v779_v29, %v646_v27  ;;  %v911_v41 = vmax.f32 %v838_v34, 0.0 }
 0x105   : > { %v888_v28 = vmax.f32 %v780_v31, 0.0 }
 0x106   : > { %v705_v33 = vpop.f32.mrf.mxu2 }
 0x107   : > { %v1452_v35 = vpack.c.bf16 %v888_v28, %v887_v32  ;;  %v706_v36 = vadd.f32 %v1765_v61, %v705_v33  ;;  %v844_v37 = vpop.f32.mrf.mxu3 }
 0x108   : > { %v648_v38 = vpop.f32.mrf.mxu0 }
 0x109   : > { %1553 = vst [vmem:[%s1783_s4 + $0x28] sm:$0xff] %v1452_v35   ;;  %v840_v39 = vadd.f32 %v839_v14, %v706_v36  ;;  %v782_v40 = vpop.f32.mrf.mxu1  ;;  %v649_v44 = vadd.f32 %v1765_v61, %v648_v38 }
 0x10b   : > { %v912_v42 = vmax.f32 %v840_v39, 0.0  ;;  %v783_v48 = vadd.f32 %v782_v40, %v649_v44 }
 0x10d   : > { %v1512_v43 = vpack.c.bf16 %v912_v42, %v911_v41  ;;  %v889_v53 = vmax.f32 %v783_v48, 0.0 }
 0x10e   : > { %v708_v45 = vpop.f32.mrf.mxu2 }
 0x10f   : > { %1565 = vst [vmem:[%s1783_s4 + $0x88] sm:$0xff] %v1512_v43   ;;  %v847_v46 = vpop.f32.mrf.mxu3  ;;  %v709_v51 = vadd.f32 %v1765_v61, %v708_v45 }
 0x110   : > { %v650_v47 = vpop.f32.mrf.mxu0 }
 0x111   : > { %v651_v49 = vadd.f32 %v1765_v61, %v650_v47  ;;  %v784_v50 = vpop.f32.mrf.mxu1  ;;  %v843_v56 = vadd.f32 %v842_v24, %v709_v51 }
 0x113   : > { %v785_v52 = vadd.f32 %v784_v50, %v651_v49  ;;  %v913_v63 = vmax.f32 %v843_v56, 0.0 }
 0x115   : > { %v890_v54 = vmax.f32 %v785_v52, 0.0 }
 0x116   : > { %v710_v55 = vpop.f32.mrf.mxu2 }
 0x117   : > { %v1457_v57 = vpack.c.bf16 %v890_v54, %v889_v53  ;;  %v711_v58 = vadd.f32 %v1765_v61, %v710_v55  ;;  %v849_v59 = vpop.f32.mrf.mxu3 }
 0x118   : > { %v653_v60 = vpop.f32.mrf.mxu0 }
 0x119   : > { %1554 = vst [vmem:[%s1783_s4 + $0x30] sm:$0xff] %v1457_v57   ;;  %v845_v62 = vadd.f32 %v844_v37, %v711_v58  ;;  %v787_v1 = vpop.f32.mrf.mxu1  ;;  %v654_v4 = vadd.f32 %v1765_v61, %v653_v60 }
 0x11b   : > { %v914_v2 = vmax.f32 %v845_v62, 0.0  ;;  %v788_v8 = vadd.f32 %v787_v1, %v654_v4 }
 0x11d   : > { %v1517_v3 = vpack.c.bf16 %v914_v2, %v913_v63  ;;  %v891_v13 = vmax.f32 %v788_v8, 0.0 }
 0x11e   : > { %v713_v5 = vpop.f32.mrf.mxu2 }
 0x11f   : > { %1566 = vst [vmem:[%s1783_s4 + $0x90] sm:$0xff] %v1517_v3   ;;  %v852_v6 = vpop.f32.mrf.mxu3  ;;  %v714_v11 = vadd.f32 %v1765_v61, %v713_v5 }
 0x120   : > { %v655_v7 = vpop.f32.mrf.mxu0 }
 0x121   : > { %v656_v9 = vadd.f32 %v1765_v61, %v655_v7  ;;  %v789_v10 = vpop.f32.mrf.mxu1  ;;  %v848_v16 = vadd.f32 %v847_v46, %v714_v11 }
 0x123   : > { %v790_v12 = vadd.f32 %v789_v10, %v656_v9  ;;  %v915_v24 = vmax.f32 %v848_v16, 0.0 }
 0x125   : > { %v892_v14 = vmax.f32 %v790_v12, 0.0 }
 0x126   : > { %v715_v15 = vpop.f32.mrf.mxu2 }
 0x127   : > { %v1462_v18 = vpack.c.bf16 %v892_v14, %v891_v13  ;;  %v716_v19 = vadd.f32 %v1765_v61, %v715_v15  ;;  %v854_v21 = vpop.f32.mrf.mxu3 }
 0x128   : > { %v658_v20 = vpop.f32.mrf.mxu0 }
 0x129   : > { %1555 = vst [vmem:[%s1783_s4 + $0x38] sm:$0xff] %v1462_v18   ;;  %v850_v22 = vadd.f32 %v849_v59, %v716_v19  ;;  %v792_v23 = vpop.f32.mrf.mxu1  ;;  %v659_v27 = vadd.f32 %v1765_v61, %v658_v20 }
 0x12b   : > { %v916_v25 = vmax.f32 %v850_v22, 0.0  ;;  %v793_v31 = vadd.f32 %v792_v23, %v659_v27 }
 0x12d   : > { %v1522_v26 = vpack.c.bf16 %v916_v25, %v915_v24  ;;  %v893_v36 = vmax.f32 %v793_v31, 0.0 }
 0x12e   : > { %v718_v29 = vpop.f32.mrf.mxu2 }
 0x12f   : > { %1567 = vst [vmem:[%s1783_s4 + $0x98] sm:$0xff] %v1522_v26   ;;  %v857_v33 = vpop.f32.mrf.mxu3  ;;  %v719_v34 = vadd.f32 %v1765_v61, %v718_v29 }
 0x130   : > { %v660_v30 = vpop.f32.mrf.mxu0 }
 0x131   : > { %v661_v32 = vadd.f32 %v1765_v61, %v660_v30  ;;  %v794_v28 = vpop.f32.mrf.mxu1  ;;  %v853_v39 = vadd.f32 %v852_v6, %v719_v34 }
 0x133   : > { %v795_v35 = vadd.f32 %v794_v28, %v661_v32  ;;  %v917_v45 = vmax.f32 %v853_v39, 0.0 }
 0x135   : > { %v894_v37 = vmax.f32 %v795_v35, 0.0 }
 0x136   : > { %v720_v38 = vpop.f32.mrf.mxu2 }
 0x137   : > { %v1467_v40 = vpack.c.bf16 %v894_v37, %v893_v36  ;;  %v721_v41 = vadd.f32 %v1765_v61, %v720_v38  ;;  %v859_v47 = vpop.f32.mrf.mxu3 }
 0x138   : > { %v663_v42 = vpop.f32.mrf.mxu0 }
 0x139   : > { %1556 = vst [vmem:[%s1783_s4 + $0x40] sm:$0xff] %v1467_v40   ;;  %v855_v43 = vadd.f32 %v854_v21, %v721_v41  ;;  %v797_v44 = vpop.f32.mrf.mxu1  ;;  %v664_v49 = vadd.f32 %v1765_v61, %v663_v42 }
 0x13b   : > { %v918_v46 = vmax.f32 %v855_v43, 0.0  ;;  %v798_v52 = vadd.f32 %v797_v44, %v664_v49 }
 0x13d   : > { %v1527_v48 = vpack.c.bf16 %v918_v46, %v917_v45  ;;  %v895_v57 = vmax.f32 %v798_v52, 0.0 }
 0x13e   : > { %v723_v50 = vpop.f32.mrf.mxu2 }
 0x13f   : > { %1568 = vst [vmem:[%s1783_s4 + $0xa0] sm:$0xff] %v1527_v48   ;;  %v724_v55 = vadd.f32 %v1765_v61, %v723_v50  ;;  %v862_v60 = vpop.f32.mrf.mxu3 }
 0x140   : > { %v665_v51 = vpop.f32.mrf.mxu0 }
 0x141   : > { %v666_v53 = vadd.f32 %v1765_v61, %v665_v51  ;;  %v799_v54 = vpop.f32.mrf.mxu1  ;;  %v858_v62 = vadd.f32 %v857_v33, %v724_v55  ;;  %v679_v51 = vadd.f32 %v1765_v61, %v1768_v0 }
 0x143   : > { %v800_v56 = vadd.f32 %v799_v54, %v666_v53  ;;  %v919_v5 = vmax.f32 %v858_v62, 0.0  ;;  %v681_v54 = vadd.f32 %v1765_v61, %v1785_v17 }
 0x145   : > { %v896_v58 = vmax.f32 %v800_v56, 0.0 }
 0x146   : > { %v725_v59 = vpop.f32.mrf.mxu2 }
 0x147   : > { %v1472_v1 = vpack.c.bf16 %v896_v58, %v895_v57  ;;  %v726_v63 = vadd.f32 %v1765_v61, %v725_v59  ;;  %v864_v11 = vpop.f32.mrf.mxu3 }
 0x148   : > { %v668_v2 = vpop.f32.mrf.mxu0 }
 0x149   : > { %1557 = vst [vmem:[%s1783_s4 + $0x48] sm:$0xff] %v1472_v1   ;;  %v860_v3 = vadd.f32 %v859_v47, %v726_v63  ;;  %v802_v4 = vpop.f32.mrf.mxu1  ;;  %v669_v8 = vadd.f32 %v1765_v61, %v668_v2 }
 0x14b   : > { %v920_v6 = vmax.f32 %v860_v3, 0.0  ;;  %v803_v12 = vadd.f32 %v802_v4, %v669_v8 }
 0x14d   : > { %v1532_v7 = vpack.c.bf16 %v920_v6, %v919_v5  ;;  %v897_v18 = vmax.f32 %v803_v12, 0.0 }
 0x14e   : > { %v728_v9 = vpop.f32.mrf.mxu2 }
 0x14f   : > { %1569 = vst [vmem:[%s1783_s4 + $0xa8] sm:$0xff] %v1532_v7   ;;  %v729_v15 = vadd.f32 %v1765_v61, %v728_v9  ;;  %v867_v27 = vpop.f32.mrf.mxu3 }
 0x150   : > { %v670_v10 = vpop.f32.mrf.mxu0 }
 0x151   : > { %v671_v13 = vadd.f32 %v1765_v61, %v670_v10  ;;  %v804_v14 = vpop.f32.mrf.mxu1  ;;  %v863_v21 = vadd.f32 %v862_v60, %v729_v15 }
 0x153   : > { %v805_v16 = vadd.f32 %v804_v14, %v671_v13  ;;  %v921_v29 = vmax.f32 %v863_v21, 0.0 }
 0x155   : > { %v898_v19 = vmax.f32 %v805_v16, 0.0 }
 0x156   : > { %v730_v20 = vpop.f32.mrf.mxu2 }
 0x157   : > { %v1477_v22 = vpack.c.bf16 %v898_v19, %v897_v18  ;;  %v731_v23 = vadd.f32 %v1765_v61, %v730_v20  ;;  %v869_v39 = vpop.f32.mrf.mxu3 }
 0x158   : > { %v673_v24 = vpop.f32.mrf.mxu0 }
 0x159   : > { %1558 = vst [vmem:[%s1783_s4 + $0x50] sm:$0xff] %v1477_v22   ;;  %v865_v25 = vadd.f32 %v864_v11, %v731_v23  ;;  %v807_v26 = vpop.f32.mrf.mxu1  ;;  %v674_v32 = vadd.f32 %v1765_v61, %v673_v24 }
 0x15b   : > { %v922_v30 = vmax.f32 %v865_v25, 0.0  ;;  %v808_v34 = vadd.f32 %v807_v26, %v674_v32 }
 0x15d   : > { %v1537_v31 = vpack.c.bf16 %v922_v30, %v921_v29  ;;  %v899_v40 = vmax.f32 %v808_v34, 0.0 }
 0x15e   : > { %v733_v28 = vpop.f32.mrf.mxu2 }
 0x15f   : > { %1570 = vst [vmem:[%s1783_s4 + $0xb0] sm:$0xff] %v1537_v31   ;;  %v734_v37 = vadd.f32 %v1765_v61, %v733_v28  ;;  %v872_v52 = vpop.f32.mrf.mxu3 }
 0x160   : > { %v675_v33 = vpop.f32.mrf.mxu0 }
 0x161   : > { %v676_v35 = vadd.f32 %v1765_v61, %v675_v33  ;;  %v809_v36 = vpop.f32.mrf.mxu1  ;;  %v868_v43 = vadd.f32 %v867_v27, %v734_v37 }
 0x163   : > { %v810_v38 = vadd.f32 %v809_v36, %v676_v35  ;;  %v923_v48 = vmax.f32 %v868_v43, 0.0 }
 0x165   : > { %v900_v41 = vmax.f32 %v810_v38, 0.0 }
 0x166   : > { %v735_v42 = vpop.f32.mrf.mxu2 }
 0x167   : > { %v1482_v44 = vpack.c.bf16 %v900_v41, %v899_v40  ;;  %v736_v45 = vadd.f32 %v1765_v61, %v735_v42  ;;  %v874_v0 = vpop.f32.mrf.mxu3 }
 0x169   : > { %1559 = vst [vmem:[%s1783_s4 + $0x58] sm:$0xff] %v1482_v44   ;;  %v870_v46 = vadd.f32 %v869_v39, %v736_v45  ;;  %v812_v47 = vpop.f32.mrf.mxu1 }
 0x16a   : > { %v813_v55 = vadd.f32 %v812_v47, %v679_v51 }
 0x16b   : > { %v924_v49 = vmax.f32 %v870_v46, 0.0 }
 0x16c   : > { %v901_v59 = vmax.f32 %v813_v55, 0.0 }
 0x16d   : > { %v1542_v50 = vpack.c.bf16 %v924_v49, %v923_v48 }
 0x16e   : > { %v738_v53 = vpop.f32.mrf.mxu2 }
 0x16f   : > { %1571 = vst [vmem:[%s1783_s4 + $0xb8] sm:$0xff] %v1542_v50   ;;  %v739_v58 = vadd.f32 %v1765_v61, %v738_v53 }
 0x171   : > { %v814_v56 = vpop.f32.mrf.mxu1  ;;  %v873_v63 = vadd.f32 %v872_v52, %v739_v58 }
 0x172   : > { %v815_v57 = vadd.f32 %v814_v56, %v681_v54 }
 0x173   : > { %v925_v4 = vmax.f32 %v873_v63, 0.0 }
 0x174   : > { %v902_v60 = vmax.f32 %v815_v57, 0.0 }
 0x176   : > { %v1487_v62 = vpack.c.bf16 %v902_v60, %v901_v59  ;;  %v740_v1 = vpop.f32.mrf.mxu2 }
 0x177   : > { %v741_v2 = vadd.f32 %v1765_v61, %v740_v1 }
 0x178   : > { %1560 = vst [vmem:[%s1783_s4 + $0x60] sm:$0xff] %v1487_v62  }
 0x179   : > { %v875_v3 = vadd.f32 %v874_v0, %v741_v2 }
 0x17b   : > { %v926_v5 = vmax.f32 %v875_v3, 0.0 }
 0x17d   : > { %v1547_v6 = vpack.c.bf16 %v926_v5, %v925_v4 }
 0x17f   : > { %1572 = vst [vmem:[%s1783_s4 + $0xc0] sm:$0xff] %v1547_v6  }
 0x180 PF: > { %s13_s12 = sadd.s32 1, %s1604_s12  }
 0x181   : > { %p10_p4 = scmp.ge.s32.totalorder %s13_s12, 4  }
 0x183   :  { %12 = sbr.rel (!%p10_p4) target bundleno = 1 (0x1), region = 62 }

// kernel: forward.5
= control target key start
LH: loop header
LB: loop body
LE: loop exit
PB: predicated region body
PF: predicated region fallthrough
CT: control target
= control target key end

     0   :  { %s1192_s12 = smov 0   ;;  %s1384_s0 = inlined_call_operand.vmem [shape: bf16[192,512], index: 0, kind: input, shape index: {}]   ;;  %s1385_s1 = inlined_call_operand.vmem [shape: bf16[512,128], index: 1, kind: input, shape index: {}]   ;;  %s1386_s2 = inlined_call_operand.vmem [shape: f32[1,128], index: 2, kind: input, shape index: {}]   ;;  %s1387_s3 = inlined_call_operand.vmem [shape: bf16[192,128], index: 3, kind: output, shape index: {}]  }
   0x1 LB: > { %s829_s13 = sadd.s32 4294967295, %s1170_s12   ;;  %p833_p0 = scmp.ge.s32.totalorder %s1170_s12, 1  ;;  %s1170_s12 = sphi %s1192_s12, %s13_s12  }
   0x2   : > { %p139_p1 = scmp.lt.s32.totalorder %s1170_s12, 3 }
   0x4   : > { %p140_p2 = pnand %p833_p0, %p139_p1 }
   0x5   : > { %s164_s11 = smul.u32 (!%p140_p2), 12, %s829_s13 }
   0x6   : > { %143 = sbr.rel (%p140_p2) target bundleno = 274 (0x112), region = 32 }
   0x7   : > { %p165_p3 = scmp.lt.s32.totalorder (!%p140_p2), %s164_s11, 23 }
   0xb   : > { %v1095_v0 = vld [vmem:[%s1385_s1 + $0x38] sm:$0xff]  ;;  %v1094_v4 = vld [vmem:[%s1385_s1 + $0x30] sm:$0xff]  ;;  %v1093_v8 = vld [vmem:[%s1385_s1 + $0x28] sm:$0xff]  ;;  %s1389_s11 = smov (!%p165_p3, %s164_s11), 23 }
   0xc   : > { %v1103_v1 = vld [vmem:[%s1385_s1 + $0x78] sm:$0xff]  ;;  %581 = vmatpush.bf16.msra.mxu0 %v1095_v0  ;;  %v1102_v5 = vld [vmem:[%s1385_s1 + $0x70] sm:$0xff]  ;;  %v1101_v9 = vld [vmem:[%s1385_s1 + $0x68] sm:$0xff]  ;;  %s1063_s10 = sshll.u32 %s1389_s11, 4  ;;  %s836_s7 = sshll.u32 %s1389_s11, 2 }
   0xd   : > { %v1111_v2 = vld [vmem:[%s1385_s1 + $0xb8] sm:$0xff]  ;;  %620 = vmatpush.bf16.msra.mxu1 %v1103_v1  ;;  %v1110_v6 = vld [vmem:[%s1385_s1 + $0xb0] sm:$0xff]  ;;  %v1109_v10 = vld [vmem:[%s1385_s1 + $0xa8] sm:$0xff]  ;;  %s1284_s20 = scalar_lea.vmem %s1384_s0, %s1063_s10  ;;  %s1364_s10 = scalar_lea.vmem %s1387_s3, %s836_s7 }
   0xe   : > { %v1119_v3 = vld [vmem:[%s1385_s1 + $0xf8] sm:$0xff]  ;;  %659 = vmatpush.bf16.msra.mxu2 %v1111_v2  ;;  %v1118_v7 = vld [vmem:[%s1385_s1 + $0xf0] sm:$0xff]  ;;  %v1117_v11 = vld [vmem:[%s1385_s1 + $0xe8] sm:$0xff] }
   0xf   : > { %698 = vmatpush.bf16.msra.mxu3 %v1119_v3  ;;  %v1092_v12 = vld [vmem:[%s1385_s1 + $0x20] sm:$0xff]  ;;  %v1091_v16 = vld [vmem:[%s1385_s1 + $0x18] sm:$0xff]  ;;  %v1090_v20 = vld [vmem:[%s1385_s1 + $0x10] sm:$0xff] }
  0x10   : > { %582 = vmatpush.bf16.msra.mxu0 %v1094_v4  ;;  %v1100_v13 = vld [vmem:[%s1385_s1 + $0x60] sm:$0xff]  ;;  %v1099_v17 = vld [vmem:[%s1385_s1 + $0x58] sm:$0xff]  ;;  %v1098_v21 = vld [vmem:[%s1385_s1 + $0x50] sm:$0xff] }
  0x11   : > { %621 = vmatpush.bf16.msra.mxu1 %v1102_v5  ;;  %v1108_v14 = vld [vmem:[%s1385_s1 + $0xa0] sm:$0xff]  ;;  %v1107_v18 = vld [vmem:[%s1385_s1 + $0x98] sm:$0xff]  ;;  %v1106_v22 = vld [vmem:[%s1385_s1 + $0x90] sm:$0xff] }
  0x12   : > { %660 = vmatpush.bf16.msra.mxu2 %v1110_v6  ;;  %v1116_v15 = vld [vmem:[%s1385_s1 + $0xe0] sm:$0xff]  ;;  %v1115_v19 = vld [vmem:[%s1385_s1 + $0xd8] sm:$0xff]  ;;  %v1114_v23 = vld [vmem:[%s1385_s1 + $0xd0] sm:$0xff] }
  0x13   : > { %699 = vmatpush.bf16.msra.mxu3 %v1118_v7  ;;  %v1089_v24 = vld [vmem:[%s1385_s1 + $0x8] sm:$0xff]  ;;  %v1088_v28 = vld [vmem:[%s1385_s1] sm:$0xff]  ;;  %v1066_v33 = vld [vmem:[%s1284_s20 + $0xc] sm:$0xf0] }
  0x14   : > { %583 = vmatpush.bf16.msra.mxu0 %v1093_v8  ;;  %v1097_v25 = vld [vmem:[%s1385_s1 + $0x48] sm:$0xff]  ;;  %v1096_v29 = vld [vmem:[%s1385_s1 + $0x40] sm:$0xff]  ;;  %v841_v35 = vld [vmem:[%s1284_s20 + $0x10] sm:$0xf0] }
  0x15   : > { %622 = vmatpush.bf16.msra.mxu1 %v1101_v9  ;;  %v1105_v26 = vld [vmem:[%s1385_s1 + $0x88] sm:$0xff]  ;;  %v1104_v30 = vld [vmem:[%s1385_s1 + $0x80] sm:$0xff]  ;;  %v1067_v37 = vld [vmem:[%s1284_s20 + $0x14] sm:$0xf0] }
  0x16   : > { %661 = vmatpush.bf16.msra.mxu2 %v1109_v10  ;;  %v1113_v27 = vld [vmem:[%s1385_s1 + $0xc8] sm:$0xff]  ;;  %v1112_v31 = vld [vmem:[%s1385_s1 + $0xc0] sm:$0xff]  ;;  %v849_v39 = vld [vmem:[%s1284_s20 + $0x18] sm:$0xf0] }
  0x17   : > { %700 = vmatpush.bf16.msra.mxu3 %v1117_v11  ;;  %v839_v32 = vld [vmem:[%s1284_s20] sm:$0xf]  ;;  %v1064_v34 = vld [vmem:[%s1284_s20 + $0x4] sm:$0xf]  ;;  %v847_v36 = vld [vmem:[%s1284_s20 + $0x8] sm:$0xf] }
  0x18   : > { %584 = vmatpush.bf16.msra.mxu0 %v1092_v12  ;;  %v1065_v38 = vld [vmem:[%s1284_s20 + $0xc] sm:$0xf]  ;;  %v840_v40 = vor.u32 %v1066_v33, %v839_v32  ;;  %v844_v41 = vor.u32 %v1064_v34, %v841_v35  ;;  %v848_v42 = vor.u32 %v1067_v37, %v847_v36  ;;  %v855_v44 = vld [vmem:[%s1284_s20 + $0x20] sm:$0xf]  ;;  %v1070_v45 = vld [vmem:[%s1284_s20 + $0x2c] sm:$0xf0] }
  0x19   : > { %623 = vmatpush.bf16.msra.mxu1 %v1100_v13  ;;  %v852_v43 = vor.u32 %v1065_v38, %v849_v39  ;;  %v1068_v46 = vld [vmem:[%s1284_s20 + $0x24] sm:$0xf]  ;;  %v857_v47 = vld [vmem:[%s1284_s20 + $0x30] sm:$0xf0]  ;;  %v863_v48 = vld [vmem:[%s1284_s20 + $0x28] sm:$0xf]  ;;  %v856_v52 = vor.u32 %v1070_v45, %v855_v44 }
  0x1a   : > { %662 = vmatpush.bf16.msra.mxu2 %v1108_v14  ;;  %v1071_v49 = vld [vmem:[%s1284_s20 + $0x34] sm:$0xf0]  ;;  %v1069_v50 = vld [vmem:[%s1284_s20 + $0x2c] sm:$0xf]  ;;  %v865_v51 = vld [vmem:[%s1284_s20 + $0x38] sm:$0xf0]  ;;  %v860_v53 = vor.u32 %v1068_v46, %v857_v47 }
  0x1b   : > { %701 = vmatpush.bf16.msra.mxu3 %v1116_v15  ;;  %v864_v54 = vor.u32 %v1071_v49, %v863_v48  ;;  %v868_v55 = vor.u32 %v1069_v50, %v865_v51  ;;  %v871_v56 = vld [vmem:[%s1284_s20 + $0x40] sm:$0xf]  ;;  %v1074_v57 = vld [vmem:[%s1284_s20 + $0x4c] sm:$0xf0]  ;;  %v1072_v58 = vld [vmem:[%s1284_s20 + $0x44] sm:$0xf] }
  0x1c   : > { %585 = vmatpush.bf16.msra.mxu0 %v1091_v16  ;;  %v873_v59 = vld [vmem:[%s1284_s20 + $0x50] sm:$0xf0]  ;;  %v879_v60 = vld [vmem:[%s1284_s20 + $0x48] sm:$0xf]  ;;  %v1075_v61 = vld [vmem:[%s1284_s20 + $0x54] sm:$0xf0]  ;;  %v872_v0 = vor.u32 %v1074_v57, %v871_v56 }
  0x1d   : > { %624 = vmatpush.bf16.msra.mxu1 %v1099_v17  ;;  %v1073_v62 = vld [vmem:[%s1284_s20 + $0x4c] sm:$0xf]  ;;  %v881_v63 = vld [vmem:[%s1284_s20 + $0x58] sm:$0xf0]  ;;  %v876_v1 = vor.u32 %v1072_v58, %v873_v59  ;;  %v880_v2 = vor.u32 %v1075_v61, %v879_v60  ;;  %v887_v4 = vld [vmem:[%s1284_s20 + $0x60] sm:$0xf] }
  0x1e   : > { %663 = vmatpush.bf16.msra.mxu2 %v1107_v18  ;;  %v884_v3 = vor.u32 %v1073_v62, %v881_v63  ;;  %v1078_v5 = vld [vmem:[%s1284_s20 + $0x6c] sm:$0xf0]  ;;  %v1076_v6 = vld [vmem:[%s1284_s20 + $0x64] sm:$0xf]  ;;  %v889_v7 = vld [vmem:[%s1284_s20 + $0x70] sm:$0xf0] }
  0x1f   : > { %702 = vmatpush.bf16.msra.mxu3 %v1115_v19  ;;  %v895_v8 = vld [vmem:[%s1284_s20 + $0x68] sm:$0xf]  ;;  %v1079_v9 = vld [vmem:[%s1284_s20 + $0x74] sm:$0xf0]  ;;  %v1077_v10 = vld [vmem:[%s1284_s20 + $0x6c] sm:$0xf]  ;;  %v888_v12 = vor.u32 %v1078_v5, %v887_v4  ;;  %v892_v13 = vor.u32 %v1076_v6, %v889_v7 }
  0x20   : > { %586 = vmatpush.bf16.msra.mxu0 %v1090_v20  ;;  %v897_v11 = vld [vmem:[%s1284_s20 + $0x78] sm:$0xf0]  ;;  %v896_v14 = vor.u32 %v1079_v9, %v895_v8  ;;  %v903_v16 = vld [vmem:[%s1284_s20 + $0x80] sm:$0xf]  ;;  %v1082_v17 = vld [vmem:[%s1284_s20 + $0x8c] sm:$0xf0] }
  0x21   : > { %625 = vmatpush.bf16.msra.mxu1 %v1098_v21  ;;  %v900_v15 = vor.u32 %v1077_v10, %v897_v11  ;;  %v1080_v18 = vld [vmem:[%s1284_s20 + $0x84] sm:$0xf]  ;;  %v905_v19 = vld [vmem:[%s1284_s20 + $0x90] sm:$0xf0]  ;;  %v911_v20 = vld [vmem:[%s1284_s20 + $0x88] sm:$0xf] }
  0x22   : > { %664 = vmatpush.bf16.msra.mxu2 %v1106_v22  ;;  %v1083_v21 = vld [vmem:[%s1284_s20 + $0x94] sm:$0xf0]  ;;  %v1081_v22 = vld [vmem:[%s1284_s20 + $0x8c] sm:$0xf]  ;;  %v927_v32 = vld [vmem:[%s1284_s20 + $0xa8] sm:$0xf] }
  0x23   : > { %703 = vmatpush.bf16.msra.mxu3 %v1114_v23  ;;  %v913_v23 = vld [vmem:[%s1284_s20 + $0x98] sm:$0xf0]  ;;  %v1087_v33 = vld [vmem:[%s1284_s20 + $0xb4] sm:$0xf0]  ;;  %v1085_v34 = vld [vmem:[%s1284_s20 + $0xac] sm:$0xf] }
  0x24   : > { %587 = vmatpush.bf16.msra.mxu0 %v1089_v24  ;;  %v904_v24 = vor.u32 %v1082_v17, %v903_v16  ;;  %v929_v35 = vld [vmem:[%s1284_s20 + $0xb8] sm:$0xf0]  ;;  %v928_v38 = vor.u32 %v1087_v33, %v927_v32 }
  0x25   : > { %626 = vmatpush.bf16.msra.mxu1 %v1097_v25  ;;  %v908_v25 = vor.u32 %v1080_v18, %v905_v19  ;;  %v932_v39 = vor.u32 %v1085_v34, %v929_v35 }
  0x26   : > { %665 = vmatpush.bf16.msra.mxu2 %v1105_v26  ;;  %v912_v26 = vor.u32 %v1083_v21, %v911_v20 }
  0x27   : > { %704 = vmatpush.bf16.msra.mxu3 %v1113_v27  ;;  %v916_v27 = vor.u32 %v1081_v22, %v913_v23 }
  0x28   : > { %588 = vmatpush.bf16.msra.mxu0 %v1088_v28  ;;  %v919_v28 = vld [vmem:[%s1284_s20 + $0xa0] sm:$0xf] }
  0x29   : > { %627 = vmatpush.bf16.msra.mxu1 %v1096_v29  ;;  %v1086_v29 = vld [vmem:[%s1284_s20 + $0xac] sm:$0xf0] }
  0x2a   : > { %666 = vmatpush.bf16.msra.mxu2 %v1104_v30  ;;  %v1084_v30 = vld [vmem:[%s1284_s20 + $0xa4] sm:$0xf]  ;;  %v920_v36 = vor.u32 %v1086_v29, %v919_v28 }
  0x2b   : > { %705 = vmatpush.bf16.msra.mxu3 %v1112_v31  ;;  %589 = vmatmul.bf16.vlgmr.msra.gmra.mxu0 %v840_v40  ;;  %v921_v31 = vld [vmem:[%s1284_s20 + $0xb0] sm:$0xf0]  ;;  %v1355_v40 = vld [vmem:[%s1386_s2] ss:$0 sm:$0xff] }
  0x2c   : > { %628 = vmatmul.bf16.vlgmr.msra.gmra.mxu1 %v844_v41  ;;  %v924_v37 = vor.u32 %v1084_v30, %v921_v31 }
  0x2d   : > { %667 = vmatmul.bf16.vlgmr.msra.gmra.mxu2 %v848_v42 }
  0x2e   : > { %706 = vmatmul.bf16.vlgmr.msra.gmra.mxu3 %v852_v43 }
  0x3b   : > { %594 = vmatmul.bf16.gmra.mxu0 %v856_v52 }
  0x3c   : > { %633 = vmatmul.bf16.gmra.mxu1 %v860_v53 }
  0x3d   : > { %672 = vmatmul.bf16.gmra.mxu2 %v864_v54 }
  0x3e   : > { %711 = vmatmul.bf16.gmra.mxu3 %v868_v55 }
  0x4b   : > { %599 = vmatmul.bf16.gmra.mxu0 %v872_v0 }
  0x4c   : > { %638 = vmatmul.bf16.gmra.mxu1 %v876_v1 }
  0x4d   : > { %677 = vmatmul.bf16.gmra.mxu2 %v880_v2 }
  0x4e   : > { %716 = vmatmul.bf16.gmra.mxu3 %v884_v3 }
  0x5b   : > { %604 = vmatmul.bf16.gmra.mxu0 %v888_v12 }
  0x5c   : > { %643 = vmatmul.bf16.gmra.mxu1 %v892_v13 }
  0x5d   : > { %682 = vmatmul.bf16.gmra.mxu2 %v896_v14 }
  0x5e   : > { %721 = vmatmul.bf16.gmra.mxu3 %v900_v15 }
  0x6b   : > { %609 = vmatmul.bf16.gmra.mxu0 %v904_v24 }
  0x6c   : > { %648 = vmatmul.bf16.gmra.mxu1 %v908_v25 }
  0x6d   : > { %687 = vmatmul.bf16.gmra.mxu2 %v912_v26 }
  0x6e   : > { %726 = vmatmul.bf16.gmra.mxu3 %v916_v27 }
  0x7b   : > { %614 = vmatmul.bf16.gmra.mxu0 %v920_v36 }
  0x7c   : > { %653 = vmatmul.bf16.gmra.mxu1 %v924_v37 }
  0x7d   : > { %692 = vmatmul.bf16.gmra.mxu2 %v928_v38 }
  0x7e   : > { %731 = vmatmul.bf16.gmra.mxu3 %v932_v39 }
  0xa8   : > { %v590_v41 = vpop.f32.mrf.mxu0 }
  0xa9   : > { %v629_v42 = vpop.f32.mrf.mxu1  ;;  %v591_v43 = vadd.f32 %v1355_v40, %v590_v41 }
  0xab   : > { %v630_v46 = vadd.f32 %v629_v42, %v591_v43 }
  0xb0   : > { %v668_v44 = vpop.f32.mrf.mxu2  ;;  %v592_v47 = vpop.f32.mrf.mxu0 }
  0xb1   : > { %v707_v45 = vpop.f32.mrf.mxu3  ;;  %v631_v48 = vpop.f32.mrf.mxu1  ;;  %v593_v49 = vadd.f32 %v1355_v40, %v592_v47  ;;  %v669_v50 = vadd.f32 %v668_v44, %v630_v46 }
  0xb3   : > { %v632_v51 = vadd.f32 %v631_v48, %v593_v49  ;;  %v708_v54 = vadd.f32 %v707_v45, %v669_v50 }
  0xb5   : > { %v737_v59 = vmax.f32 %v708_v54, 0.0 }
  0xb8   : > { %v670_v52 = vpop.f32.mrf.mxu2  ;;  %v595_v56 = vpop.f32.mrf.mxu0 }
  0xb9   : > { %v709_v53 = vpop.f32.mrf.mxu3  ;;  %v671_v55 = vadd.f32 %v670_v52, %v632_v51  ;;  %v634_v57 = vpop.f32.mrf.mxu1  ;;  %v596_v61 = vadd.f32 %v1355_v40, %v595_v56 }
  0xbb   : > { %v710_v58 = vadd.f32 %v709_v53, %v671_v55  ;;  %v635_v1 = vadd.f32 %v634_v57, %v596_v61 }
  0xbd   : > { %v738_v60 = vmax.f32 %v710_v58, 0.0 }
  0xbf   : > { %v1123_v62 = vpack.c.bf16 %v738_v60, %v737_v59 }
  0xc0   : > { %v673_v63 = vpop.f32.mrf.mxu2  ;;  %v597_v2 = vpop.f32.mrf.mxu0 }
  0xc1   : > { %v712_v0 = vpop.f32.mrf.mxu3  ;;  %1124 = vst [vmem:[%s1364_s10] sm:$0xff] %v1123_v62   ;;  %v636_v3 = vpop.f32.mrf.mxu1  ;;  %v598_v4 = vadd.f32 %v1355_v40, %v597_v2  ;;  %v674_v5 = vadd.f32 %v673_v63, %v635_v1 }
  0xc3   : > { %v637_v6 = vadd.f32 %v636_v3, %v598_v4  ;;  %v713_v9 = vadd.f32 %v712_v0, %v674_v5 }
  0xc5   : > { %v739_v14 = vmax.f32 %v713_v9, 0.0 }
  0xc8   : > { %v675_v7 = vpop.f32.mrf.mxu2  ;;  %v600_v11 = vpop.f32.mrf.mxu0 }
  0xc9   : > { %v714_v8 = vpop.f32.mrf.mxu3  ;;  %v676_v10 = vadd.f32 %v675_v7, %v637_v6  ;;  %v639_v12 = vpop.f32.mrf.mxu1  ;;  %v601_v16 = vadd.f32 %v1355_v40, %v600_v11 }
  0xcb   : > { %v715_v13 = vadd.f32 %v714_v8, %v676_v10  ;;  %v640_v20 = vadd.f32 %v639_v12, %v601_v16 }
  0xcd   : > { %v740_v15 = vmax.f32 %v715_v13, 0.0 }
  0xcf   : > { %v1128_v17 = vpack.c.bf16 %v740_v15, %v739_v14 }
  0xd0   : > { %v678_v18 = vpop.f32.mrf.mxu2  ;;  %v602_v21 = vpop.f32.mrf.mxu0 }
  0xd1   : > { %v717_v19 = vpop.f32.mrf.mxu3  ;;  %1150 = vst [vmem:[%s1364_s10 + $0x8] sm:$0xff] %v1128_v17   ;;  %v641_v22 = vpop.f32.mrf.mxu1  ;;  %v603_v23 = vadd.f32 %v1355_v40, %v602_v21  ;;  %v679_v24 = vadd.f32 %v678_v18, %v640_v20 }
  0xd3   : > { %v642_v25 = vadd.f32 %v641_v22, %v603_v23  ;;  %v718_v28 = vadd.f32 %v717_v19, %v679_v24 }
  0xd5   : > { %v741_v33 = vmax.f32 %v718_v28, 0.0 }
  0xd8   : > { %v680_v26 = vpop.f32.mrf.mxu2  ;;  %v605_v30 = vpop.f32.mrf.mxu0 }
  0xd9   : > { %v719_v27 = vpop.f32.mrf.mxu3  ;;  %v681_v29 = vadd.f32 %v680_v26, %v642_v25  ;;  %v644_v31 = vpop.f32.mrf.mxu1  ;;  %v606_v35 = vadd.f32 %v1355_v40, %v605_v30 }
  0xdb   : > { %v720_v32 = vadd.f32 %v719_v27, %v681_v29  ;;  %v645_v39 = vadd.f32 %v644_v31, %v606_v35 }
  0xdd   : > { %v742_v34 = vmax.f32 %v720_v32, 0.0 }
  0xdf   : > { %v1133_v36 = vpack.c.bf16 %v742_v34, %v741_v33 }
  0xe0   : > { %v683_v37 = vpop.f32.mrf.mxu2  ;;  %v607_v41 = vpop.f32.mrf.mxu0 }
  0xe1   : > { %v722_v38 = vpop.f32.mrf.mxu3  ;;  %1151 = vst [vmem:[%s1364_s10 + $0x10] sm:$0xff] %v1133_v36   ;;  %v646_v42 = vpop.f32.mrf.mxu1  ;;  %v608_v43 = vadd.f32 %v1355_v40, %v607_v41  ;;  %v684_v44 = vadd.f32 %v683_v37, %v645_v39 }
  0xe3   : > { %v647_v45 = vadd.f32 %v646_v42, %v608_v43  ;;  %v723_v48 = vadd.f32 %v722_v38, %v684_v44 }
  0xe5   : > { %v743_v53 = vmax.f32 %v723_v48, 0.0 }
  0xe8   : > { %v685_v46 = vpop.f32.mrf.mxu2  ;;  %v610_v50 = vpop.f32.mrf.mxu0 }
  0xe9   : > { %v724_v47 = vpop.f32.mrf.mxu3  ;;  %v686_v49 = vadd.f32 %v685_v46, %v647_v45  ;;  %v649_v51 = vpop.f32.mrf.mxu1  ;;  %v611_v55 = vadd.f32 %v1355_v40, %v610_v50 }
  0xeb   : > { %v725_v52 = vadd.f32 %v724_v47, %v686_v49  ;;  %v650_v59 = vadd.f32 %v649_v51, %v611_v55 }
  0xed   : > { %v744_v54 = vmax.f32 %v725_v52, 0.0 }
  0xef   : > { %v1138_v56 = vpack.c.bf16 %v744_v54, %v743_v53 }
  0xf0   : > { %v688_v57 = vpop.f32.mrf.mxu2  ;;  %v612_v60 = vpop.f32.mrf.mxu0 }
  0xf1   : > { %v727_v58 = vpop.f32.mrf.mxu3  ;;  %1152 = vst [vmem:[%s1364_s10 + $0x18] sm:$0xff] %v1138_v56   ;;  %v651_v61 = vpop.f32.mrf.mxu1  ;;  %v613_v62 = vadd.f32 %v1355_v40, %v612_v60  ;;  %v689_v63 = vadd.f32 %v688_v57, %v650_v59 }
  0xf3   : > { %v652_v0 = vadd.f32 %v651_v61, %v613_v62  ;;  %v728_v3 = vadd.f32 %v727_v58, %v689_v63 }
  0xf5   : > { %v745_v8 = vmax.f32 %v728_v3, 0.0 }
  0xf8   : > { %v690_v1 = vpop.f32.mrf.mxu2  ;;  %v615_v5 = vpop.f32.mrf.mxu0 }
  0xf9   : > { %v729_v2 = vpop.f32.mrf.mxu3  ;;  %v691_v4 = vadd.f32 %v690_v1, %v652_v0  ;;  %v654_v7 = vpop.f32.mrf.mxu1  ;;  %v616_v10 = vadd.f32 %v1355_v40, %v615_v5 }
  0xfb   : > { %v730_v6 = vadd.f32 %v729_v2, %v691_v4  ;;  %v655_v14 = vadd.f32 %v654_v7, %v616_v10 }
  0xfd   : > { %v746_v9 = vmax.f32 %v730_v6, 0.0 }
  0xff   : > { %v1143_v11 = vpack.c.bf16 %v746_v9, %v745_v8 }
 0x100   : > { %v693_v12 = vpop.f32.mrf.mxu2  ;;  %v617_v15 = vpop.f32.mrf.mxu0 }
 0x101   : > { %v732_v13 = vpop.f32.mrf.mxu3  ;;  %1153 = vst [vmem:[%s1364_s10 + $0x20] sm:$0xff] %v1143_v11   ;;  %v618_v16 = vadd.f32 %v1355_v40, %v617_v15  ;;  %v694_v17 = vadd.f32 %v693_v12, %v655_v14  ;;  %v656_v18 = vpop.f32.mrf.mxu1 }
 0x103   : > { %v657_v19 = vadd.f32 %v656_v18, %v618_v16  ;;  %v733_v21 = vadd.f32 %v732_v13, %v694_v17 }
 0x105   : > { %v747_v25 = vmax.f32 %v733_v21, 0.0 }
 0x108   : > { %v695_v20 = vpop.f32.mrf.mxu2 }
 0x109   : > { %v696_v22 = vadd.f32 %v695_v20, %v657_v19  ;;  %v734_v23 = vpop.f32.mrf.mxu3 }
 0x10b   : > { %v735_v24 = vadd.f32 %v734_v23, %v696_v22 }
 0x10d   : > { %v748_v26 = vmax.f32 %v735_v24, 0.0 }
 0x10f   : > { %v1148_v27 = vpack.c.bf16 %v748_v26, %v747_v25 }
 0x111   : > { %1154 = vst [vmem:[%s1364_s10 + $0x28] sm:$0xff] %v1148_v27  }
 0x112 PF: > { %s13_s12 = sadd.s32 1, %s1170_s12  }
 0x113   : > { %p10_p4 = scmp.ge.s32.totalorder %s13_s12, 4  }
 0x115   :  { %12 = sbr.rel (!%p10_p4) target bundleno = 1 (0x1), region = 62 }

// kernel: forward.6
= control target key start
LH: loop header
LB: loop body
LE: loop exit
PB: predicated region body
PF: predicated region fallthrough
CT: control target
= control target key end

     0   :  { %s1204_s12 = smov 0   ;;  %s1404_s0 = inlined_call_operand.vmem [shape: bf16[128,576], index: 0, kind: input, shape index: {}]   ;;  %s1405_s1 = inlined_call_operand.vmem [shape: bf16[576,128], index: 1, kind: input, shape index: {}]   ;;  %s1406_s2 = inlined_call_operand.vmem [shape: f32[1,128], index: 2, kind: input, shape index: {}]   ;;  %s1407_s3 = inlined_call_operand.vmem [shape: bf16[128,128], index: 3, kind: output, shape index: {}]  }
   0x1 LB: > { %s832_s13 = sadd.s32 4294967295, %s1182_s12   ;;  %p836_p0 = scmp.ge.s32.totalorder %s1182_s12, 1  ;;  %s1182_s12 = sphi %s1204_s12, %s13_s12  }
   0x2   : > { %p139_p1 = scmp.lt.s32.totalorder %s1182_s12, 3 }
   0x4   : > { %p140_p2 = pnand %p836_p0, %p139_p1 }
   0x5   : > { %s837_s24 = sshll.u32 (!%p140_p2), %s832_s13, 3 }
   0x6   : > { %143 = sbr.rel (%p140_p2) target bundleno = 274 (0x112), region = 32  ;;  %p165_p3 = scmp.lt.s32.totalorder (!%p140_p2), %s837_s24, 15 }
   0xb   : > { %v1098_v0 = vld [vmem:[%s1405_s1 + $0x38] sm:$0xff]  ;;  %v1097_v1 = vld [vmem:[%s1405_s1 + $0x30] sm:$0xff]  ;;  %v1096_v4 = vld [vmem:[%s1405_s1 + $0x28] sm:$0xff]  ;;  %s1409_s24 = smov (!%p165_p3, %s837_s24), 15  ;;  %vm594_vm0 = vcmask 523264  }
   0xc   : > { %1150 = vmatpush.bf16.msra.mxu1 %v1098_v0  ;;  %1151 = vmatpush.bf16.msra.mxu2 %v1098_v0  ;;  %v1122_v2 = vld [vmem:[%s1405_s1 + $0xf8] sm:$0xff]  ;;  %v1121_v3 = vld [vmem:[%s1405_s1 + $0xf0] sm:$0xff]  ;;  %v1120_v5 = vld [vmem:[%s1405_s1 + $0xe8] sm:$0xff]  ;;  %s1166_s10 = smul.u32 20, %s1409_s24 }
   0xd   : > { %607 = vmatpush.bf16.msra.mxu0 %v1098_v0  ;;  %694 = vmatpush.bf16.msra.mxu3 %v1122_v2  ;;  %v1095_v6 = vld [vmem:[%s1405_s1 + $0x20] sm:$0xff]  ;;  %v1094_v8 = vld [vmem:[%s1405_s1 + $0x18] sm:$0xff]  ;;  %v1093_v10 = vld [vmem:[%s1405_s1 + $0x10] sm:$0xff] }
   0xe   : > { %v1119_v7 = vld [vmem:[%s1405_s1 + $0xe0] sm:$0xff]  ;;  %v1118_v9 = vld [vmem:[%s1405_s1 + $0xd8] sm:$0xff]  ;;  %v1117_v11 = vld [vmem:[%s1405_s1 + $0xd0] sm:$0xff]  ;;  %s1257_s18 = scalar_lea.vmem %s1404_s0, %s1166_s10 }
   0xf   : > { %v1092_v12 = vld [vmem:[%s1405_s1 + $0x8] sm:$0xff]  ;;  %v1091_v14 = vld [vmem:[%s1405_s1] sm:$0xff]  ;;  %v1078_v16 = vld [vmem:[%s1257_s18 + $0x38] sm:$0xf0] }
  0x10   : > { %1152 = vmatpush.bf16.msra.mxu1 %v1097_v1  ;;  %1153 = vmatpush.bf16.msra.mxu2 %v1097_v1  ;;  %v1116_v13 = vld [vmem:[%s1405_s1 + $0xc8] sm:$0xff]  ;;  %v903_v17 = vld [vmem:[%s1257_s18 + $0x78] sm:$0xf]  ;;  %v843_v21 = vld [vmem:[%s1257_s18] sm:$0xf] }
  0x11   : > { %608 = vmatpush.bf16.msra.mxu0 %v1097_v1  ;;  %695 = vmatpush.bf16.msra.mxu3 %v1121_v3  ;;  %v863_v15 = vld [vmem:[%s1257_s18 + $0x28] sm:$0xf]  ;;  %v1088_v18 = vld [vmem:[%s1257_s18 + $0x88] sm:$0xf0]  ;;  %v1114_v19 = vld [vmem:[%s1405_s1 + $0xb8] sm:$0xff] }
  0x12   : > { %v1106_v20 = vld [vmem:[%s1405_s1 + $0x78] sm:$0xff]  ;;  %v1115_v22 = vld [vmem:[%s1405_s1 + $0xc0] sm:$0xff]  ;;  %v864_v23 = vor.u32 %v1078_v16, %v863_v15  ;;  %v904_v24 = vor.u32 %v1088_v18, %v903_v17  ;;  %v1073_v25 = vld [vmem:[%s1257_s18 + $0x10] sm:$0xf0] }
  0x13   : > { %v1072_v26 = vld [vmem:[%s1257_s18 + $0xc] sm:$0xf]  ;;  %v853_v27 = vld [vmem:[%s1257_s18 + $0x1c] sm:$0xf0]  ;;  %v1126_v28 = vld [vmem:[%s1405_s1 + $0x118] sm:$0xff]  ;;  %v844_v31 = vor.u32 %v1073_v25, %v843_v21 }
  0x14   : > { %1154 = vmatpush.bf16.msra.mxu1 %v1096_v4  ;;  %1155 = vmatpush.bf16.msra.mxu2 %v1096_v4  ;;  %v1113_v29 = vld [vmem:[%s1405_s1 + $0xb0] sm:$0xff]  ;;  %v856_v32 = vor.u32 %v1072_v26, %v853_v27  ;;  %v1112_v34 = vld [vmem:[%s1405_s1 + $0xa8] sm:$0xff]  ;;  %v1111_v37 = vld [vmem:[%s1405_s1 + $0xa0] sm:$0xff] }
  0x15   : > { %609 = vmatpush.bf16.msra.mxu0 %v1096_v4  ;;  %696 = vmatpush.bf16.msra.mxu3 %v1120_v5  ;;  %v1105_v30 = vld [vmem:[%s1405_s1 + $0x70] sm:$0xff]  ;;  %v1104_v35 = vld [vmem:[%s1405_s1 + $0x68] sm:$0xff]  ;;  %v1103_v38 = vld [vmem:[%s1405_s1 + $0x60] sm:$0xff] }
  0x16   : > { %v1125_v33 = vld [vmem:[%s1405_s1 + $0x110] sm:$0xff]  ;;  %v1124_v36 = vld [vmem:[%s1405_s1 + $0x108] sm:$0xff]  ;;  %v1083_v40 = vld [vmem:[%s1257_s18 + $0x60] sm:$0xf0] }
  0x17   : > { %v883_v39 = vld [vmem:[%s1257_s18 + $0x50] sm:$0xf]  ;;  %v1123_v41 = vld [vmem:[%s1405_s1 + $0x100] sm:$0xff]  ;;  %v1110_v42 = vld [vmem:[%s1405_s1 + $0x98] sm:$0xff] }
  0x18   : > { %1156 = vmatpush.bf16.msra.mxu1 %v1095_v6  ;;  %1157 = vmatpush.bf16.msra.mxu2 %v1095_v6  ;;  %v1102_v43 = vld [vmem:[%s1405_s1 + $0x58] sm:$0xff]  ;;  %v859_v44 = vld [vmem:[%s1257_s18 + $0x10] sm:$0xf]  ;;  %v884_v45 = vor.u32 %v1083_v40, %v883_v39  ;;  %v1075_v46 = vld [vmem:[%s1257_s18 + $0x20] sm:$0xf0] }
  0x19   : > { %610 = vmatpush.bf16.msra.mxu0 %v1095_v6  ;;  %697 = vmatpush.bf16.msra.mxu3 %v1119_v7  ;;  %v1077_v47 = vld [vmem:[%s1257_s18 + $0x34] sm:$0xf]  ;;  %v873_v48 = vld [vmem:[%s1257_s18 + $0x44] sm:$0xf0]  ;;  %v860_v51 = vor.u32 %v1075_v46, %v859_v44  ;;  %v1107_v55 = vld [vmem:[%s1405_s1 + $0x80] sm:$0xff] }
  0x1a   : > { %v1109_v49 = vld [vmem:[%s1405_s1 + $0x90] sm:$0xff]  ;;  %v876_v52 = vor.u32 %v1077_v47, %v873_v48  ;;  %v1108_v53 = vld [vmem:[%s1405_s1 + $0x88] sm:$0xff]  ;;  %v1099_v56 = vld [vmem:[%s1405_s1 + $0x40] sm:$0xff] }
  0x1b   : > { %v1101_v50 = vld [vmem:[%s1405_s1 + $0x50] sm:$0xff]  ;;  %v1100_v54 = vld [vmem:[%s1405_s1 + $0x48] sm:$0xff]  ;;  %v1074_v58 = vld [vmem:[%s1257_s18 + $0x18] sm:$0xf0] }
  0x1c   : > { %1158 = vmatpush.bf16.msra.mxu1 %v1094_v8  ;;  %1159 = vmatpush.bf16.msra.mxu2 %v1094_v8  ;;  %v851_v57 = vld [vmem:[%s1257_s18 + $0x8] sm:$0xf]  ;;  %v1071_v60 = vld [vmem:[%s1257_s18 + $0x4] sm:$0xf]  ;;  %v845_v61 = vld [vmem:[%s1257_s18 + $0x14] sm:$0xf0] }
  0x1d   : > { %611 = vmatpush.bf16.msra.mxu0 %v1094_v8  ;;  %698 = vmatpush.bf16.msra.mxu3 %v1118_v9  ;;  %v852_v59 = vor.u32 %v1074_v58, %v851_v57  ;;  %v879_v62 = vld [vmem:[%s1257_s18 + $0x38] sm:$0xf]  ;;  %v848_v63 = vor.u32 %v1071_v60, %v845_v61  ;;  %v1080_v0 = vld [vmem:[%s1257_s18 + $0x48] sm:$0xf0]  ;;  %v1082_v1 = vld [vmem:[%s1257_s18 + $0x5c] sm:$0xf] }
  0x1e   : > { %v893_v2 = vld [vmem:[%s1257_s18 + $0x6c] sm:$0xf0]  ;;  %v880_v3 = vor.u32 %v1080_v0, %v879_v62  ;;  %v1079_v6 = vld [vmem:[%s1257_s18 + $0x40] sm:$0xf0]  ;;  %v1076_v8 = vld [vmem:[%s1257_s18 + $0x2c] sm:$0xf] }
  0x1f   : > { %v896_v4 = vor.u32 %v1082_v1, %v893_v2  ;;  %v871_v5 = vld [vmem:[%s1257_s18 + $0x30] sm:$0xf]  ;;  %v865_v9 = vld [vmem:[%s1257_s18 + $0x3c] sm:$0xf0]  ;;  %v891_v17 = vld [vmem:[%s1257_s18 + $0x58] sm:$0xf] }
  0x20   : > { %1160 = vmatpush.bf16.msra.mxu1 %v1093_v10  ;;  %1161 = vmatpush.bf16.msra.mxu2 %v1093_v10  ;;  %v872_v7 = vor.u32 %v1079_v6, %v871_v5  ;;  %v1084_v18 = vld [vmem:[%s1257_s18 + $0x68] sm:$0xf0]  ;;  %v885_v21 = vld [vmem:[%s1257_s18 + $0x64] sm:$0xf0]  ;;  %v911_v26 = vld [vmem:[%s1257_s18 + $0x80] sm:$0xf] }
  0x21   : > { %612 = vmatpush.bf16.msra.mxu0 %v1093_v10  ;;  %699 = vmatpush.bf16.msra.mxu3 %v1117_v11  ;;  %v899_v10 = vld [vmem:[%s1257_s18 + $0x60] sm:$0xf]  ;;  %v868_v11 = vor.u32 %v1076_v8, %v865_v9  ;;  %v1089_v27 = vld [vmem:[%s1257_s18 + $0x90] sm:$0xf0] }
  0x24   : > { %1162 = vmatpush.bf16.msra.mxu1 %v1092_v12  ;;  %1163 = vmatpush.bf16.msra.mxu2 %v1092_v12 }
  0x25   : > { %613 = vmatpush.bf16.msra.mxu0 %v1092_v12  ;;  %700 = vmatpush.bf16.msra.mxu3 %v1116_v13  ;;  %v1085_v12 = vld [vmem:[%s1257_s18 + $0x70] sm:$0xf0]  ;;  %v1087_v13 = vld [vmem:[%s1257_s18 + $0x84] sm:$0xf] }
  0x26   : > { %v900_v15 = vor.u32 %v1085_v12, %v899_v10 }
  0x28   : > { %1164 = vmatpush.bf16.msra.mxu1 %v1091_v14  ;;  %1165 = vmatpush.bf16.msra.mxu2 %v1091_v14 }
  0x29   : > { %614 = vmatpush.bf16.msra.mxu0 %v1091_v14  ;;  %701 = vmatpush.bf16.msra.mxu3 %v1115_v22  ;;  %v913_v14 = vld [vmem:[%s1257_s18 + $0x94] sm:$0xf0] }
  0x2a   : > { %v916_v16 = vor.u32 %v1087_v13, %v913_v14 }
  0x2b   : > { %620 = vmatmul.bf16.vlgmr.msra.gmra.mxu1 %v864_v23  ;;  %630 = vmatmul.bf16.vlgmr.msra.gmra.mxu2 %v904_v24  ;;  %v919_v23 = vld [vmem:[%s1257_s18 + $0x88] sm:$0xf]  ;;  %v1090_v24 = vld [vmem:[%s1257_s18 + $0x98] sm:$0xf0] }
  0x2c   : > { %665 = vmatpush.bf16.msrb.mxu2 %v1114_v19  ;;  %636 = vmatpush.bf16.msrb.mxu1 %v1106_v20  ;;  %v892_v19 = vor.u32 %v1084_v18, %v891_v17  ;;  %v1081_v20 = vld [vmem:[%s1257_s18 + $0x54] sm:$0xf]  ;;  %v920_v25 = vor.u32 %v1090_v24, %v919_v23 }
  0x2d   : > { %727 = vmatpush.bf16.msrb.mxu0 %v1126_v28  ;;  %702 = vmatmul.bf16.vlgmr.msra.gmra.mxu3 %v856_v32  ;;  %v888_v22 = vor.u32 %v1081_v20, %v885_v21  ;;  %v912_v28 = vor.u32 %v1089_v27, %v911_v26 }
  0x2e   : > { %615 = vmatmul.bf16.vlgmr.msra.gmra.mxu0 %v844_v31 }
  0x30   : > { %666 = vmatpush.bf16.msrb.mxu2 %v1113_v29  ;;  %637 = vmatpush.bf16.msrb.mxu1 %v1105_v30  ;;  %v1086_v29 = vld [vmem:[%s1257_s18 + $0x7c] sm:$0xf]  ;;  %v905_v30 = vld [vmem:[%s1257_s18 + $0x8c] sm:$0xf0]  ;;  %s840_s18 = sshll.u32 %s1409_s24, 2 }
  0x31   : > { %728 = vmatpush.bf16.msrb.mxu0 %v1125_v33  ;;  %v908_v31 = vor.u32 %v1086_v29, %v905_v30  ;;  %s1388_s21 = scalar_lea.vmem %s1407_s3, %s840_s18 }
  0x34   : > { %667 = vmatpush.bf16.msrb.mxu2 %v1112_v34  ;;  %638 = vmatpush.bf16.msrb.mxu1 %v1104_v35 }
  0x35   : > { %729 = vmatpush.bf16.msrb.mxu0 %v1124_v36 }
  0x38   : > { %668 = vmatpush.bf16.msrb.mxu2 %v1111_v37  ;;  %639 = vmatpush.bf16.msrb.mxu1 %v1103_v38 }
  0x39   : > { %730 = vmatpush.bf16.msrb.mxu0 %v1123_v41 }
  0x3b   : > { %625 = vmatmul.bf16.gmra.mxu1 %v884_v45 }
  0x3c   : > { %669 = vmatpush.bf16.msrb.mxu2 %v1110_v42  ;;  %640 = vmatpush.bf16.msrb.mxu1 %v1102_v43  ;;  %v1379_v42 = vld [vmem:[%s1406_s2] ss:$0 sm:$0xff] }
  0x3d   : > { %707 = vmatmul.bf16.gmra.mxu3 %v876_v52 }
  0x3e   : > { %1065 = vmatmul.msk.bf16.vlgmr.msrb.gmra.mxu0 %vm594_vm0, %v860_v51 }
  0x40   : > { %670 = vmatpush.bf16.msrb.mxu2 %v1109_v49  ;;  %641 = vmatpush.bf16.msrb.mxu1 %v1101_v50 }
  0x44   : > { %671 = vmatpush.bf16.msrb.mxu2 %v1108_v53  ;;  %642 = vmatpush.bf16.msrb.mxu1 %v1100_v54 }
  0x48   : > { %672 = vmatpush.bf16.msrb.mxu2 %v1107_v55  ;;  %643 = vmatpush.bf16.msrb.mxu1 %v1099_v56 }
  0x4b   : > { %673 = vmatmul.bf16.vlgmr.msrb.gmra.mxu2 %v852_v59  ;;  %644 = vmatmul.bf16.vlgmr.msrb.gmra.mxu1 %v848_v63 }
  0x4d   : > { %712 = vmatmul.bf16.gmra.mxu3 %v896_v4 }
  0x4e   : > { %1066 = vmatmul.msk.bf16.gmra.mxu0 %vm594_vm0, %v880_v3 }
  0x5b   : > { %678 = vmatmul.bf16.gmra.mxu2 %v872_v7  ;;  %649 = vmatmul.bf16.gmra.mxu1 %v868_v11 }
  0x5d   : > { %717 = vmatmul.bf16.gmra.mxu3 %v916_v16 }
  0x5e   : > { %1067 = vmatmul.msk.bf16.gmra.mxu0 %vm594_vm0, %v900_v15 }
  0x6b   : > { %683 = vmatmul.bf16.gmra.mxu2 %v892_v19  ;;  %654 = vmatmul.bf16.gmra.mxu1 %v888_v22 }
  0x6e   : > { %1068 = vmatmul.msk.bf16.gmra.mxu0 %vm594_vm0, %v920_v25 }
  0x7b   : > { %688 = vmatmul.bf16.gmra.mxu2 %v912_v28  ;;  %659 = vmatmul.bf16.gmra.mxu1 %v908_v31 }
  0xa8   : > { %v621_v32 = vpop.f32.mrf.mxu1 }
  0xa9   : > { %v622_v60 = vadd.f32 %v1379_v42, %v621_v32 }
  0xab   : > { %v616_v33 = vpop.f32.mrf.mxu0 }
  0xac   : > { %v617_v43 = vadd.f32 %v1379_v42, %v616_v33 }
  0xae   : > { %v1372_v37 = vpop.f32.mrf.mxu2 }
  0xb0   : > { %v623_v34 = vpop.f32.mrf.mxu1  ;;  %v703_v38 = vpop.f32.mrf.mxu3 }
  0xb1   : > { %v624_v6 = vadd.f32 %v1379_v42, %v623_v34 }
  0xb3   : > { %v618_v35 = vpop.f32.mrf.mxu0 }
  0xb4   : > { %v619_v50 = vadd.f32 %v1379_v42, %v618_v35 }
  0xb6   : > { %v1374_v41 = vpop.f32.mrf.mxu2 }
  0xb8   : > { %v626_v36 = vpop.f32.mrf.mxu1  ;;  %v705_v45 = vpop.f32.mrf.mxu3 }
  0xb9   : > { %v627_v16 = vadd.f32 %v1379_v42, %v626_v36  ;;  %v632_v36 = vadd.f32 %v1379_v42, %v1372_v37 }
  0xbb   : > { %v732_v40 = vpop.f32.mrf.mxu0 }
  0xc0   : > { %v628_v39 = vpop.f32.mrf.mxu1  ;;  %v708_v55 = vpop.f32.mrf.mxu3 }
  0xc1   : > { %v629_v26 = vadd.f32 %v1379_v42, %v628_v39 }
  0xc3   : > { %v734_v48 = vpop.f32.mrf.mxu0 }
  0xc8   : > { %v645_v44 = vpop.f32.mrf.mxu1  ;;  %v710_v4 = vpop.f32.mrf.mxu3 }
  0xc9   : > { %v646_v46 = vadd.f32 %v645_v44, %v617_v43 }
  0xcb   : > { %v737_v57 = vpop.f32.mrf.mxu0 }
  0xce   : > { %v674_v47 = vpop.f32.mrf.mxu2 }
  0xcf   : > { %v675_v49 = vadd.f32 %v674_v47, %v646_v46 }
  0xd0   : > { %v647_v51 = vpop.f32.mrf.mxu1  ;;  %v713_v15 = vpop.f32.mrf.mxu3 }
  0xd1   : > { %v648_v52 = vadd.f32 %v647_v51, %v619_v50  ;;  %v704_v53 = vadd.f32 %v703_v38, %v675_v49  ;;  %v634_v50 = vadd.f32 %v1379_v42, %v1374_v41 }
  0xd3   : > { %v733_v58 = vadd.f32 %v732_v40, %v704_v53  ;;  %v739_v7 = vpop.f32.mrf.mxu0 }
  0xd5   : > { %v752_v63 = vmax.f32 %v733_v58, 0.0 }
  0xd6   : > { %v676_v54 = vpop.f32.mrf.mxu2 }
  0xd7   : > { %v677_v56 = vadd.f32 %v676_v54, %v648_v52 }
  0xd8   : > { %v650_v62 = vpop.f32.mrf.mxu1  ;;  %v715_v28 = vpop.f32.mrf.mxu3 }
  0xd9   : > { %v706_v59 = vadd.f32 %v705_v45, %v677_v56  ;;  %v651_v1 = vadd.f32 %v650_v62, %v622_v60 }
  0xdb   : > { %v735_v61 = vadd.f32 %v734_v48, %v706_v59  ;;  %v742_v19 = vpop.f32.mrf.mxu0 }
  0xdd   : > { %v753_v0 = vmax.f32 %v735_v61, 0.0 }
  0xde   : > { %v679_v2 = vpop.f32.mrf.mxu2 }
  0xdf   : > { %v1130_v3 = vpack.c.bf16 %v753_v0, %v752_v63  ;;  %v680_v5 = vadd.f32 %v679_v2, %v651_v1 }
  0xe0   : > { %v652_v8 = vpop.f32.mrf.mxu1  ;;  %v718_v46 = vpop.f32.mrf.mxu3 }
  0xe1   : > { %1131 = vst [vmem:[%s1388_s21] sm:$0xff] %v1130_v3   ;;  %v653_v9 = vadd.f32 %v652_v8, %v624_v6  ;;  %v709_v10 = vadd.f32 %v708_v55, %v680_v5 }
  0xe3   : > { %v738_v13 = vadd.f32 %v737_v57, %v709_v10  ;;  %v744_v31 = vpop.f32.mrf.mxu0 }
  0xe5   : > { %v754_v20 = vmax.f32 %v738_v13, 0.0 }
  0xe6   : > { %v681_v11 = vpop.f32.mrf.mxu2 }
  0xe7   : > { %v682_v12 = vadd.f32 %v681_v11, %v653_v9 }
  0xe8   : > { %v655_v18 = vpop.f32.mrf.mxu1  ;;  %v720_v55 = vpop.f32.mrf.mxu3 }
  0xe9   : > { %v711_v14 = vadd.f32 %v710_v4, %v682_v12  ;;  %v656_v22 = vadd.f32 %v655_v18, %v627_v16 }
  0xeb   : > { %v740_v17 = vadd.f32 %v739_v7, %v711_v14  ;;  %v747_v48 = vpop.f32.mrf.mxu0 }
  0xed   : > { %v755_v21 = vmax.f32 %v740_v17, 0.0 }
  0xee   : > { %v684_v23 = vpop.f32.mrf.mxu2 }
  0xef   : > { %v1135_v24 = vpack.c.bf16 %v755_v21, %v754_v20  ;;  %v685_v25 = vadd.f32 %v684_v23, %v656_v22 }
  0xf0   : > { %v657_v27 = vpop.f32.mrf.mxu1 }
  0xf1   : > { %1147 = vst [vmem:[%s1388_s21 + $0x8] sm:$0xff] %v1135_v24   ;;  %v658_v29 = vadd.f32 %v657_v27, %v629_v26  ;;  %v714_v30 = vadd.f32 %v713_v15, %v685_v25 }
  0xf3   : > { %v743_v34 = vadd.f32 %v742_v19, %v714_v30  ;;  %v749_v58 = vpop.f32.mrf.mxu0 }
  0xf5   : > { %v756_v43 = vmax.f32 %v743_v34, 0.0 }
  0xf6   : > { %v686_v32 = vpop.f32.mrf.mxu2 }
  0xf7   : > { %v687_v33 = vadd.f32 %v686_v32, %v658_v29 }
  0xf8   : > { %v660_v40 = vpop.f32.mrf.mxu1 }
  0xf9   : > { %v716_v35 = vadd.f32 %v715_v28, %v687_v33  ;;  %v661_v45 = vadd.f32 %v660_v40, %v632_v36 }
  0xfb   : > { %v745_v38 = vadd.f32 %v744_v31, %v716_v35 }
  0xfd   : > { %v757_v44 = vmax.f32 %v745_v38, 0.0 }
  0xfe   : > { %v689_v39 = vpop.f32.mrf.mxu2 }
  0xff   : > { %v1140_v47 = vpack.c.bf16 %v757_v44, %v756_v43  ;;  %v690_v49 = vadd.f32 %v689_v39, %v661_v45 }
 0x100   : > { %v662_v51 = vpop.f32.mrf.mxu1 }
 0x101   : > { %1148 = vst [vmem:[%s1388_s21 + $0x10] sm:$0xff] %v1140_v47   ;;  %v663_v52 = vadd.f32 %v662_v51, %v634_v50  ;;  %v719_v53 = vadd.f32 %v718_v46, %v690_v49 }
 0x103   : > { %v748_v56 = vadd.f32 %v747_v48, %v719_v53 }
 0x105   : > { %v758_v60 = vmax.f32 %v748_v56, 0.0 }
 0x106   : > { %v691_v54 = vpop.f32.mrf.mxu2 }
 0x107   : > { %v692_v37 = vadd.f32 %v691_v54, %v663_v52 }
 0x109   : > { %v721_v57 = vadd.f32 %v720_v55, %v692_v37 }
 0x10b   : > { %v750_v59 = vadd.f32 %v749_v58, %v721_v57 }
 0x10d   : > { %v759_v61 = vmax.f32 %v750_v59, 0.0 }
 0x10f   : > { %v1145_v62 = vpack.c.bf16 %v759_v61, %v758_v60 }
 0x111   : > { %1149 = vst [vmem:[%s1388_s21 + $0x18] sm:$0xff] %v1145_v62  }
 0x112 PF: > { %s13_s12 = sadd.s32 1, %s1182_s12  }
 0x113   : > { %p10_p4 = scmp.ge.s32.totalorder %s13_s12, 4  }
 0x115   :  { %12 = sbr.rel (!%p10_p4) target bundleno = 1 (0x1), region = 62 }

// kernel: forward.7
= control target key start
LH: loop header
LB: loop body
LE: loop exit
PB: predicated region body
PF: predicated region fallthrough
CT: control target
= control target key end

     0   :  { %12 = vsyncpa [#allocation3], 0  ;;  %s4241_s0 = inlined_call_operand.vmem [shape: bf16[2,3136], index: 0, kind: input, shape index: {}]   ;;  %s4242_s1 = inlined_call_operand.vmem [shape: bf16[3136,128], index: 1, kind: input, shape index: {}]   ;;  %s4243_s2 = inlined_call_operand.vmem [shape: f32[1,128], index: 2, kind: input, shape index: {}]   ;;  %s4244_s3 = inlined_call_operand.vmem [shape: bf16[3,128,128], index: 3, kind: input, shape index: {}]   ;;  %s4245_s4 = inlined_call_operand.vmem [shape: f32[3,1,128], index: 4, kind: input, shape index: {}]   ;;  %s4246_s5 = inlined_call_operand.hbm [shape: f32[2,128], index: 5, kind: output, shape index: {0}]   ;;  %s4247_s6 = inlined_call_operand.hbm [shape: f32[2,128], index: 6, kind: output, shape index: {1}]  }
   0x1   :  { %v3222_v0 = vld [vmem:[%s4242_s1 + $0x38] sm:$0xff]  ;;  %v3221_v4 = vld [vmem:[%s4242_s1 + $0x30] sm:$0xff]  ;;  %v3220_v8 = vld [vmem:[%s4242_s1 + $0x28] sm:$0xff] }
   0x2   :  { %v3238_v1 = vld [vmem:[%s4242_s1 + $0xb8] sm:$0xff]  ;;  %1661 = vmatpush.bf16.msra.mxu0 %v3222_v0  ;;  %v3237_v5 = vld [vmem:[%s4242_s1 + $0xb0] sm:$0xff]  ;;  %v3236_v9 = vld [vmem:[%s4242_s1 + $0xa8] sm:$0xff] }
   0x3   :  { %v3246_v2 = vld [vmem:[%s4242_s1 + $0xf8] sm:$0xff]  ;;  %1687 = vmatpush.bf16.msra.mxu2 %v3238_v1  ;;  %v3245_v6 = vld [vmem:[%s4242_s1 + $0xf0] sm:$0xff]  ;;  %v3244_v10 = vld [vmem:[%s4242_s1 + $0xe8] sm:$0xff] }
   0x4   :  { %v3230_v3 = vld [vmem:[%s4242_s1 + $0x78] sm:$0xff]  ;;  %1700 = vmatpush.bf16.msra.mxu3 %v3246_v2  ;;  %v3229_v7 = vld [vmem:[%s4242_s1 + $0x70] sm:$0xff]  ;;  %v3228_v11 = vld [vmem:[%s4242_s1 + $0x68] sm:$0xff] }
   0x5   :  { %1674 = vmatpush.bf16.msra.mxu1 %v3230_v3  ;;  %v3219_v12 = vld [vmem:[%s4242_s1 + $0x20] sm:$0xff]  ;;  %v3218_v16 = vld [vmem:[%s4242_s1 + $0x18] sm:$0xff]  ;;  %v3217_v20 = vld [vmem:[%s4242_s1 + $0x10] sm:$0xff] }
   0x6   :  { %1662 = vmatpush.bf16.msra.mxu0 %v3221_v4  ;;  %v3235_v13 = vld [vmem:[%s4242_s1 + $0xa0] sm:$0xff]  ;;  %v3234_v17 = vld [vmem:[%s4242_s1 + $0x98] sm:$0xff]  ;;  %v3233_v22 = vld [vmem:[%s4242_s1 + $0x90] sm:$0xff] }
   0x7   :  { %1688 = vmatpush.bf16.msra.mxu2 %v3237_v5  ;;  %v3243_v14 = vld [vmem:[%s4242_s1 + $0xe0] sm:$0xff]  ;;  %v3242_v18 = vld [vmem:[%s4242_s1 + $0xd8] sm:$0xff]  ;;  %v3241_v23 = vld [vmem:[%s4242_s1 + $0xd0] sm:$0xff] }
   0x8   :  { %1701 = vmatpush.bf16.msra.mxu3 %v3245_v6  ;;  %v3227_v15 = vld [vmem:[%s4242_s1 + $0x60] sm:$0xff]  ;;  %v3226_v19 = vld [vmem:[%s4242_s1 + $0x58] sm:$0xff]  ;;  %v3225_v24 = vld [vmem:[%s4242_s1 + $0x50] sm:$0xff] }
   0x9   :  { %1675 = vmatpush.bf16.msra.mxu1 %v3229_v7  ;;  %v25_v21 = vld [vmem:[%s4241_s0] sm:$0xff] }
   0xa   :  { %1663 = vmatpush.bf16.msra.mxu0 %v3220_v8  ;;  %426 = vst [vmem:[#allocation1] ss:$9 sm:$0xff] %v25_v21 }
   0xb   :  { %1689 = vmatpush.bf16.msra.mxu2 %v3236_v9 }
   0xc   :  { %1702 = vmatpush.bf16.msra.mxu3 %v3244_v10 }
   0xd   :  { %1676 = vmatpush.bf16.msra.mxu1 %v3228_v11 }
   0xe   :  { %1664 = vmatpush.bf16.msra.mxu0 %v3219_v12 }
   0xf   :  { %1690 = vmatpush.bf16.msra.mxu2 %v3235_v13 }
  0x10   :  { %1703 = vmatpush.bf16.msra.mxu3 %v3243_v14 }
  0x11   :  { %1677 = vmatpush.bf16.msra.mxu1 %v3227_v15 }
  0x12   :  { %1665 = vmatpush.bf16.msra.mxu0 %v3218_v16 }
  0x13   :  { %1691 = vmatpush.bf16.msra.mxu2 %v3234_v17 }
  0x14   :  { %1704 = vmatpush.bf16.msra.mxu3 %v3242_v18 }
  0x15   :  { %1678 = vmatpush.bf16.msra.mxu1 %v3226_v19 }
  0x16   :  { %13 = vsyncpa [#allocation5], 0  ;;  %1666 = vmatpush.bf16.msra.mxu0 %v3217_v20  ;;  %v3216_v25 = vld [vmem:[%s4242_s1 + $0x8] sm:$0xff]  ;;  %v3215_v29 = vld [vmem:[%s4242_s1] sm:$0xff]  ;;  %vm1658_vm0 = vcmask 523264   ;;  %vm2238_vm1 = vcmask 1041408  }
  0x17   :  { %1692 = vmatpush.bf16.msra.mxu2 %v3233_v22  ;;  %v3232_v26 = vld [vmem:[%s4242_s1 + $0x88] sm:$0xff]  ;;  %v3231_v30 = vld [vmem:[%s4242_s1 + $0x80] sm:$0xff]  ;;  %v3254_v32 = vld [vmem:[%s4242_s1 + $0x138] sm:$0xff]  ;;  %s2275_s12 = sshll.u32 %s4246_s5, 4  ;;  %s3500_s13 = smov [#allocation4]   ;;  %s2276_s12 = int_to_ptr.hbm [resolvable:$true] %s2275_s12 }
  0x18   :  { %1705 = vmatpush.bf16.msra.mxu3 %v3241_v23  ;;  %v3240_v27 = vld [vmem:[%s4242_s1 + $0xc8] sm:$0xff]  ;;  %v3239_v31 = vld [vmem:[%s4242_s1 + $0xc0] sm:$0xff]  ;;  %v3270_v33 = vld [vmem:[%s4242_s1 + $0x1b8] sm:$0xff]  ;;  %s2284_s14 = sshll.u32 %s3500_s13, 4  ;;  %s2286_s5 = sshll.u32 %s4247_s6, 4  ;;  %s2285_s14 = int_to_ptr.vmem [resolvable:$true] %s2284_s14  ;;  %s2287_s5 = int_to_ptr.hbm [resolvable:$true] %s2286_s5 }
  0x19   :  { %1679 = vmatpush.bf16.msra.mxu1 %v3225_v24  ;;  %v3224_v28 = vld [vmem:[%s4242_s1 + $0x48] sm:$0xff]  ;;  %v3278_v34 = vld [vmem:[%s4242_s1 + $0x1f8] sm:$0xff]  ;;  %v3223_v35 = vld [vmem:[%s4242_s1 + $0x40] sm:$0xff] }
  0x1a   :  { %1667 = vmatpush.bf16.msra.mxu0 %v3216_v25  ;;  %v3262_v36 = vld [vmem:[%s4242_s1 + $0x178] sm:$0xff]  ;;  %v3253_v38 = vld [vmem:[%s4242_s1 + $0x130] sm:$0xff]  ;;  %v427_v39 = vld [vmem:[#allocation1] sm:$0xff] }
  0x1b   :  { %1693 = vmatpush.bf16.msra.mxu2 %v3232_v26  ;;  %v429_v37 = vld [vmem:[#allocation1 + $0x12] sm:$0xff]  ;;  %v430_v42 = vld [vmem:[#allocation1 + $0x1b] sm:$0xff]  ;;  %v428_v44 = vld [vmem:[#allocation1 + $0x9] sm:$0xff] }
  0x1c   :  { %1706 = vmatpush.bf16.msra.mxu3 %v3240_v27  ;;  %v3269_v40 = vld [vmem:[%s4242_s1 + $0x1b0] sm:$0xff]  ;;  %v3252_v45 = vld [vmem:[%s4242_s1 + $0x128] sm:$0xff]  ;;  %v434_v51 = vld [vmem:[#allocation1 + $0x3f] sm:$0xff] }
  0x1d   :  { %1680 = vmatpush.bf16.msra.mxu1 %v3224_v28  ;;  %v3277_v41 = vld [vmem:[%s4242_s1 + $0x1f0] sm:$0xff]  ;;  %v3268_v46 = vld [vmem:[%s4242_s1 + $0x1a8] sm:$0xff]  ;;  %v3251_v54 = vld [vmem:[%s4242_s1 + $0x120] sm:$0xff] }
  0x1e   :  { %1668 = vmatpush.bf16.msra.mxu0 %v3215_v29  ;;  %v3261_v43 = vld [vmem:[%s4242_s1 + $0x170] sm:$0xff]  ;;  %v3276_v47 = vld [vmem:[%s4242_s1 + $0x1e8] sm:$0xff]  ;;  %v3267_v55 = vld [vmem:[%s4242_s1 + $0x1a0] sm:$0xff] }
  0x1f   :  { %1694 = vmatpush.bf16.msra.mxu2 %v3231_v30  ;;  %v3260_v48 = vld [vmem:[%s4242_s1 + $0x168] sm:$0xff]  ;;  %v433_v49 = vld [vmem:[#allocation1 + $0x36] sm:$0xff]  ;;  %v3275_v56 = vld [vmem:[%s4242_s1 + $0x1e0] sm:$0xff] }
  0x20   :  { %1707 = vmatpush.bf16.msra.mxu3 %v3239_v31  ;;  %v431_v50 = vld [vmem:[#allocation1 + $0x24] sm:$0xff]  ;;  %v3674_v53 = vld [vmem:[#allocation1 + $0x2d] sm:$0xff]  ;;  %v3250_v58 = vld [vmem:[%s4242_s1 + $0x118] sm:$0xff] }
  0x21   :  { %1681 = vmatpush.bf16.msra.mxu1 %v3223_v35  ;;  %1669 = vmatmul.bf16.vlgmr.msra.gmra.mxu0 %v427_v39  ;;  %v26_v52 = vld [vmem:[%s4241_s0 + $0x8] sm:$0xff]  ;;  %v3259_v57 = vld [vmem:[%s4242_s1 + $0x160] sm:$0xff]  ;;  %v3266_v59 = vld [vmem:[%s4242_s1 + $0x198] sm:$0xff] }
  0x22   :  { %1713 = vmatpush.bf16.msrb.mxu0 %v3254_v32  ;;  %1695 = vmatmul.bf16.vlgmr.msra.gmra.mxu2 %v429_v37  ;;  %436 = vst [vmem:[#allocation1] ss:$9 sm:$0xff] %v26_v52  ;;  %v3274_v60 = vld [vmem:[%s4242_s1 + $0x1d8] sm:$0xff]  ;;  %v3249_v62 = vld [vmem:[%s4242_s1 + $0x110] sm:$0xff]  ;;  %v3248_v2 = vld [vmem:[%s4242_s1 + $0x108] sm:$0xff] }
  0x23   :  { %1739 = vmatpush.bf16.msrb.mxu2 %v3270_v33  ;;  %1708 = vmatmul.bf16.vlgmr.msra.gmra.mxu3 %v430_v42  ;;  %v3258_v61 = vld [vmem:[%s4242_s1 + $0x158] sm:$0xff]  ;;  %v3265_v63 = vld [vmem:[%s4242_s1 + $0x190] sm:$0xff]  ;;  %v3264_v3 = vld [vmem:[%s4242_s1 + $0x188] sm:$0xff] }
  0x24   :  { %1752 = vmatpush.bf16.msrb.mxu3 %v3278_v34  ;;  %1682 = vmatmul.bf16.vlgmr.msra.gmra.mxu1 %v428_v44  ;;  %v3273_v0 = vld [vmem:[%s4242_s1 + $0x1d0] sm:$0xff]  ;;  %v3272_v4 = vld [vmem:[%s4242_s1 + $0x1c8] sm:$0xff]  ;;  %v3247_v6 = vld [vmem:[%s4242_s1 + $0x100] sm:$0xff] }
  0x25   :  { %1726 = vmatpush.bf16.msrb.mxu1 %v3262_v36  ;;  %v3257_v1 = vld [vmem:[%s4242_s1 + $0x150] sm:$0xff]  ;;  %v3256_v5 = vld [vmem:[%s4242_s1 + $0x148] sm:$0xff]  ;;  %v3263_v7 = vld [vmem:[%s4242_s1 + $0x180] sm:$0xff] }
  0x26   :  { %1714 = vmatpush.bf16.msrb.mxu0 %v3253_v38  ;;  %v3271_v8 = vld [vmem:[%s4242_s1 + $0x1c0] sm:$0xff]  ;;  %v3286_v9 = vld [vmem:[%s4242_s1 + $0x238] sm:$0xff]  ;;  %v3285_v14 = vld [vmem:[%s4242_s1 + $0x230] sm:$0xff] }
  0x27   :  { %1740 = vmatpush.bf16.msrb.mxu2 %v3269_v40  ;;  %v3302_v10 = vld [vmem:[%s4242_s1 + $0x2b8] sm:$0xff]  ;;  %v3255_v12 = vld [vmem:[%s4242_s1 + $0x140] sm:$0xff]  ;;  %v3301_v15 = vld [vmem:[%s4242_s1 + $0x2b0] sm:$0xff] }
  0x28   :  { %1753 = vmatpush.bf16.msrb.mxu3 %v3277_v41  ;;  %v3310_v11 = vld [vmem:[%s4242_s1 + $0x2f8] sm:$0xff]  ;;  %v3309_v16 = vld [vmem:[%s4242_s1 + $0x2f0] sm:$0xff]  ;;  %v3284_v18 = vld [vmem:[%s4242_s1 + $0x228] sm:$0xff] }
  0x29   :  { %1727 = vmatpush.bf16.msrb.mxu1 %v3261_v43  ;;  %v3294_v13 = vld [vmem:[%s4242_s1 + $0x278] sm:$0xff]  ;;  %v3293_v17 = vld [vmem:[%s4242_s1 + $0x270] sm:$0xff]  ;;  %v3300_v19 = vld [vmem:[%s4242_s1 + $0x2a8] sm:$0xff] }
  0x2a   :  { %1715 = vmatpush.bf16.msrb.mxu0 %v3252_v45  ;;  %v3308_v20 = vld [vmem:[%s4242_s1 + $0x2e8] sm:$0xff]  ;;  %v3283_v22 = vld [vmem:[%s4242_s1 + $0x220] sm:$0xff]  ;;  %v3282_v26 = vld [vmem:[%s4242_s1 + $0x218] sm:$0xff] }
  0x2b   :  { %1741 = vmatpush.bf16.msrb.mxu2 %v3268_v46  ;;  %v3292_v21 = vld [vmem:[%s4242_s1 + $0x268] sm:$0xff]  ;;  %v3299_v23 = vld [vmem:[%s4242_s1 + $0x2a0] sm:$0xff]  ;;  %v3298_v27 = vld [vmem:[%s4242_s1 + $0x298] sm:$0xff] }
  0x2c   :  { %1754 = vmatpush.bf16.msrb.mxu3 %v3276_v47  ;;  %v3307_v24 = vld [vmem:[%s4242_s1 + $0x2e0] sm:$0xff]  ;;  %v3306_v28 = vld [vmem:[%s4242_s1 + $0x2d8] sm:$0xff]  ;;  %v3281_v30 = vld [vmem:[%s4242_s1 + $0x210] sm:$0xff] }
  0x2d   :  { %1728 = vmatpush.bf16.msrb.mxu1 %v3260_v48  ;;  %v3291_v25 = vld [vmem:[%s4242_s1 + $0x260] sm:$0xff]  ;;  %v3290_v29 = vld [vmem:[%s4242_s1 + $0x258] sm:$0xff]  ;;  %v3297_v31 = vld [vmem:[%s4242_s1 + $0x290] sm:$0xff] }
  0x2e   :  { %1716 = vmatpush.bf16.msrb.mxu0 %v3251_v54  ;;  %v3305_v32 = vld [vmem:[%s4242_s1 + $0x2d0] sm:$0xff]  ;;  %v3280_v34 = vld [vmem:[%s4242_s1 + $0x208] sm:$0xff]  ;;  %v3279_v38 = vld [vmem:[%s4242_s1 + $0x200] sm:$0xff] }
  0x2f   :  { %1742 = vmatpush.bf16.msrb.mxu2 %v3267_v55  ;;  %v3289_v33 = vld [vmem:[%s4242_s1 + $0x250] sm:$0xff]  ;;  %v3296_v35 = vld [vmem:[%s4242_s1 + $0x288] sm:$0xff]  ;;  %v3295_v39 = vld [vmem:[%s4242_s1 + $0x280] sm:$0xff] }
  0x30   :  { %1755 = vmatpush.bf16.msrb.mxu3 %v3275_v56  ;;  %v3304_v36 = vld [vmem:[%s4242_s1 + $0x2c8] sm:$0xff]  ;;  %v3303_v40 = vld [vmem:[%s4242_s1 + $0x2c0] sm:$0xff]  ;;  %v3318_v41 = vld [vmem:[%s4242_s1 + $0x338] sm:$0xff] }
  0x31   :  { %1729 = vmatpush.bf16.msrb.mxu1 %v3259_v57  ;;  %v3288_v37 = vld [vmem:[%s4242_s1 + $0x248] sm:$0xff]  ;;  %v3334_v42 = vld [vmem:[%s4242_s1 + $0x3b8] sm:$0xff]  ;;  %v3287_v44 = vld [vmem:[%s4242_s1 + $0x240] sm:$0xff] }
  0x32   :  { %1717 = vmatpush.bf16.msrb.mxu0 %v3250_v58  ;;  %v3342_v43 = vld [vmem:[%s4242_s1 + $0x3f8] sm:$0xff]  ;;  %v437_v45 = vld [vmem:[#allocation1] sm:$0xff]  ;;  %v3317_v48 = vld [vmem:[%s4242_s1 + $0x330] sm:$0xff] }
  0x33   :  { %1743 = vmatpush.bf16.msrb.mxu2 %v3266_v59  ;;  %v3326_v46 = vld [vmem:[%s4242_s1 + $0x378] sm:$0xff]  ;;  %v3341_v52 = vld [vmem:[%s4242_s1 + $0x3f0] sm:$0xff]  ;;  %v3316_v54 = vld [vmem:[%s4242_s1 + $0x328] sm:$0xff] }
  0x34   :  { %1756 = vmatpush.bf16.msrb.mxu3 %v3274_v60  ;;  %v439_v47 = vld [vmem:[#allocation1 + $0x12] sm:$0xff]  ;;  %v3332_v55 = vld [vmem:[%s4242_s1 + $0x3a8] sm:$0xff]  ;;  %v3315_v58 = vld [vmem:[%s4242_s1 + $0x320] sm:$0xff] }
  0x35   :  { %1730 = vmatpush.bf16.msrb.mxu1 %v3258_v61  ;;  %v3340_v56 = vld [vmem:[%s4242_s1 + $0x3e8] sm:$0xff]  ;;  %v3331_v59 = vld [vmem:[%s4242_s1 + $0x3a0] sm:$0xff] }
  0x36   :  { %1718 = vmatpush.bf16.msrb.mxu0 %v3249_v62  ;;  %v3324_v57 = vld [vmem:[%s4242_s1 + $0x368] sm:$0xff]  ;;  %v3339_v60 = vld [vmem:[%s4242_s1 + $0x3e0] sm:$0xff]  ;;  %v3314_v62 = vld [vmem:[%s4242_s1 + $0x318] sm:$0xff] }
  0x37   :  { %1744 = vmatpush.bf16.msrb.mxu2 %v3265_v63  ;;  %v3323_v61 = vld [vmem:[%s4242_s1 + $0x360] sm:$0xff]  ;;  %v3330_v63 = vld [vmem:[%s4242_s1 + $0x398] sm:$0xff] }
  0x38   :  { %1757 = vmatpush.bf16.msrb.mxu3 %v3273_v0  ;;  %v3338_v0 = vld [vmem:[%s4242_s1 + $0x3d8] sm:$0xff] }
  0x39   :  { %1731 = vmatpush.bf16.msrb.mxu1 %v3257_v1  ;;  %v3322_v1 = vld [vmem:[%s4242_s1 + $0x358] sm:$0xff] }
  0x3a   :  { %1719 = vmatpush.bf16.msrb.mxu0 %v3248_v2  ;;  %v3313_v2 = vld [vmem:[%s4242_s1 + $0x310] sm:$0xff] }
  0x3b   :  { %1745 = vmatpush.bf16.msrb.mxu2 %v3264_v3  ;;  %v3329_v3 = vld [vmem:[%s4242_s1 + $0x390] sm:$0xff] }
  0x3c   :  { %1758 = vmatpush.bf16.msrb.mxu3 %v3272_v4  ;;  %v3337_v4 = vld [vmem:[%s4242_s1 + $0x3d0] sm:$0xff] }
  0x3d   :  { %1732 = vmatpush.bf16.msrb.mxu1 %v3256_v5  ;;  %v3321_v5 = vld [vmem:[%s4242_s1 + $0x350] sm:$0xff] }
  0x3e   :  { %1720 = vmatpush.bf16.msrb.mxu0 %v3247_v6  ;;  %v3312_v6 = vld [vmem:[%s4242_s1 + $0x308] sm:$0xff] }
  0x3f   :  { %1746 = vmatpush.bf16.msrb.mxu2 %v3263_v7  ;;  %v3328_v7 = vld [vmem:[%s4242_s1 + $0x388] sm:$0xff] }
  0x40   :  { %1759 = vmatpush.bf16.msrb.mxu3 %v3271_v8  ;;  %v3336_v8 = vld [vmem:[%s4242_s1 + $0x3c8] sm:$0xff] }
  0x41   :  { %1733 = vmatpush.bf16.msrb.mxu1 %v3255_v12  ;;  %1721 = vmatmul.bf16.vlgmr.msrb.gmra.mxu0 %v431_v50  ;;  %v3333_v50 = vld [vmem:[%s4242_s1 + $0x3b0] sm:$0xff]  ;;  %v444_v12 = vld [vmem:[#allocation1 + $0x3f] sm:$0xff] }
  0x42   :  { %1765 = vmatpush.bf16.msra.mxu0 %v3286_v9  ;;  %1747 = vmatmul.bf16.vlgmr.msrb.gmra.mxu2 %v433_v49  ;;  %v440_v49 = vld [vmem:[#allocation1 + $0x1b] sm:$0xff]  ;;  %v441_v9 = vld [vmem:[#allocation1 + $0x24] sm:$0xff] }
  0x43   :  { %1791 = vmatpush.bf16.msra.mxu2 %v3302_v10  ;;  %1760 = vmatmul.bf16.vlgmr.msrb.gmra.mxu3 %v434_v51  ;;  %v438_v51 = vld [vmem:[#allocation1 + $0x9] sm:$0xff]  ;;  %v443_v10 = vld [vmem:[#allocation1 + $0x36] sm:$0xff] }
  0x44   :  { %1804 = vmatpush.bf16.msra.mxu3 %v3310_v11  ;;  %1734 = vmatmul.bf16.vlgmr.msrb.gmra.mxu1 %v3674_v53  ;;  %v3325_v53 = vld [vmem:[%s4242_s1 + $0x370] sm:$0xff] }
  0x45   :  { %1778 = vmatpush.bf16.msra.mxu1 %v3294_v13  ;;  %v442_v11 = vld [vmem:[#allocation1 + $0x2d] sm:$0xff] }
  0x46   :  { %1766 = vmatpush.bf16.msra.mxu0 %v3285_v14  ;;  %v27_v13 = vld [vmem:[%s4241_s0 + $0x10] sm:$0xff]  ;;  %v3320_v14 = vld [vmem:[%s4242_s1 + $0x348] sm:$0xff] }
  0x47   :  { %1792 = vmatpush.bf16.msra.mxu2 %v3301_v15  ;;  %446 = vst [vmem:[#allocation1] ss:$9 sm:$0xff] %v27_v13  ;;  %v3311_v15 = vld [vmem:[%s4242_s1 + $0x300] sm:$0xff] }
  0x48   :  { %1805 = vmatpush.bf16.msra.mxu3 %v3309_v16  ;;  %v3327_v16 = vld [vmem:[%s4242_s1 + $0x380] sm:$0xff] }
  0x49   :  { %1779 = vmatpush.bf16.msra.mxu1 %v3293_v17  ;;  %v3350_v17 = vld [vmem:[%s4242_s1 + $0x438] sm:$0xff] }
  0x4a   :  { %1767 = vmatpush.bf16.msra.mxu0 %v3284_v18  ;;  %v3335_v18 = vld [vmem:[%s4242_s1 + $0x3c0] sm:$0xff] }
  0x4b   :  { %1793 = vmatpush.bf16.msra.mxu2 %v3300_v19  ;;  %v3366_v19 = vld [vmem:[%s4242_s1 + $0x4b8] sm:$0xff] }
  0x4c   :  { %1806 = vmatpush.bf16.msra.mxu3 %v3308_v20  ;;  %v3374_v20 = vld [vmem:[%s4242_s1 + $0x4f8] sm:$0xff] }
  0x4d   :  { %1780 = vmatpush.bf16.msra.mxu1 %v3292_v21  ;;  %v3319_v21 = vld [vmem:[%s4242_s1 + $0x340] sm:$0xff] }
  0x4e   :  { %1768 = vmatpush.bf16.msra.mxu0 %v3283_v22  ;;  %v3358_v22 = vld [vmem:[%s4242_s1 + $0x478] sm:$0xff] }
  0x4f   :  { %1794 = vmatpush.bf16.msra.mxu2 %v3299_v23  ;;  %v3349_v23 = vld [vmem:[%s4242_s1 + $0x430] sm:$0xff] }
  0x50   :  { %1807 = vmatpush.bf16.msra.mxu3 %v3307_v24  ;;  %v3365_v24 = vld [vmem:[%s4242_s1 + $0x4b0] sm:$0xff] }
  0x51   :  { %1781 = vmatpush.bf16.msra.mxu1 %v3291_v25  ;;  %v3373_v25 = vld [vmem:[%s4242_s1 + $0x4f0] sm:$0xff] }
  0x52   :  { %1769 = vmatpush.bf16.msra.mxu0 %v3282_v26  ;;  %v3357_v26 = vld [vmem:[%s4242_s1 + $0x470] sm:$0xff] }
  0x53   :  { %1795 = vmatpush.bf16.msra.mxu2 %v3298_v27  ;;  %v3348_v27 = vld [vmem:[%s4242_s1 + $0x428] sm:$0xff] }
  0x54   :  { %1808 = vmatpush.bf16.msra.mxu3 %v3306_v28  ;;  %v3364_v28 = vld [vmem:[%s4242_s1 + $0x4a8] sm:$0xff] }
  0x55   :  { %1782 = vmatpush.bf16.msra.mxu1 %v3290_v29  ;;  %v3372_v29 = vld [vmem:[%s4242_s1 + $0x4e8] sm:$0xff] }
  0x56   :  { %1770 = vmatpush.bf16.msra.mxu0 %v3281_v30  ;;  %v3356_v30 = vld [vmem:[%s4242_s1 + $0x468] sm:$0xff] }
  0x57   :  { %1796 = vmatpush.bf16.msra.mxu2 %v3297_v31  ;;  %v3347_v31 = vld [vmem:[%s4242_s1 + $0x420] sm:$0xff] }
  0x58   :  { %1809 = vmatpush.bf16.msra.mxu3 %v3305_v32  ;;  %v3363_v32 = vld [vmem:[%s4242_s1 + $0x4a0] sm:$0xff] }
  0x59   :  { %1783 = vmatpush.bf16.msra.mxu1 %v3289_v33  ;;  %v3371_v33 = vld [vmem:[%s4242_s1 + $0x4e0] sm:$0xff] }
  0x5a   :  { %1771 = vmatpush.bf16.msra.mxu0 %v3280_v34  ;;  %v3355_v34 = vld [vmem:[%s4242_s1 + $0x460] sm:$0xff] }
  0x5b   :  { %1797 = vmatpush.bf16.msra.mxu2 %v3296_v35  ;;  %v3346_v35 = vld [vmem:[%s4242_s1 + $0x418] sm:$0xff] }
  0x5c   :  { %1810 = vmatpush.bf16.msra.mxu3 %v3304_v36  ;;  %v3362_v36 = vld [vmem:[%s4242_s1 + $0x498] sm:$0xff] }
  0x5d   :  { %1784 = vmatpush.bf16.msra.mxu1 %v3288_v37  ;;  %v3370_v37 = vld [vmem:[%s4242_s1 + $0x4d8] sm:$0xff] }
  0x5e   :  { %1772 = vmatpush.bf16.msra.mxu0 %v3279_v38  ;;  %v3354_v38 = vld [vmem:[%s4242_s1 + $0x458] sm:$0xff] }
  0x5f   :  { %1798 = vmatpush.bf16.msra.mxu2 %v3295_v39  ;;  %v3345_v39 = vld [vmem:[%s4242_s1 + $0x410] sm:$0xff] }
  0x60   :  { %1811 = vmatpush.bf16.msra.mxu3 %v3303_v40  ;;  %v3361_v40 = vld [vmem:[%s4242_s1 + $0x490] sm:$0xff] }
  0x61   :  { %1785 = vmatpush.bf16.msra.mxu1 %v3287_v44  ;;  %1773 = vmatmul.bf16.vlgmr.msra.gmra.mxu0 %v437_v45  ;;  %v3360_v44 = vld [vmem:[%s4242_s1 + $0x488] sm:$0xff] }
  0x62   :  { %1817 = vmatpush.bf16.msrb.mxu0 %v3318_v41  ;;  %1799 = vmatmul.bf16.vlgmr.msra.gmra.mxu2 %v439_v47  ;;  %v3369_v41 = vld [vmem:[%s4242_s1 + $0x4d0] sm:$0xff]  ;;  %v3368_v45 = vld [vmem:[%s4242_s1 + $0x4c8] sm:$0xff]  ;;  %v3343_v47 = vld [vmem:[%s4242_s1 + $0x400] sm:$0xff] }
  0x63   :  { %1843 = vmatpush.bf16.msrb.mxu2 %v3334_v42  ;;  %1812 = vmatmul.bf16.vlgmr.msra.gmra.mxu3 %v440_v49  ;;  %v3353_v42 = vld [vmem:[%s4242_s1 + $0x450] sm:$0xff]  ;;  %v3367_v49 = vld [vmem:[%s4242_s1 + $0x4c0] sm:$0xff] }
  0x64   :  { %1856 = vmatpush.bf16.msrb.mxu3 %v3342_v43  ;;  %1786 = vmatmul.bf16.vlgmr.msra.gmra.mxu1 %v438_v51  ;;  %v3344_v43 = vld [vmem:[%s4242_s1 + $0x408] sm:$0xff]  ;;  %v3398_v51 = vld [vmem:[%s4242_s1 + $0x5b8] sm:$0xff] }
  0x65   :  { %1830 = vmatpush.bf16.msrb.mxu1 %v3326_v46  ;;  %v3352_v46 = vld [vmem:[%s4242_s1 + $0x448] sm:$0xff] }
  0x66   :  { %1818 = vmatpush.bf16.msrb.mxu0 %v3317_v48  ;;  %v3359_v48 = vld [vmem:[%s4242_s1 + $0x480] sm:$0xff] }
  0x67   :  { %1844 = vmatpush.bf16.msrb.mxu2 %v3333_v50  ;;  %v3382_v50 = vld [vmem:[%s4242_s1 + $0x538] sm:$0xff] }
  0x68   :  { %1857 = vmatpush.bf16.msrb.mxu3 %v3341_v52  ;;  %v3406_v52 = vld [vmem:[%s4242_s1 + $0x5f8] sm:$0xff] }
  0x69   :  { %1831 = vmatpush.bf16.msrb.mxu1 %v3325_v53  ;;  %v3351_v53 = vld [vmem:[%s4242_s1 + $0x440] sm:$0xff] }
  0x6a   :  { %1819 = vmatpush.bf16.msrb.mxu0 %v3316_v54  ;;  %v447_v54 = vld [vmem:[#allocation1] sm:$0xff] }
  0x6b   :  { %1845 = vmatpush.bf16.msrb.mxu2 %v3332_v55  ;;  %v449_v55 = vld [vmem:[#allocation1 + $0x12] sm:$0xff] }
  0x6c   :  { %1858 = vmatpush.bf16.msrb.mxu3 %v3340_v56  ;;  %v3390_v56 = vld [vmem:[%s4242_s1 + $0x578] sm:$0xff] }
  0x6d   :  { %1832 = vmatpush.bf16.msrb.mxu1 %v3324_v57  ;;  %v450_v57 = vld [vmem:[#allocation1 + $0x1b] sm:$0xff] }
  0x6e   :  { %1820 = vmatpush.bf16.msrb.mxu0 %v3315_v58  ;;  %v3381_v58 = vld [vmem:[%s4242_s1 + $0x530] sm:$0xff] }
  0x6f   :  { %1846 = vmatpush.bf16.msrb.mxu2 %v3331_v59  ;;  %v448_v59 = vld [vmem:[#allocation1 + $0x9] sm:$0xff] }
  0x70   :  { %1859 = vmatpush.bf16.msrb.mxu3 %v3339_v60  ;;  %v3397_v60 = vld [vmem:[%s4242_s1 + $0x5b0] sm:$0xff] }
  0x71   :  { %1833 = vmatpush.bf16.msrb.mxu1 %v3323_v61  ;;  %v3405_v61 = vld [vmem:[%s4242_s1 + $0x5f0] sm:$0xff] }
  0x72   :  { %1821 = vmatpush.bf16.msrb.mxu0 %v3314_v62  ;;  %v3389_v62 = vld [vmem:[%s4242_s1 + $0x570] sm:$0xff] }
  0x73   :  { %1847 = vmatpush.bf16.msrb.mxu2 %v3330_v63  ;;  %v3380_v63 = vld [vmem:[%s4242_s1 + $0x528] sm:$0xff] }
  0x74   :  { %1860 = vmatpush.bf16.msrb.mxu3 %v3338_v0  ;;  %v3396_v0 = vld [vmem:[%s4242_s1 + $0x5a8] sm:$0xff] }
  0x75   :  { %1834 = vmatpush.bf16.msrb.mxu1 %v3322_v1  ;;  %v3404_v1 = vld [vmem:[%s4242_s1 + $0x5e8] sm:$0xff] }
  0x76   :  { %1822 = vmatpush.bf16.msrb.mxu0 %v3313_v2  ;;  %v3388_v2 = vld [vmem:[%s4242_s1 + $0x568] sm:$0xff] }
  0x77   :  { %1848 = vmatpush.bf16.msrb.mxu2 %v3329_v3  ;;  %v3437_v3 = vld [vmem:[%s4243_s2] ss:$0 sm:$0xff] }
  0x78   :  { %1861 = vmatpush.bf16.msrb.mxu3 %v3337_v4  ;;  %v4067_v4 = vld [vmem:[#allocation1 + $0x24] sm:$0xff] }
  0x79   :  { %1835 = vmatpush.bf16.msrb.mxu1 %v3321_v5  ;;  %v4069_v5 = vld [vmem:[#allocation1 + $0x36] sm:$0xff] }
  0x7a   :  { %1823 = vmatpush.bf16.msrb.mxu0 %v3312_v6  ;;  %v4071_v6 = vld [vmem:[#allocation1 + $0x3f] sm:$0xff] }
  0x7b   :  { %1849 = vmatpush.bf16.msrb.mxu2 %v3328_v7  ;;  %v4073_v7 = vld [vmem:[#allocation1 + $0x2d] sm:$0xff] }
  0x7c   :  { %1862 = vmatpush.bf16.msrb.mxu3 %v3336_v8  ;;  %v28_v8 = vld [vmem:[%s4241_s0 + $0x18] sm:$0x1] }
  0x7d   :  { %1836 = vmatpush.bf16.msrb.mxu1 %v3320_v14  ;;  %456 = vst [vmem:[#allocation1] ss:$9 sm:$0xff] %v28_v8  ;;  %v3387_v14 = vld [vmem:[%s4242_s1 + $0x560] sm:$0xff] }
  0x7e   :  { %1824 = vmatpush.bf16.msrb.mxu0 %v3311_v15  ;;  %v3378_v15 = vld [vmem:[%s4242_s1 + $0x518] sm:$0xff] }
  0x7f   :  { %1850 = vmatpush.bf16.msrb.mxu2 %v3327_v16 }
  0x80   :  { %1863 = vmatpush.bf16.msrb.mxu3 %v3335_v18  ;;  %v3402_v18 = vld [vmem:[%s4242_s1 + $0x5d8] sm:$0xff] }
  0x81   :  { %1837 = vmatpush.bf16.msrb.mxu1 %v3319_v21  ;;  %1825 = vmatmul.bf16.vlgmr.msrb.gmra.mxu0 %v441_v9  ;;  %v3379_v9 = vld [vmem:[%s4242_s1 + $0x520] sm:$0xff]  ;;  %v3386_v21 = vld [vmem:[%s4242_s1 + $0x558] sm:$0xff] }
  0x82   :  { %1869 = vmatpush.bf16.msra.mxu0 %v3350_v17  ;;  %1851 = vmatmul.bf16.vlgmr.msrb.gmra.mxu2 %v443_v10  ;;  %v3395_v10 = vld [vmem:[%s4242_s1 + $0x5a0] sm:$0xff]  ;;  %v3394_v17 = vld [vmem:[%s4242_s1 + $0x598] sm:$0xff] }
  0x83   :  { %1895 = vmatpush.bf16.msra.mxu2 %v3366_v19  ;;  %1864 = vmatmul.bf16.vlgmr.msrb.gmra.mxu3 %v444_v12 }
  0x84   :  { %1908 = vmatpush.bf16.msra.mxu3 %v3374_v20  ;;  %1838 = vmatmul.bf16.vlgmr.msrb.gmra.mxu1 %v442_v11  ;;  %v3403_v11 = vld [vmem:[%s4242_s1 + $0x5e0] sm:$0xff] }
  0x85   :  { %1882 = vmatpush.bf16.msra.mxu1 %v3358_v22 }
  0x86   :  { %1870 = vmatpush.bf16.msra.mxu0 %v3349_v23  ;;  %v3377_v23 = vld [vmem:[%s4242_s1 + $0x510] sm:$0xff] }
  0x87   :  { %1896 = vmatpush.bf16.msra.mxu2 %v3365_v24 }
  0x88   :  { %1909 = vmatpush.bf16.msra.mxu3 %v3373_v25  ;;  %v3393_v25 = vld [vmem:[%s4242_s1 + $0x590] sm:$0xff] }
  0x89   :  { %1883 = vmatpush.bf16.msra.mxu1 %v3357_v26  ;;  %v3401_v26 = vld [vmem:[%s4242_s1 + $0x5d0] sm:$0xff] }
  0x8a   :  { %1871 = vmatpush.bf16.msra.mxu0 %v3348_v27 }
  0x8b   :  { %1897 = vmatpush.bf16.msra.mxu2 %v3364_v28 }
  0x8c   :  { %1910 = vmatpush.bf16.msra.mxu3 %v3372_v29  ;;  %v3385_v29 = vld [vmem:[%s4242_s1 + $0x550] sm:$0xff] }
  0x8d   :  { %1884 = vmatpush.bf16.msra.mxu1 %v3356_v30  ;;  %v3376_v30 = vld [vmem:[%s4242_s1 + $0x508] sm:$0xff] }
  0x8e   :  { %1872 = vmatpush.bf16.msra.mxu0 %v3347_v31 }
  0x8f   :  { %1898 = vmatpush.bf16.msra.mxu2 %v3363_v32  ;;  %v3392_v32 = vld [vmem:[%s4242_s1 + $0x588] sm:$0xff] }
  0x90   :  { %1911 = vmatpush.bf16.msra.mxu3 %v3371_v33  ;;  %v3400_v33 = vld [vmem:[%s4242_s1 + $0x5c8] sm:$0xff] }
  0x91   :  { %1885 = vmatpush.bf16.msra.mxu1 %v3355_v34 }
  0x92   :  { %1873 = vmatpush.bf16.msra.mxu0 %v3346_v35  ;;  %v3384_v35 = vld [vmem:[%s4242_s1 + $0x548] sm:$0xff] }
  0x93   :  { %1899 = vmatpush.bf16.msra.mxu2 %v3362_v36  ;;  %v3375_v36 = vld [vmem:[%s4242_s1 + $0x500] sm:$0xff] }
  0x94   :  { %1912 = vmatpush.bf16.msra.mxu3 %v3370_v37 }
  0x95   :  { %1886 = vmatpush.bf16.msra.mxu1 %v3354_v38  ;;  %v3391_v38 = vld [vmem:[%s4242_s1 + $0x580] sm:$0xff] }
  0x96   :  { %1874 = vmatpush.bf16.msra.mxu0 %v3345_v39  ;;  %v3399_v39 = vld [vmem:[%s4242_s1 + $0x5c0] sm:$0xff] }
  0x97   :  { %1900 = vmatpush.bf16.msra.mxu2 %v3361_v40  ;;  %v3410_v40 = vld [vmem:[%s4242_s1 + $0x618] sm:$0xff] }
  0x98   :  { %1913 = vmatpush.bf16.msra.mxu3 %v3369_v41  ;;  %v3383_v41 = vld [vmem:[%s4242_s1 + $0x540] sm:$0xff] }
  0x99   :  { %1887 = vmatpush.bf16.msra.mxu1 %v3353_v42  ;;  %v3409_v42 = vld [vmem:[%s4242_s1 + $0x610] sm:$0xff] }
  0x9a   :  { %1875 = vmatpush.bf16.msra.mxu0 %v3344_v43  ;;  %v3408_v43 = vld [vmem:[%s4242_s1 + $0x608] sm:$0xff] }
  0x9b   :  { %1901 = vmatpush.bf16.msra.mxu2 %v3360_v44  ;;  %v3407_v44 = vld [vmem:[%s4242_s1 + $0x600] sm:$0xff] }
  0x9c   :  { %1914 = vmatpush.bf16.msra.mxu3 %v3368_v45 }
  0x9d   :  { %1888 = vmatpush.bf16.msra.mxu1 %v3352_v46 }
  0x9e   :  { %1876 = vmatpush.bf16.msra.mxu0 %v3343_v47  ;;  %v1670_v12 = vpop.f32.mrf.mxu0 }
  0x9f   :  { %1902 = vmatpush.bf16.msra.mxu2 %v3359_v48  ;;  %v1671_v13 = vadd.f32 %v3437_v3, %v1670_v12  ;;  %v3417_v12 = vld [vmem:[%s4244_s3 + $0x30] sm:$0xff] }
  0xa0   :  { %1915 = vmatpush.bf16.msra.mxu3 %v3367_v49  ;;  %v457_v49 = vld [vmem:[#allocation1] sm:$0xff] }
  0xa1   :  { %1889 = vmatpush.bf16.msra.mxu1 %v3351_v53  ;;  %1877 = vmatmul.bf16.vlgmr.msra.gmra.mxu0 %v447_v54  ;;  %v1683_v16 = vpop.f32.mrf.mxu1 }
  0xa2   :  { %1921 = vmatpush.bf16.msrb.mxu0 %v3382_v50  ;;  %1903 = vmatmul.bf16.vlgmr.msra.gmra.mxu2 %v449_v55  ;;  %v1684_v19 = vadd.f32 %v1683_v16, %v1671_v13 }
  0xa3   :  { %1947 = vmatpush.bf16.msrb.mxu2 %v3398_v51  ;;  %1916 = vmatmul.bf16.vlgmr.msra.gmra.mxu3 %v450_v57 }
  0xa4   :  { %1960 = vmatpush.bf16.msrb.mxu3 %v3406_v52  ;;  %1890 = vmatmul.bf16.vlgmr.msra.gmra.mxu1 %v448_v59 }
  0xa5   :  { %1934 = vmatpush.bf16.msrb.mxu1 %v3390_v56  ;;  %v1696_v20 = vpop.f32.mrf.mxu2 }
  0xa6   :  { %1922 = vmatpush.bf16.msrb.mxu0 %v3381_v58  ;;  %v1697_v22 = vadd.f32 %v1696_v20, %v1684_v19  ;;  %v1709_v24 = vpop.f32.mrf.mxu3  ;;  %v1672_v28 = vpop.f32.mrf.mxu0  ;;  %v3414_v20 = vld [vmem:[%s4244_s3 + $0x18] sm:$0xff] }
  0xa7   :  { %1948 = vmatpush.bf16.msrb.mxu2 %v3397_v60 }
  0xa8   :  { %1961 = vmatpush.bf16.msrb.mxu3 %v3405_v61  ;;  %v1710_v27 = vadd.f32 %v1709_v24, %v1697_v22  ;;  %v3413_v22 = vld [vmem:[%s4244_s3 + $0x10] sm:$0xff] }
  0xa9   :  { %1935 = vmatpush.bf16.msrb.mxu1 %v3389_v62  ;;  %v1685_v31 = vpop.f32.mrf.mxu1 }
  0xaa   :  { %1923 = vmatpush.bf16.msrb.mxu0 %v3380_v63 }
  0xab   :  { %1949 = vmatpush.bf16.msrb.mxu2 %v3396_v0 }
  0xac   :  { %1962 = vmatpush.bf16.msrb.mxu3 %v3404_v1 }
  0xad   :  { %1936 = vmatpush.bf16.msrb.mxu1 %v3388_v2  ;;  %v1698_v34 = vpop.f32.mrf.mxu2 }
  0xae   :  { %1924 = vmatpush.bf16.msrb.mxu0 %v3379_v9  ;;  %v1711_v37 = vpop.f32.mrf.mxu3  ;;  %v3426_v34 = vld [vmem:[%s4244_s3 + $0x78] sm:$0xff] }
  0xaf   :  { %1950 = vmatpush.bf16.msrb.mxu2 %v3395_v10  ;;  %v3418_v10 = vld [vmem:[%s4244_s3 + $0x38] sm:$0xff] }
  0xb0   :  { %1963 = vmatpush.bf16.msrb.mxu3 %v3403_v11 }
  0xb1   :  { %1937 = vmatpush.bf16.msrb.mxu1 %v3387_v14  ;;  %v3416_v14 = vld [vmem:[%s4244_s3 + $0x28] sm:$0xff] }
  0xb2   :  { %1925 = vmatpush.bf16.msrb.mxu0 %v3378_v15 }
  0xb3   :  { %1951 = vmatpush.bf16.msrb.mxu2 %v3394_v17  ;;  %v3415_v17 = vld [vmem:[%s4244_s3 + $0x20] sm:$0xff] }
  0xb4   :  { %1964 = vmatpush.bf16.msrb.mxu3 %v3402_v18 }
  0xb5   :  { %1938 = vmatpush.bf16.msrb.mxu1 %v3386_v21 }
  0xb6   :  { %1926 = vmatpush.bf16.msrb.mxu0 %v3377_v23 }
  0xb7   :  { %1952 = vmatpush.bf16.msrb.mxu2 %v3393_v25 }
  0xb8   :  { %1965 = vmatpush.bf16.msrb.mxu3 %v3401_v26 }
  0xb9   :  { %1939 = vmatpush.bf16.msrb.mxu1 %v3385_v29 }
  0xba   :  { %1927 = vmatpush.bf16.msrb.mxu0 %v3376_v30  ;;  %v3411_v30 = vld [vmem:[%s4244_s3] sm:$0xff] }
  0xbb   :  { %1953 = vmatpush.bf16.msrb.mxu2 %v3392_v32 }
  0xbc   :  { %1966 = vmatpush.bf16.msrb.mxu3 %v3400_v33 }
  0xbd   :  { %1940 = vmatpush.bf16.msrb.mxu1 %v3384_v35 }
  0xbe   :  { %1928 = vmatpush.bf16.msrb.mxu0 %v3375_v36  ;;  %v1722_v45 = vpop.f32.mrf.mxu0  ;;  %v3425_v36 = vld [vmem:[%s4244_s3 + $0x70] sm:$0xff] }
  0xbf   :  { %1954 = vmatpush.bf16.msrb.mxu2 %v3391_v38  ;;  %v1723_v46 = vadd.f32 %v1722_v45, %v1710_v27  ;;  %v3412_v27 = vld [vmem:[%s4244_s3 + $0x8] sm:$0xff]  ;;  %v3422_v45 = vld [vmem:[%s4244_s3 + $0x58] sm:$0xff] }
  0xc0   :  { %1967 = vmatpush.bf16.msrb.mxu3 %v3399_v39  ;;  %v3424_v38 = vld [vmem:[%s4244_s3 + $0x68] sm:$0xff] }
  0xc1   :  { %1941 = vmatpush.bf16.msrb.mxu1 %v3383_v41  ;;  %1929 = vmatmul.bf16.vlgmr.msrb.gmra.mxu0 %v4067_v4  ;;  %v1735_v47 = vpop.f32.mrf.mxu1  ;;  %v3423_v41 = vld [vmem:[%s4244_s3 + $0x60] sm:$0xff] }
  0xc2   :  { %1977 = vmatpush.bf16.msra.mxu0 %v3410_v40  ;;  %1955 = vmatmul.bf16.vlgmr.msrb.gmra.mxu2 %v4069_v5  ;;  %v1736_v48 = vadd.f32 %v1735_v47, %v1723_v46 }
  0xc3   :  { %1968 = vmatmul.bf16.vlgmr.msrb.gmra.mxu3 %v4071_v6  ;;  %2140 = vmatpush.bf16.msra.mxu2 %v3426_v34 }
  0xc4   :  { %1942 = vmatmul.bf16.vlgmr.msrb.gmra.mxu1 %v4073_v7 }
  0xc5   :  { %v1748_v50 = vpop.f32.mrf.mxu2  ;;  %2055 = vmatpush.bf16.msra.mxu1 %v3418_v10  ;;  %v3428_v10 = vld [vmem:[%s4244_s3 + $0x88] sm:$0xff] }
  0xc6   :  { %1978 = vmatpush.bf16.msra.mxu0 %v3409_v42  ;;  %v1749_v51 = vadd.f32 %v1748_v50, %v1736_v48  ;;  %v1761_v52 = vpop.f32.mrf.mxu3  ;;  %v1724_v54 = vpop.f32.mrf.mxu0  ;;  %v3421_v50 = vld [vmem:[%s4244_s3 + $0x50] sm:$0xff] }
  0xc7   :  { %2141 = vmatpush.bf16.msra.mxu2 %v3425_v36 }
  0xc8   :  { %v1762_v53 = vadd.f32 %v1761_v52, %v1749_v51 }
  0xc9   :  { %v1737_v55 = vpop.f32.mrf.mxu1  ;;  %2056 = vmatpush.bf16.msra.mxu1 %v3417_v12  ;;  %v3439_v12 = vld [vmem:[%s4245_s4 + $0x1] ss:$0 sm:$0xff] }
  0xca   :  { %1979 = vmatpush.bf16.msra.mxu0 %v3408_v43 }
  0xcb   :  { %2142 = vmatpush.bf16.msra.mxu2 %v3424_v38 }
  0xcd   :  { %v1750_v56 = vpop.f32.mrf.mxu2  ;;  %2057 = vmatpush.bf16.msra.mxu1 %v3416_v14 }
  0xce   :  { %1980 = vmatpush.bf16.msra.mxu0 %v3407_v44  ;;  %v1763_v57 = vpop.f32.mrf.mxu3 }
  0xcf   :  { %2143 = vmatpush.bf16.msra.mxu2 %v3423_v41 }
  0xd1   :  { %3084 = vmatmul.msk.bf16.vlgmr.msra.gmra.mxu0 %vm1658_vm0, %v457_v49  ;;  %2058 = vmatpush.bf16.msra.mxu1 %v3415_v17 }
  0xd3   :  { %2144 = vmatpush.bf16.msra.mxu2 %v3422_v45 }
  0xd5   :  { %2059 = vmatpush.bf16.msra.mxu1 %v3414_v20 }
  0xd7   :  { %2145 = vmatpush.bf16.msra.mxu2 %v3421_v50 }
  0xd9   :  { %2060 = vmatpush.bf16.msra.mxu1 %v3413_v22 }
  0xdd   :  { %2061 = vmatpush.bf16.msra.mxu1 %v3412_v27 }
  0xde   :  { %v1774_v58 = vpop.f32.mrf.mxu0 }
  0xdf   :  { %v1775_v59 = vadd.f32 %v1774_v58, %v1762_v53 }
  0xe1   :  { %v1787_v60 = vpop.f32.mrf.mxu1  ;;  %2062 = vmatpush.bf16.msra.mxu1 %v3411_v30 }
  0xe2   :  { %v1788_v61 = vadd.f32 %v1787_v60, %v1775_v59  ;;  %v3420_v60 = vld [vmem:[%s4244_s3 + $0x48] sm:$0xff] }
  0xe3   :  { %2146 = vmatpush.bf16.msra.mxu2 %v3420_v60 }
  0xe5   :  { %v1800_v62 = vpop.f32.mrf.mxu2 }
  0xe6   :  { %v1801_v63 = vadd.f32 %v1800_v62, %v1788_v61  ;;  %v1813_v0 = vpop.f32.mrf.mxu3  ;;  %v1776_v1 = vpop.f32.mrf.mxu0  ;;  %v3419_v61 = vld [vmem:[%s4244_s3 + $0x40] sm:$0xff]  ;;  %v3434_v62 = vld [vmem:[%s4244_s3 + $0xb8] sm:$0xff] }
  0xe7   :  { %2147 = vmatpush.bf16.msra.mxu2 %v3419_v61  ;;  %2225 = vmatpush.bf16.msra.mxu3 %v3434_v62  ;;  %v3431_v1 = vld [vmem:[%s4244_s3 + $0xa0] sm:$0xff] }
  0xe8   :  { %v1814_v2 = vadd.f32 %v1813_v0, %v1801_v63  ;;  %v3433_v63 = vld [vmem:[%s4244_s3 + $0xb0] sm:$0xff]  ;;  %v3432_v0 = vld [vmem:[%s4244_s3 + $0xa8] sm:$0xff] }
  0xe9   :  { %v1789_v3 = vpop.f32.mrf.mxu1 }
  0xea   :  { %v3429_v3 = vld [vmem:[%s4244_s3 + $0x90] sm:$0xff] }
  0xeb   :  { %2226 = vmatpush.bf16.msra.mxu3 %v3433_v63 }
  0xed   :  { %v1802_v4 = vpop.f32.mrf.mxu2 }
  0xee   :  { %v1815_v5 = vpop.f32.mrf.mxu3  ;;  %v3438_v4 = vld [vmem:[%s4245_s4] ss:$0 sm:$0xff] }
  0xef   :  { %2227 = vmatpush.bf16.msra.mxu3 %v3432_v0 }
  0xf3   :  { %2228 = vmatpush.bf16.msra.mxu3 %v3431_v1 }
  0xfe   :  { %v1826_v6 = vpop.f32.mrf.mxu0 }
  0xff   :  { %v1827_v25 = vadd.f32 %v1826_v6, %v1814_v2  ;;  %v3430_v2 = vld [vmem:[%s4244_s3 + $0x98] sm:$0xff] }
 0x100   :  { %2229 = vmatpush.bf16.msra.mxu3 %v3430_v2 }
 0x101   :  { %v1839_v7 = vpop.f32.mrf.mxu1 }
 0x102   :  { %v1840_v28 = vadd.f32 %v1839_v7, %v1827_v25 }
 0x104   :  { %2230 = vmatpush.bf16.msra.mxu3 %v3429_v3 }
 0x105   :  { %v1852_v8 = vpop.f32.mrf.mxu2 }
 0x106   :  { %v1865_v9 = vpop.f32.mrf.mxu3  ;;  %v1828_v11 = vpop.f32.mrf.mxu0  ;;  %v1853_v32 = vadd.f32 %v1852_v8, %v1840_v28 }
 0x107   :  { %v3427_v11 = vld [vmem:[%s4244_s3 + $0x80] sm:$0xff]  ;;  %s3499_s3 = smov [#allocation2]  }
 0x108   :  { %v1866_v33 = vadd.f32 %v1865_v9, %v1853_v32  ;;  %2231 = vmatpush.bf16.msra.mxu3 %v3428_v10 }
 0x109   :  { %v1841_v13 = vpop.f32.mrf.mxu1 }
 0x10c   :  { %2232 = vmatpush.bf16.msra.mxu3 %v3427_v11 }
 0x10d   :  { %v1854_v15 = vpop.f32.mrf.mxu2 }
 0x10e   :  { %v1867_v16 = vpop.f32.mrf.mxu3 }
 0x11e   :  { %v1878_v18 = vpop.f32.mrf.mxu0 }
 0x11f   :  { %v1879_v35 = vadd.f32 %v1878_v18, %v1866_v33  ;;  %v3440_v18 = vld [vmem:[%s4245_s4 + $0x2] ss:$0 sm:$0xff]  ;;  %s2273_s4 = sshll.u32 %s3499_s3, 4  ;;  %s2274_s4 = int_to_ptr.vmem [resolvable:$true] %s2273_s4 }
 0x121   :  { %v1891_v19 = vpop.f32.mrf.mxu1 }
 0x122   :  { %v1892_v37 = vadd.f32 %v1891_v19, %v1879_v35 }
 0x125   :  { %v1904_v21 = vpop.f32.mrf.mxu2 }
 0x126   :  { %v1917_v23 = vpop.f32.mrf.mxu3  ;;  %v1880_v24 = vpop.f32.mrf.mxu0  ;;  %v1905_v39 = vadd.f32 %v1904_v21, %v1892_v37 }
 0x128   :  { %v1918_v42 = vadd.f32 %v1917_v23, %v1905_v39 }
 0x129   :  { %v1893_v26 = vpop.f32.mrf.mxu1 }
 0x12d   :  { %v1906_v29 = vpop.f32.mrf.mxu2 }
 0x12e   :  { %v1919_v31 = vpop.f32.mrf.mxu3 }
 0x13e   :  { %v1930_v40 = vpop.f32.mrf.mxu0 }
 0x13f   :  { %v1931_v44 = vadd.f32 %v1930_v40, %v1918_v42 }
 0x141   :  { %v1943_v43 = vpop.f32.mrf.mxu1 }
 0x142   :  { %v1944_v49 = vadd.f32 %v1943_v43, %v1931_v44 }
 0x145   :  { %v1956_v46 = vpop.f32.mrf.mxu2 }
 0x146   :  { %v1969_v47 = vpop.f32.mrf.mxu3  ;;  %v1932_v48 = vpop.f32.mrf.mxu0  ;;  %v1957_v51 = vadd.f32 %v1956_v46, %v1944_v49 }
 0x148   :  { %v1970_v53 = vadd.f32 %v1969_v47, %v1957_v51 }
 0x149   :  { %v1945_v52 = vpop.f32.mrf.mxu1 }
 0x14d   :  { %v1958_v54 = vpop.f32.mrf.mxu2 }
 0x14e   :  { %v1971_v55 = vpop.f32.mrf.mxu3  ;;  %v1982_v56 = vpop.f32.mrf.mxu0 }
 0x14f   :  { %v1983_v57 = vadd.f32 %v1982_v56, %v1970_v53 }
 0x151   :  { %v1986_v58 = vpack.c.bf16 %v1983_v57, %v1983_v57 }
 0x153   :  { %2063 = vmatmul.bf16.vlgmr.msra.gmra.mxu1 %v1986_v58 }
 0x156   :  { %v1984_v59 = vpop.f32.mrf.mxu0 }
 0x1d0   :  { %v2064_v5 = vpop.f32.mrf.mxu1 }
 0x1d1   :  { %v2065_v6 = vadd.f32 %v3438_v4, %v2064_v5 }
 0x1d3   :  { %v2068_v7 = vmax.f32 %v2065_v6, 0.0 }
 0x1d5   :  { %v2069_v8 = vpack.c.bf16 %v2068_v7, %v2068_v7 }
 0x1d7   :  { %2148 = vmatmul.bf16.vlgmr.msra.gmra.mxu2 %v2069_v8 }
 0x1d8   :  { %v2066_v9 = vpop.f32.mrf.mxu1 }
 0x25a   :  { %v2149_v13 = vpop.f32.mrf.mxu2 }
 0x25b   :  { %v2150_v14 = vadd.f32 %v3439_v12, %v2149_v13 }
 0x25d   :  { %v2153_v15 = vmax.f32 %v2150_v14, 0.0 }
 0x25f   :  { %v2154_v16 = vpack.c.bf16 %v2153_v15, %v2153_v15 }
 0x261   :  { %2233 = vmatmul.bf16.vlgmr.msra.gmra.mxu3 %v2154_v16 }
 0x262   :  { %v2151_v17 = vpop.f32.mrf.mxu2 }
 0x2e4   :  { %v2234_v19 = vpop.f32.mrf.mxu3 }
 0x2e5   :  { %v2235_v20 = vadd.f32 %v3440_v18, %v2234_v19 }
 0x2e7   :  { %v2239_v21 = vsel %vm2238_vm1, %v2235_v20, -inf }
 0x2e8   :  { %2240 = vmax.xlane.f32.xlu0 %v2239_v21 }
 0x2ec   :  { %v2236_v22 = vpop.f32.mrf.mxu3 }
 0x35b   :  { %v2241_v23 = vpop.xlane.xlu0 %2240 }
 0x35c   :  { %v2242_v24 = vsub.f32 %v2235_v20, %v2241_v23 }
 0x35e   :  { %v2243_v25 = vmul.f32 1.442695, %v2242_v24 }
 0x360   :  { %3441 = vpow2.f32 %v2243_v25 }
 0x366   :  { %v3442_v26 = vpop.eup %3441 }
 0x367   :  { %v2245_v27 = vsel %vm2238_vm1, %v3442_v26, 0.0 }
 0x368   :  { %2246 = vadd.xlane.f32.xlu0 %v2245_v27 }
 0x3db   :  { %v2247_v28 = vpop.xlane.xlu0 %2246 }
 0x3dc   :  { %3443 = vrcp.f32 %v2247_v28  ;;  %v2263_v34 = vand.u32 2147483648, %v2247_v28  ;;  %v2261_v37 = vand.u32 2147483647, %v2247_v28  ;;  %vm2257_vm3 = vweird.f32 %v2247_v28 }
 0x3dd   :  { %3445 = vlog2.f32 %v2247_v28 }
 0x3de   :  { %v2264_v39 = vor.u32 1.1754944e-38, %v2263_v34  ;;  %vm2262_vm5 = vcmp.eq.f32.partialorder %v2261_v37, 8.507059e+37 }
 0x3e2   :  { %v3444_v29 = vpop.eup %3443 }
 0x3e3   :  { %v3446_v30 = vpop.eup %3445  ;;  %v2253_v31 = vmul.f32 %v3444_v29, %v2247_v28  ;;  %vm2258_vm2 = vweird.f32 %v3444_v29 }
 0x3e4   :  { %v2249_v32 = vmul.f32 0.6931472, %v3446_v30  ;;  %vm2259_vm4 = vmor %vm2257_vm3, %vm2258_vm2 }
 0x3e5   :  { %v2254_v33 = vsub.f32 1.0, %v2253_v31 }
 0x3e6   :  { %v2250_v35 = vsub.f32 %v2242_v24, %v2249_v32 }
 0x3e7   :  { %v2255_v36 = vmul.f32 %v3444_v29, %v2254_v33 }
 0x3e8   :  { %2251 = vst [vmem:[#allocation2] sm:$0x3] %v2250_v35 }
 0x3e9   :  { %2278 = dma.vmem_to_hbm [thread:$0]  %s2274_s4, 32, %s2276_s12, [#allocation3]   ;;  %v2256_v38 = vadd.f32 %v3444_v29, %v2255_v36 }
 0x3eb   :  { %v2260_v40 = vsel %vm2259_vm4, %v3444_v29, %v2256_v38 }
 0x3ec   :  { %v2265_v41 = vsel %vm2262_vm5, %v2264_v39, %v2260_v40 }
 0x3ed   :  { %v2266_v42 = vmul.f32 %v3442_v26, %v2265_v41 }
 0x3ef   :  { %2267 = vst [vmem:[#allocation4] sm:$0x3] %v2266_v42 }
 0x3f0   :  { %2289 = dma.vmem_to_hbm [thread:$0]  %s2285_s14, 32, %s2287_s5, [#allocation5]  }
 0x3f1   :  { %3495 = dma.done.wait [#allocation3], 32  }
 0x3f2   :  { %3496 = vsyncadd [#allocation3], 4294967264 }
 0x3f3   :  { %3497 = dma.done.wait [#allocation5], 32  }
 0x3f4   :  { %3498 = vsyncadd [#allocation5], 4294967264 }
 0x3f5   :  { %2298 = vsyncpa [#allocation3], 1 }
 0x3f6   :  { %2299 = vsyncpa [#allocation5], 1 }

</bundles_post_ra>
